<compile_context>
chip_gen: v5e
topology: v5e:2x2
jax: 0.10.0
libtpu: 0.0.40
codegen_flags: <defaults>
</compile_context>

<pallas_src>
import functools

import numpy as np
import jax
import jax.numpy as jnp
from jax import lax
from jax.experimental import pallas as pl
from jax.experimental.pallas import tpu as pltpu

_BN_EPS = 1e-5
_F32 = jnp.float32
_BF16 = jnp.bfloat16


# ---------------------------------------------------------------------------
# Stage 1: conv1 (3x3 / stride 2) as one im2col MXU contraction + bn1 partials.
# ---------------------------------------------------------------------------
def _conv1_kernel(xcol_ref, w_ref, y_ref, stats_ref):
    acc = jnp.dot(xcol_ref[...], w_ref[...], preferred_element_type=_F32)
    y_ref[...] = acc.astype(y_ref.dtype)
    # Per-tile BN partial statistics (phase 1); reduced across tiles in glue.
    stats_ref[0, 0:1, :] = jnp.sum(acc, axis=0, keepdims=True)
    stats_ref[0, 1:2, :] = jnp.sum(acc * acc, axis=0, keepdims=True)


# ---------------------------------------------------------------------------
# Stages 2/3: fold previous BN (scale/shift) + ReLU, then 3x3 stride-1 conv as
# nine accumulating bf16 tap dots over shifted row views of a margined scratch.
# ---------------------------------------------------------------------------
def _bn_relu_conv3x3_kernel(y_in_ref, scale_ref, shift_ref, w_ref,
                            y_out_ref, stats_ref, pad_ref,
                            *, rows, Ho, Wo, margin):
    cin = pad_ref.shape[1]

    # Zero only the margins (cheap); the interior is fully overwritten below.
    zeros_m = jnp.zeros((margin, cin), _F32)
    pad_ref[0:margin, :] = zeros_m
    pad_ref[margin + rows:margin + rows + margin, :] = zeros_m

    # Previous layer's batch-stat BN + ReLU folded into one scale/shift/max pass.
    h = jnp.maximum(y_in_ref[...].astype(_F32) * scale_ref[...] + shift_ref[...], 0.0)
    pad_ref[margin:margin + rows, :] = h

    # In-kernel per-tap boundary masks from iota (image-edge zero padding and
    # isolation between images inside the tile); no [rows, 9] mask input.
    r = lax.broadcasted_iota(jnp.int32, (rows, 1), 0)
    j = r % Wo                    # column inside the image row
    ri = r % (Ho * Wo)            # flat position inside the image

    acc = None
    for dy in (-1, 0, 1):
        for dx in (-1, 0, 1):
            s = dy * Wo + dx
            view = pad_ref[margin + s:margin + s + rows, :]
            conds = []
            if dy < 0:
                conds.append(ri >= Wo)
            if dy > 0:
                conds.append(ri < (Ho - 1) * Wo)
            if dx < 0:
                conds.append(j >= 1)
            if dx > 0:
                conds.append(j <= Wo - 2)
            if conds:
                ok = functools.reduce(jnp.logical_and, conds)
                tap = jnp.where(ok, view, 0.0)
            else:
                tap = view
            t = (dy + 1) * 3 + (dx + 1)
            d = jnp.dot(tap.astype(_BF16), w_ref[t], preferred_element_type=_F32)
            acc = d if acc is None else acc + d

    y_out_ref[...] = acc.astype(y_out_ref.dtype)
    stats_ref[0, 0:1, :] = jnp.sum(acc, axis=0, keepdims=True)
    stats_ref[0, 1:2, :] = jnp.sum(acc * acc, axis=0, keepdims=True)


# ---------------------------------------------------------------------------
# Stage 4: bn3 + ReLU + AvgPool2d(2), all on the VPU, one dense 3-D slab store.
# ---------------------------------------------------------------------------
def _bn_relu_pool_kernel(y_ref, scale_ref, shift_ref, o_ref, *, rows, Wo, Wf):
    half = rows // 2
    sc = scale_ref[...]
    sh = shift_ref[...]
    # Horizontal (j) pairs via stride-2 sublane reads straight off the input block.
    even = jnp.maximum(y_ref[pl.ds(0, half, stride=2), :] * sc + sh, 0.0)
    odd = jnp.maximum(y_ref[pl.ds(1, half, stride=2), :] * sc + sh, 0.0)
    hsum = even + odd                                   # [tiles*Ho*Wf, C]
    # Vertical (i) pairs: layout-preserving reshape (Wo = 2*Wf is a sublane
    # multiple), add the two Wf-row halves, store one dense 3-D slab.
    v = hsum.reshape(half // Wo, Wo, hsum.shape[-1])
    o_ref[...] = 0.25 * (v[:, :Wf, :] + v[:, Wf:, :])


# ---------------------------------------------------------------------------
# Glue: weight repacking, conv1 im2col, BN scale/shift folding, pallas_calls.
# ---------------------------------------------------------------------------
def _flat_taps_2d(w_oihw):
    """[O, I, 3, 3] -> [9*I, O] (tap-major, cin-minor) bf16 for the im2col conv1."""
    o, i, kh, kw = w_oihw.shape
    return jnp.transpose(w_oihw, (2, 3, 1, 0)).reshape(kh * kw * i, o).astype(_BF16)


def _flat_taps_3d(w_oihw):
    """[O, I, 3, 3] -> [9, I, O] bf16 for the per-tap accumulating conv dots."""
    o, i, kh, kw = w_oihw.shape
    return jnp.transpose(w_oihw, (2, 3, 1, 0)).reshape(kh * kw, i, o).astype(_BF16)


def _im2col_s2(x_nhwc, Ho, Wo):
    """im2col for the stride-2, pad-1, 3x3 conv1: [N, H, W, C] -> [N*Ho*Wo, 9*C]."""
    N, H, W, C = x_nhwc.shape
    xp = jnp.pad(x_nhwc, ((0, 0), (1, 1), (1, 1), (0, 0)))
    cols = []
    for dy in range(3):
        for dx in range(3):
            cols.append(lax.slice(xp, (0, dy, dx, 0),
                                  (N, dy + 2 * Ho - 1, dx + 2 * Wo - 1, C),
                                  (1, 2, 2, 1)))
    return jnp.concatenate(cols, axis=-1).reshape(N * Ho * Wo, 9 * C)


def _bn_scale_shift(stats_tiles, count, gamma, beta):
    """Phase-2 BN: reduce per-tile partials and fold to one scale/shift pair."""
    stats = jnp.sum(stats_tiles, axis=0)                 # [2, C]
    mean = stats[0] / count
    var = jnp.maximum(stats[1] / count - mean * mean, 0.0)
    scale = gamma * lax.rsqrt(var + _BN_EPS)
    shift = beta - mean * scale
    return scale.reshape(1, -1), shift.reshape(1, -1)


def _nbytes(shape, dtype):
    return int(np.prod(shape)) * jnp.dtype(dtype).itemsize


def _mosaic_params(semantics, est_bytes):
    assert est_bytes <= (56 << 20), (
        f"per-tile VMEM footprint {est_bytes} bytes too large; reduce images_per_tile")
    limit = int(min(64 << 20, max(16 << 20, est_bytes + (4 << 20))))
    return pltpu.CompilerParams(dimension_semantics=semantics,
                                vmem_limit_bytes=limit)


def init_params(key, in_channels=3, width=64):
    w2 = width // 2
    ks = jax.random.split(key, 9)
    nrm = jax.random.normal
    return {
        "conv1_w": 0.2 * nrm(ks[0], (w2, in_channels, 3, 3), jnp.float32),
        "conv2_w": 0.1 * nrm(ks[1], (w2, w2, 3, 3), jnp.float32),
        "conv3_w": 0.1 * nrm(ks[2], (width, w2, 3, 3), jnp.float32),
        "bn1_g": 1.0 + 0.1 * nrm(ks[3], (w2,), jnp.float32),
        "bn1_b": 0.1 * nrm(ks[4], (w2,), jnp.float32),
        "bn2_g": 1.0 + 0.1 * nrm(ks[5], (w2,), jnp.float32),
        "bn2_b": 0.1 * nrm(ks[6], (w2,), jnp.float32),
        "bn3_g": 1.0 + 0.1 * nrm(ks[7], (width,), jnp.float32),
        "bn3_b": 0.1 * nrm(ks[8], (width,), jnp.float32),
    }


def resnet_pre_encoder_forward(x, params, *, images_per_tile=1):
    """x: NCHW float array. Returns NCHW output [N, width, H//4, W//4]."""
    assert x.ndim == 4, f"expect 4d x, got {x.ndim}"
    N, C, H, W = x.shape
    # Kernel layout constraints: Wo = W//2 must be a multiple of 8 (sublane tile).
    assert H % 4 == 0 and W % 16 == 0, (H, W)
    TB = images_per_tile
    assert N % TB == 0, (N, TB)
    x = x.astype(_F32)

    w1 = params["conv1_w"]
    if C != 3:
        # use_mean branch of the PyTorch forward: average conv1 weight over its
        # input-channel dim (valid, like PyTorch, only when x has 1 channel).
        w1_eff = jnp.mean(w1, axis=1, keepdims=True)
    else:
        w1_eff = w1
    assert w1_eff.shape[1] == C, "input channels incompatible with conv1 weight"

    c1 = params["conv2_w"].shape[0]            # width // 2
    cout = params["conv3_w"].shape[0]          # width
    Ho, Wo = H // 2, W // 2                    # after conv1 (stride 2)
    Hf, Wf = Ho // 2, Wo // 2                  # after AvgPool2d(2)
    R = N * Ho * Wo
    rows_t = TB * Ho * Wo                      # rows per grid step
    G = N // TB
    grid = (G,)
    margin = ((Wo + 1 + 7) // 8) * 8           # >= Wo + 1, sublane aligned
    kin = 9 * C
    sem = ("parallel",)                        # every stage is per-tile independent

    # glue: conv1 im2col block (linear-size) and tap-major bf16 weights.
    x_col = _im2col_s2(jnp.transpose(x, (0, 2, 3, 1)), Ho, Wo).astype(_BF16)
    w1f = _flat_taps_2d(w1_eff)                # [9*C,  c1]
    w2f = _flat_taps_3d(params["conv2_w"])     # [9, c1, c1]
    w3f = _flat_taps_3d(params["conv3_w"])     # [9, c1, cout]

    # --- stage 1: conv1 + bn1 per-tile partial stats ---------------------------
    est1 = (2 * (_nbytes((rows_t, kin), _BF16) + _nbytes((rows_t, c1), _BF16))
            + _nbytes((kin, c1), _BF16) + 2 * _nbytes((2, c1), _F32))
    y1, stats1 = pl.pallas_call(
        _conv1_kernel,
        grid=grid,
        in_specs=[pl.BlockSpec((rows_t, kin), lambda b: (b, 0)),
                  pl.BlockSpec((kin, c1), lambda b: (0, 0))],
        out_specs=[pl.BlockSpec((rows_t, c1), lambda b: (b, 0)),
                   pl.BlockSpec((1, 2, c1), lambda b: (b, 0, 0))],
        out_shape=[jax.ShapeDtypeStruct((R, c1), _BF16),
                   jax.ShapeDtypeStruct((G, 2, c1), _F32)],
        compiler_params=_mosaic_params(sem, est1),
    )(x_col, w1f)
    scale1, shift1 = _bn_scale_shift(stats1, R, params["bn1_g"], params["bn1_b"])

    # --- stages 2 & 3: fold BN+ReLU, 3x3 stride-1 conv, next-BN partial stats --
    def conv_stage(y_in, scale, shift, wtaps, out_dtype):
        cin, co = wtaps.shape[1], wtaps.shape[2]
        est = (2 * (_nbytes((rows_t, cin), y_in.dtype)
                    + _nbytes((rows_t, co), out_dtype))
               + _nbytes((rows_t + 2 * margin, cin), _F32)
               + _nbytes(wtaps.shape, _BF16) + 2 * _nbytes((2, co), _F32))
        kern = functools.partial(_bn_relu_conv3x3_kernel,
                                 rows=rows_t, Ho=Ho, Wo=Wo, margin=margin)
        return pl.pallas_call(
            kern,
            grid=grid,
            in_specs=[pl.BlockSpec((rows_t, cin), lambda b: (b, 0)),
                      pl.BlockSpec((1, cin), lambda b: (0, 0)),
                      pl.BlockSpec((1, cin), lambda b: (0, 0)),
                      pl.BlockSpec((9, cin, co), lambda b: (0, 0, 0))],
            out_specs=[pl.BlockSpec((rows_t, co), lambda b: (b, 0)),
                       pl.BlockSpec((1, 2, co), lambda b: (b, 0, 0))],
            out_shape=[jax.ShapeDtypeStruct((R, co), out_dtype),
                       jax.ShapeDtypeStruct((G, 2, co), _F32)],
            scratch_shapes=[pltpu.VMEM((rows_t + 2 * margin, cin), _F32)],
            compiler_params=_mosaic_params(sem, est),
        )(y_in, scale, shift, wtaps)

    y2, stats2 = conv_stage(y1, scale1, shift1, w2f, _BF16)
    scale2, shift2 = _bn_scale_shift(stats2, R, params["bn2_g"], params["bn2_b"])

    # y3 stays f32 so stage 4 can use plain stride-2 sublane reads for pooling.
    y3, stats3 = conv_stage(y2, scale2, shift2, w3f, _F32)
    scale3, shift3 = _bn_scale_shift(stats3, R, params["bn3_g"], params["bn3_b"])

    # --- stage 4: bn3 + ReLU + AvgPool2d(2) ------------------------------------
    est4 = (2 * (_nbytes((rows_t, cout), _F32)
                 + _nbytes((TB * Hf, Wf, cout), _F32))
            + 2 * _nbytes((1, cout), _F32))
    pool = functools.partial(_bn_relu_pool_kernel, rows=rows_t, Wo=Wo, Wf=Wf)
    out3 = pl.pallas_call(
        pool,
        grid=grid,
        in_specs=[pl.BlockSpec((rows_t, cout), lambda b: (b, 0)),
                  pl.BlockSpec((1, cout), lambda b: (0, 0)),
                  pl.BlockSpec((1, cout), lambda b: (0, 0))],
        out_specs=pl.BlockSpec((TB * Hf, Wf, cout), lambda b: (b, 0, 0)),
        out_shape=jax.ShapeDtypeStruct((N * Hf, Wf, cout), _F32),
        compiler_params=_mosaic_params(sem, est4),
    )(y3, scale3, shift3)

    return jnp.transpose(out3.reshape(N, Hf, Wf, cout), (0, 3, 1, 2))


# ----------------------------------------------------------------------------
# Pure-JAX f32 reference (mirrors the PyTorch forward) for a sanity check.
# ----------------------------------------------------------------------------
def _reference_forward(x, params):
    x = x.astype(jnp.float32)
    C = x.shape[1]
    w1 = params["conv1_w"]
    w1_eff = jnp.mean(w1, axis=1, keepdims=True) if C != 3 else w1

    def conv(y, w, stride):
        return lax.conv_general_dilated(
            y, w, window_strides=(stride, stride), padding=((1, 1), (1, 1)),
            dimension_numbers=("NCHW", "OIHW", "NCHW"))

    def bn_relu(y, g, b):
        mu = jnp.mean(y, axis=(0, 2, 3), keepdims=True)
        var = jnp.mean((y - mu) ** 2, axis=(0, 2, 3), keepdims=True)
        yn = (y - mu) / jnp.sqrt(var + _BN_EPS)
        return jnp.maximum(yn * g.reshape(1, -1, 1, 1) + b.reshape(1, -1, 1, 1), 0.0)

    y = bn_relu(conv(x, w1_eff, 2), params["bn1_g"], params["bn1_b"])
    y = bn_relu(conv(y, params["conv2_w"], 1), params["bn2_g"], params["bn2_b"])
    y = bn_relu(conv(y, params["conv3_w"], 1), params["bn3_g"], params["bn3_b"])
    n, c, h, w = y.shape
    return y.reshape(n, c, h // 2, 2, w // 2, 2).mean(axis=(3, 5))


if __name__ == "__main__":
    key = jax.random.PRNGKey(0)
    k_param, k_x = jax.random.split(key)

    # cfg.in_channels = 3 (conv1 weight has 3 input channels), width = 64.
    params = init_params(k_param, in_channels=3, width=64)

    # Single-channel input exercises the `x.shape[1] != 3` mean-weight branch;
    # batch of 2 with images_per_tile=1 exercises the row-tiled grid (2 steps)
    # and the two-phase (per-tile partial + glue reduce) BatchNorm path.
    x = jax.random.normal(k_x, (2, 1, 16, 16), dtype=jnp.float32)

    fwd = jax.jit(resnet_pre_encoder_forward)
    out = jax.block_until_ready(fwd(x, params))
    assert out.shape == (2, 64, 4, 4), out.shape

    ref = jax.block_until_ready(_reference_forward(x, params))
    np.testing.assert_allclose(np.asarray(out), np.asarray(ref), rtol=5e-2, atol=5e-2)

    print("KERNEL_OK")
</pallas_src>

<mosaic_0001>
module attributes {stable_mosaic.version = 11 : i64} {
  func.func @_conv1_kernel(%arg0: i32, %arg1: memref<64x9xbf16, #tpu.memory_space<vmem>>, %arg2: memref<9x32xbf16, #tpu.memory_space<vmem>>, %arg3: memref<64x32xbf16, #tpu.memory_space<vmem>>, %arg4: memref<1x2x32xf32, #tpu.memory_space<vmem>>) attributes {dimension_semantics = [#tpu.dimension_semantics<parallel>], iteration_bounds = array<i64: 2>, scalar_prefetch = 0 : i64, scratch_operands = 0 : i64, tpu.core_type = #tpu.core_type<tc>, window_params = [{transform_indices = @transform_0, window_bounds = array<i64: 64, 9>}, {pipeline_mode = #tpu.pipeline_mode<synchronous>, transform_indices = @transform_1, window_bounds = array<i64: 9, 32>}, {transform_indices = @transform_2, window_bounds = array<i64: 64, 32>}, {transform_indices = @transform_3, window_bounds = array<i64: 1, 2, 32>}]} {
    %c0 = arith.constant 0 : index
    %c0_0 = arith.constant 0 : index
    %0 = vector.load %arg1[%c0, %c0_0] : memref<64x9xbf16, #tpu.memory_space<vmem>>, vector<64x9xbf16>
    %c0_1 = arith.constant 0 : index
    %c0_2 = arith.constant 0 : index
    %1 = vector.load %arg2[%c0_1, %c0_2] : memref<9x32xbf16, #tpu.memory_space<vmem>>, vector<9x32xbf16>
    %cst = arith.constant dense<0.000000e+00> : vector<64x32xf32>
    %2 = tpu.matmul %0, %1, %cst {dimension_numbers = #tpu.dot_dimension_numbers<[1], [0], [0], [1], [0, 0, 1, 1], [], []>} : vector<64x9xbf16>, vector<9x32xbf16>, vector<64x32xf32> -> vector<64x32xf32>
    %3 = arith.truncf %2 : vector<64x32xf32> to vector<64x32xbf16>
    %c0_3 = arith.constant 0 : index
    %c0_4 = arith.constant 0 : index
    %4 = vector.load %arg3[%c0_3, %c0_4] : memref<64x32xbf16, #tpu.memory_space<vmem>>, vector<64x32xbf16>
    tpu.vector_store %arg3[%c0_3, %c0_4], %3 {strides = array<i32>} : memref<64x32xbf16, #tpu.memory_space<vmem>>, vector<64x32xbf16>,
    %cst_5 = arith.constant dense<0.000000e+00> : vector<32xf32>
    %5 = vector.multi_reduction <add>, %2, %cst_5 [0] : vector<64x32xf32> to vector<32xf32>
    %6 = vector.shape_cast %5 : vector<32xf32> to vector<1x32xf32>
    %c0_6 = arith.constant 0 : index
    %c0_7 = arith.constant 0 : index
    %c0_8 = arith.constant 0 : index
    %7 = vector.load %arg4[%c0_6, %c0_7, %c0_8] : memref<1x2x32xf32, #tpu.memory_space<vmem>>, vector<1x1x32xf32>
    %8 = vector.shape_cast %7 : vector<1x1x32xf32> to vector<1x32xf32>
    %9 = vector.shape_cast %6 : vector<1x32xf32> to vector<1x1x32xf32>
    tpu.vector_store %arg4[%c0_6, %c0_7, %c0_8], %9 {strides = array<i32>} : memref<1x2x32xf32, #tpu.memory_space<vmem>>, vector<1x1x32xf32>,
    %10 = arith.mulf %2, %2 : vector<64x32xf32>
    %cst_9 = arith.constant dense<0.000000e+00> : vector<32xf32>
    %11 = vector.multi_reduction <add>, %10, %cst_9 [0] : vector<64x32xf32> to vector<32xf32>
    %12 = vector.shape_cast %11 : vector<32xf32> to vector<1x32xf32>
    %c0_10 = arith.constant 0 : index
    %c1 = arith.constant 1 : index
    %c0_11 = arith.constant 0 : index
    %13 = vector.load %arg4[%c0_10, %c1, %c0_11] : memref<1x2x32xf32, #tpu.memory_space<vmem>>, vector<1x1x32xf32>
    %14 = vector.shape_cast %13 : vector<1x1x32xf32> to vector<1x32xf32>
    %15 = vector.shape_cast %12 : vector<1x32xf32> to vector<1x1x32xf32>
    tpu.vector_store %arg4[%c0_10, %c1, %c0_11], %15 {strides = array<i32>} : memref<1x2x32xf32, #tpu.memory_space<vmem>>, vector<1x1x32xf32>,
    return
  }
  func.func @transform_0(%arg0: i32) -> (i32, i32) {
    %c0_i32 = arith.constant 0 : i32
    %c0_i32_0 = arith.constant 0 : i32
    return %arg0, %c0_i32 : i32, i32
  }
  func.func @transform_1(%arg0: i32) -> (i32, i32) {
    %c0_i32 = arith.constant 0 : i32
    %c0_i32_0 = arith.constant 0 : i32
    %c0_i32_1 = arith.constant 0 : i32
    return %c0_i32, %c0_i32_0 : i32, i32
  }
  func.func @transform_2(%arg0: i32) -> (i32, i32) {
    %c0_i32 = arith.constant 0 : i32
    %c0_i32_0 = arith.constant 0 : i32
    return %arg0, %c0_i32 : i32, i32
  }
  func.func @transform_3(%arg0: i32) -> (i32, i32, i32) {
    %c0_i32 = arith.constant 0 : i32
    %c0_i32_0 = arith.constant 0 : i32
    %c0_i32_1 = arith.constant 0 : i32
    return %arg0, %c0_i32, %c0_i32_0 : i32, i32, i32
  }
}

module attributes {stable_mosaic.version = 11 : i64} {
  func.func @_bn_relu_conv3x3_kernel(%arg0: i32, %arg1: memref<64x32xbf16, #tpu.memory_space<vmem>>, %arg2: memref<1x32xf32, #tpu.memory_space<vmem>>, %arg3: memref<1x32xf32, #tpu.memory_space<vmem>>, %arg4: memref<9x32x32xbf16, #tpu.memory_space<vmem>>, %arg5: memref<64x32xbf16, #tpu.memory_space<vmem>>, %arg6: memref<1x2x32xf32, #tpu.memory_space<vmem>>, %arg7: memref<96x32xf32, #tpu.memory_space<vmem>>) attributes {dimension_semantics = [#tpu.dimension_semantics<parallel>], iteration_bounds = array<i64: 2>, scalar_prefetch = 0 : i64, scratch_operands = 1 : i64, tpu.core_type = #tpu.core_type<tc>, window_params = [{transform_indices = @transform_0, window_bounds = array<i64: 64, 32>}, {pipeline_mode = #tpu.pipeline_mode<synchronous>, transform_indices = @transform_1, window_bounds = array<i64: 1, 32>}, {pipeline_mode = #tpu.pipeline_mode<synchronous>, transform_indices = @transform_2, window_bounds = array<i64: 1, 32>}, {pipeline_mode = #tpu.pipeline_mode<synchronous>, transform_indices = @transform_3, window_bounds = array<i64: 9, 32, 32>}, {transform_indices = @transform_4, window_bounds = array<i64: 64, 32>}, {transform_indices = @transform_5, window_bounds = array<i64: 1, 2, 32>}]} {
    %cst = arith.constant 0.000000e+00 : f32
    %0 = vector.broadcast %cst : f32 to vector<16x32xf32>
    %c0 = arith.constant 0 : index
    %c0_0 = arith.constant 0 : index
    %1 = vector.load %arg7[%c0, %c0_0] : memref<96x32xf32, #tpu.memory_space<vmem>>, vector<16x32xf32>
    tpu.vector_store %arg7[%c0, %c0_0], %0 {strides = array<i32>} : memref<96x32xf32, #tpu.memory_space<vmem>>, vector<16x32xf32>,
    %c80 = arith.constant 80 : index
    %c0_1 = arith.constant 0 : index
    %2 = vector.load %arg7[%c80, %c0_1] : memref<96x32xf32, #tpu.memory_space<vmem>>, vector<16x32xf32>
    tpu.vector_store %arg7[%c80, %c0_1], %0 {strides = array<i32>} : memref<96x32xf32, #tpu.memory_space<vmem>>, vector<16x32xf32>,
    %c0_2 = arith.constant 0 : index
    %c0_3 = arith.constant 0 : index
    %3 = vector.load %arg1[%c0_2, %c0_3] : memref<64x32xbf16, #tpu.memory_space<vmem>>, vector<64x32xbf16>
    %4 = arith.extf %3 : vector<64x32xbf16> to vector<64x32xf32>
    %c0_4 = arith.constant 0 : index
    %c0_5 = arith.constant 0 : index
    %5 = vector.load %arg2[%c0_4, %c0_5] : memref<1x32xf32, #tpu.memory_space<vmem>>, vector<1x32xf32>
    %6 = vector.broadcast %5 : vector<1x32xf32> to vector<64x32xf32>
    %7 = arith.mulf %4, %6 : vector<64x32xf32>
    %c0_6 = arith.constant 0 : index
    %c0_7 = arith.constant 0 : index
    %8 = vector.load %arg3[%c0_6, %c0_7] : memref<1x32xf32, #tpu.memory_space<vmem>>, vector<1x32xf32>
    %9 = vector.broadcast %8 : vector<1x32xf32> to vector<64x32xf32>
    %10 = arith.addf %7, %9 : vector<64x32xf32>
    %cst_8 = arith.constant 0.000000e+00 : f32
    %11 = vector.broadcast %cst_8 : f32 to vector<64x32xf32>
    %12 = arith.maximumf %10, %11 : vector<64x32xf32>
    %c16 = arith.constant 16 : index
    %c0_9 = arith.constant 0 : index
    %13 = vector.load %arg7[%c16, %c0_9] : memref<96x32xf32, #tpu.memory_space<vmem>>, vector<64x32xf32>
    tpu.vector_store %arg7[%c16, %c0_9], %12 {strides = array<i32>} : memref<96x32xf32, #tpu.memory_space<vmem>>, vector<64x32xf32>,
    %14 = tpu.iota {dimensions = array<i32: 0>} : vector<64x1xi32>
    %c8_i32 = arith.constant 8 : i32
    %c0_i32 = arith.constant 0 : i32
    %15 = arith.cmpi eq, %c8_i32, %c0_i32 : i32
    %c1_i32 = arith.constant 1 : i32
    %16 = arith.select %15, %c1_i32, %c8_i32 : i32
    %17 = vector.broadcast %16 : i32 to vector<64x1xi32>
    %18 = arith.remsi %14, %17 : vector<64x1xi32>
    %c0_i32_10 = arith.constant 0 : i32
    %19 = vector.broadcast %c0_i32_10 : i32 to vector<64x1xi32>
    %20 = arith.cmpi ne, %18, %19 : vector<64x1xi32>
    %c0_i32_11 = arith.constant 0 : i32
    %21 = vector.broadcast %c0_i32_11 : i32 to vector<64x1xi32>
    %22 = arith.cmpi slt, %18, %21 : vector<64x1xi32>
    %c0_i32_12 = arith.constant 0 : i32
    %23 = arith.cmpi slt, %16, %c0_i32_12 : i32
    %24 = vector.broadcast %23 : i1 to vector<64x1xi1>
    %25 = vector.broadcast %24 : vector<64x1xi1> to vector<64x1xi1>
    %26 = arith.xori %22, %25 : vector<64x1xi1>
    %27 = arith.andi %26, %20 : vector<64x1xi1>
    %28 = vector.broadcast %16 : i32 to vector<64x1xi32>
    %29 = arith.addi %18, %28 : vector<64x1xi32>
    %30 = arith.select %27, %29, %18 : vector<64x1xi1>, vector<64x1xi32>
    %c64_i32 = arith.constant 64 : i32
    %c0_i32_13 = arith.constant 0 : i32
    %31 = arith.cmpi eq, %c64_i32, %c0_i32_13 : i32
    %c1_i32_14 = arith.constant 1 : i32
    %32 = arith.select %31, %c1_i32_14, %c64_i32 : i32
    %33 = vector.broadcast %32 : i32 to vector<64x1xi32>
    %34 = arith.remsi %14, %33 : vector<64x1xi32>
    %c0_i32_15 = arith.constant 0 : i32
    %35 = vector.broadcast %c0_i32_15 : i32 to vector<64x1xi32>
    %36 = arith.cmpi ne, %34, %35 : vector<64x1xi32>
    %c0_i32_16 = arith.constant 0 : i32
    %37 = vector.broadcast %c0_i32_16 : i32 to vector<64x1xi32>
    %38 = arith.cmpi slt, %34, %37 : vector<64x1xi32>
    %c0_i32_17 = arith.constant 0 : i32
    %39 = arith.cmpi slt, %32, %c0_i32_17 : i32
    %40 = vector.broadcast %39 : i1 to vector<64x1xi1>
    %41 = vector.broadcast %40 : vector<64x1xi1> to vector<64x1xi1>
    %42 = arith.xori %38, %41 : vector<64x1xi1>
    %43 = arith.andi %42, %36 : vector<64x1xi1>
    %44 = vector.broadcast %32 : i32 to vector<64x1xi32>
    %45 = arith.addi %34, %44 : vector<64x1xi32>
    %46 = arith.select %43, %45, %34 : vector<64x1xi1>, vector<64x1xi32>
    %c7 = arith.constant 7 : index
    %c0_18 = arith.constant 0 : index
    %47 = vector.load %arg7[%c7, %c0_18] : memref<96x32xf32, #tpu.memory_space<vmem>>, vector<64x32xf32>
    %c8_i32_19 = arith.constant 8 : i32
    %48 = vector.broadcast %c8_i32_19 : i32 to vector<64x1xi32>
    %49 = arith.cmpi sge, %46, %48 : vector<64x1xi32>
    %c1_i32_20 = arith.constant 1 : i32
    %50 = vector.broadcast %c1_i32_20 : i32 to vector<64x1xi32>
    %51 = arith.cmpi sge, %30, %50 : vector<64x1xi32>
    %52 = arith.andi %49, %51 : vector<64x1xi1>
    %cst_21 = arith.constant 0.000000e+00 : f32
    %53 = vector.shape_cast %52 : vector<64x1xi1> to vector<64x1xi1>
    %54 = vector.broadcast %53 : vector<64x1xi1> to vector<64x32xi1>
    %55 = vector.broadcast %cst_21 : f32 to vector<64x32xf32>
    %56 = arith.select %54, %47, %55 : vector<64x32xi1>, vector<64x32xf32>
    %57 = arith.truncf %56 : vector<64x32xf32> to vector<64x32xbf16>
    %c0_22 = arith.constant 0 : index
    %c0_23 = arith.constant 0 : index
    %c0_24 = arith.constant 0 : index
    %58 = vector.load %arg4[%c0_22, %c0_23, %c0_24] : memref<9x32x32xbf16, #tpu.memory_space<vmem>>, vector<1x32x32xbf16>
    %59 = vector.shape_cast %58 : vector<1x32x32xbf16> to vector<32x32xbf16>
    %cst_25 = arith.constant dense<0.000000e+00> : vector<64x32xf32>
    %60 = tpu.matmul %57, %59, %cst_25 {dimension_numbers = #tpu.dot_dimension_numbers<[1], [0], [0], [1], [0, 0, 1, 1], [], []>} : vector<64x32xbf16>, vector<32x32xbf16>, vector<64x32xf32> -> vector<64x32xf32>
    %c8 = arith.constant 8 : index
    %c0_26 = arith.constant 0 : index
    %61 = vector.load %arg7[%c8, %c0_26] : memref<96x32xf32, #tpu.memory_space<vmem>>, vector<64x32xf32>
    %c8_i32_27 = arith.constant 8 : i32
    %62 = vector.broadcast %c8_i32_27 : i32 to vector<64x1xi32>
    %63 = arith.cmpi sge, %46, %62 : vector<64x1xi32>
    %cst_28 = arith.constant 0.000000e+00 : f32
    %64 = vector.shape_cast %63 : vector<64x1xi1> to vector<64x1xi1>
    %65 = vector.broadcast %64 : vector<64x1xi1> to vector<64x32xi1>
    %66 = vector.broadcast %cst_28 : f32 to vector<64x32xf32>
    %67 = arith.select %65, %61, %66 : vector<64x32xi1>, vector<64x32xf32>
    %68 = arith.truncf %67 : vector<64x32xf32> to vector<64x32xbf16>
    %c1 = arith.constant 1 : index
    %c0_29 = arith.constant 0 : index
    %c0_30 = arith.constant 0 : index
    %69 = vector.load %arg4[%c1, %c0_29, %c0_30] : memref<9x32x32xbf16, #tpu.memory_space<vmem>>, vector<1x32x32xbf16>
    %70 = vector.shape_cast %69 : vector<1x32x32xbf16> to vector<32x32xbf16>
    %cst_31 = arith.constant dense<0.000000e+00> : vector<64x32xf32>
    %71 = tpu.matmul %68, %70, %cst_31 {dimension_numbers = #tpu.dot_dimension_numbers<[1], [0], [0], [1], [0, 0, 1, 1], [], []>} : vector<64x32xbf16>, vector<32x32xbf16>, vector<64x32xf32> -> vector<64x32xf32>
    %72 = arith.addf %60, %71 : vector<64x32xf32>
    %c9 = arith.constant 9 : index
    %c0_32 = arith.constant 0 : index
    %73 = vector.load %arg7[%c9, %c0_32] : memref<96x32xf32, #tpu.memory_space<vmem>>, vector<64x32xf32>
    %c8_i32_33 = arith.constant 8 : i32
    %74 = vector.broadcast %c8_i32_33 : i32 to vector<64x1xi32>
    %75 = arith.cmpi sge, %46, %74 : vector<64x1xi32>
    %c6_i32 = arith.constant 6 : i32
    %76 = vector.broadcast %c6_i32 : i32 to vector<64x1xi32>
    %77 = arith.cmpi sle, %30, %76 : vector<64x1xi32>
    %78 = arith.andi %75, %77 : vector<64x1xi1>
    %cst_34 = arith.constant 0.000000e+00 : f32
    %79 = vector.shape_cast %78 : vector<64x1xi1> to vector<64x1xi1>
    %80 = vector.broadcast %79 : vector<64x1xi1> to vector<64x32xi1>
    %81 = vector.broadcast %cst_34 : f32 to vector<64x32xf32>
    %82 = arith.select %80, %73, %81 : vector<64x32xi1>, vector<64x32xf32>
    %83 = arith.truncf %82 : vector<64x32xf32> to vector<64x32xbf16>
    %c2 = arith.constant 2 : index
    %c0_35 = arith.constant 0 : index
    %c0_36 = arith.constant 0 : index
    %84 = vector.load %arg4[%c2, %c0_35, %c0_36] : memref<9x32x32xbf16, #tpu.memory_space<vmem>>, vector<1x32x32xbf16>
    %85 = vector.shape_cast %84 : vector<1x32x32xbf16> to vector<32x32xbf16>
    %cst_37 = arith.constant dense<0.000000e+00> : vector<64x32xf32>
    %86 = tpu.matmul %83, %85, %cst_37 {dimension_numbers = #tpu.dot_dimension_numbers<[1], [0], [0], [1], [0, 0, 1, 1], [], []>} : vector<64x32xbf16>, vector<32x32xbf16>, vector<64x32xf32> -> vector<64x32xf32>
    %87 = arith.addf %72, %86 : vector<64x32xf32>
    %c15 = arith.constant 15 : index
    %c0_38 = arith.constant 0 : index
    %88 = vector.load %arg7[%c15, %c0_38] : memref<96x32xf32, #tpu.memory_space<vmem>>, vector<64x32xf32>
    %c1_i32_39 = arith.constant 1 : i32
    %89 = vector.broadcast %c1_i32_39 : i32 to vector<64x1xi32>
    %90 = arith.cmpi sge, %30, %89 : vector<64x1xi32>
    %cst_40 = arith.constant 0.000000e+00 : f32
    %91 = vector.shape_cast %90 : vector<64x1xi1> to vector<64x1xi1>
    %92 = vector.broadcast %91 : vector<64x1xi1> to vector<64x32xi1>
    %93 = vector.broadcast %cst_40 : f32 to vector<64x32xf32>
    %94 = arith.select %92, %88, %93 : vector<64x32xi1>, vector<64x32xf32>
    %95 = arith.truncf %94 : vector<64x32xf32> to vector<64x32xbf16>
    %c3 = arith.constant 3 : index
    %c0_41 = arith.constant 0 : index
    %c0_42 = arith.constant 0 : index
    %96 = vector.load %arg4[%c3, %c0_41, %c0_42] : memref<9x32x32xbf16, #tpu.memory_space<vmem>>, vector<1x32x32xbf16>
    %97 = vector.shape_cast %96 : vector<1x32x32xbf16> to vector<32x32xbf16>
    %cst_43 = arith.constant dense<0.000000e+00> : vector<64x32xf32>
    %98 = tpu.matmul %95, %97, %cst_43 {dimension_numbers = #tpu.dot_dimension_numbers<[1], [0], [0], [1], [0, 0, 1, 1], [], []>} : vector<64x32xbf16>, vector<32x32xbf16>, vector<64x32xf32> -> vector<64x32xf32>
    %99 = arith.addf %87, %98 : vector<64x32xf32>
    %c16_44 = arith.constant 16 : index
    %c0_45 = arith.constant 0 : index
    %100 = vector.load %arg7[%c16_44, %c0_45] : memref<96x32xf32, #tpu.memory_space<vmem>>, vector<64x32xf32>
    %101 = arith.truncf %100 : vector<64x32xf32> to vector<64x32xbf16>
    %c4 = arith.constant 4 : index
    %c0_46 = arith.constant 0 : index
    %c0_47 = arith.constant 0 : index
    %102 = vector.load %arg4[%c4, %c0_46, %c0_47] : memref<9x32x32xbf16, #tpu.memory_space<vmem>>, vector<1x32x32xbf16>
    %103 = vector.shape_cast %102 : vector<1x32x32xbf16> to vector<32x32xbf16>
    %cst_48 = arith.constant dense<0.000000e+00> : vector<64x32xf32>
    %104 = tpu.matmul %101, %103, %cst_48 {dimension_numbers = #tpu.dot_dimension_numbers<[1], [0], [0], [1], [0, 0, 1, 1], [], []>} : vector<64x32xbf16>, vector<32x32xbf16>, vector<64x32xf32> -> vector<64x32xf32>
    %105 = arith.addf %99, %104 : vector<64x32xf32>
    %c17 = arith.constant 17 : index
    %c0_49 = arith.constant 0 : index
    %106 = vector.load %arg7[%c17, %c0_49] : memref<96x32xf32, #tpu.memory_space<vmem>>, vector<64x32xf32>
    %c6_i32_50 = arith.constant 6 : i32
    %107 = vector.broadcast %c6_i32_50 : i32 to vector<64x1xi32>
    %108 = arith.cmpi sle, %30, %107 : vector<64x1xi32>
    %cst_51 = arith.constant 0.000000e+00 : f32
    %109 = vector.shape_cast %108 : vector<64x1xi1> to vector<64x1xi1>
    %110 = vector.broadcast %109 : vector<64x1xi1> to vector<64x32xi1>
    %111 = vector.broadcast %cst_51 : f32 to vector<64x32xf32>
    %112 = arith.select %110, %106, %111 : vector<64x32xi1>, vector<64x32xf32>
    %113 = arith.truncf %112 : vector<64x32xf32> to vector<64x32xbf16>
    %c5 = arith.constant 5 : index
    %c0_52 = arith.constant 0 : index
    %c0_53 = arith.constant 0 : index
    %114 = vector.load %arg4[%c5, %c0_52, %c0_53] : memref<9x32x32xbf16, #tpu.memory_space<vmem>>, vector<1x32x32xbf16>
    %115 = vector.shape_cast %114 : vector<1x32x32xbf16> to vector<32x32xbf16>
    %cst_54 = arith.constant dense<0.000000e+00> : vector<64x32xf32>
    %116 = tpu.matmul %113, %115, %cst_54 {dimension_numbers = #tpu.dot_dimension_numbers<[1], [0], [0], [1], [0, 0, 1, 1], [], []>} : vector<64x32xbf16>, vector<32x32xbf16>, vector<64x32xf32> -> vector<64x32xf32>
    %117 = arith.addf %105, %116 : vector<64x32xf32>
    %c23 = arith.constant 23 : index
    %c0_55 = arith.constant 0 : index
    %118 = vector.load %arg7[%c23, %c0_55] : memref<96x32xf32, #tpu.memory_space<vmem>>, vector<64x32xf32>
    %c56_i32 = arith.constant 56 : i32
    %119 = vector.broadcast %c56_i32 : i32 to vector<64x1xi32>
    %120 = arith.cmpi slt, %46, %119 : vector<64x1xi32>
    %c1_i32_56 = arith.constant 1 : i32
    %121 = vector.broadcast %c1_i32_56 : i32 to vector<64x1xi32>
    %122 = arith.cmpi sge, %30, %121 : vector<64x1xi32>
    %123 = arith.andi %120, %122 : vector<64x1xi1>
    %cst_57 = arith.constant 0.000000e+00 : f32
    %124 = vector.shape_cast %123 : vector<64x1xi1> to vector<64x1xi1>
    %125 = vector.broadcast %124 : vector<64x1xi1> to vector<64x32xi1>
    %126 = vector.broadcast %cst_57 : f32 to vector<64x32xf32>
    %127 = arith.select %125, %118, %126 : vector<64x32xi1>, vector<64x32xf32>
    %128 = arith.truncf %127 : vector<64x32xf32> to vector<64x32xbf16>
    %c6 = arith.constant 6 : index
    %c0_58 = arith.constant 0 : index
    %c0_59 = arith.constant 0 : index
    %129 = vector.load %arg4[%c6, %c0_58, %c0_59] : memref<9x32x32xbf16, #tpu.memory_space<vmem>>, vector<1x32x32xbf16>
    %130 = vector.shape_cast %129 : vector<1x32x32xbf16> to vector<32x32xbf16>
    %cst_60 = arith.constant dense<0.000000e+00> : vector<64x32xf32>
    %131 = tpu.matmul %128, %130, %cst_60 {dimension_numbers = #tpu.dot_dimension_numbers<[1], [0], [0], [1], [0, 0, 1, 1], [], []>} : vector<64x32xbf16>, vector<32x32xbf16>, vector<64x32xf32> -> vector<64x32xf32>
    %132 = arith.addf %117, %131 : vector<64x32xf32>
    %c24 = arith.constant 24 : index
    %c0_61 = arith.constant 0 : index
    %133 = vector.load %arg7[%c24, %c0_61] : memref<96x32xf32, #tpu.memory_space<vmem>>, vector<64x32xf32>
    %c56_i32_62 = arith.constant 56 : i32
    %134 = vector.broadcast %c56_i32_62 : i32 to vector<64x1xi32>
    %135 = arith.cmpi slt, %46, %134 : vector<64x1xi32>
    %cst_63 = arith.constant 0.000000e+00 : f32
    %136 = vector.shape_cast %135 : vector<64x1xi1> to vector<64x1xi1>
    %137 = vector.broadcast %136 : vector<64x1xi1> to vector<64x32xi1>
    %138 = vector.broadcast %cst_63 : f32 to vector<64x32xf32>
    %139 = arith.select %137, %133, %138 : vector<64x32xi1>, vector<64x32xf32>
    %140 = arith.truncf %139 : vector<64x32xf32> to vector<64x32xbf16>
    %c7_64 = arith.constant 7 : index
    %c0_65 = arith.constant 0 : index
    %c0_66 = arith.constant 0 : index
    %141 = vector.load %arg4[%c7_64, %c0_65, %c0_66] : memref<9x32x32xbf16, #tpu.memory_space<vmem>>, vector<1x32x32xbf16>
    %142 = vector.shape_cast %141 : vector<1x32x32xbf16> to vector<32x32xbf16>
    %cst_67 = arith.constant dense<0.000000e+00> : vector<64x32xf32>
    %143 = tpu.matmul %140, %142, %cst_67 {dimension_numbers = #tpu.dot_dimension_numbers<[1], [0], [0], [1], [0, 0, 1, 1], [], []>} : vector<64x32xbf16>, vector<32x32xbf16>, vector<64x32xf32> -> vector<64x32xf32>
    %144 = arith.addf %132, %143 : vector<64x32xf32>
    %c25 = arith.constant 25 : index
    %c0_68 = arith.constant 0 : index
    %145 = vector.load %arg7[%c25, %c0_68] : memref<96x32xf32, #tpu.memory_space<vmem>>, vector<64x32xf32>
    %c56_i32_69 = arith.constant 56 : i32
    %146 = vector.broadcast %c56_i32_69 : i32 to vector<64x1xi32>
    %147 = arith.cmpi slt, %46, %146 : vector<64x1xi32>
    %c6_i32_70 = arith.constant 6 : i32
    %148 = vector.broadcast %c6_i32_70 : i32 to vector<64x1xi32>
    %149 = arith.cmpi sle, %30, %148 : vector<64x1xi32>
    %150 = arith.andi %147, %149 : vector<64x1xi1>
    %cst_71 = arith.constant 0.000000e+00 : f32
    %151 = vector.shape_cast %150 : vector<64x1xi1> to vector<64x1xi1>
    %152 = vector.broadcast %151 : vector<64x1xi1> to vector<64x32xi1>
    %153 = vector.broadcast %cst_71 : f32 to vector<64x32xf32>
    %154 = arith.select %152, %145, %153 : vector<64x32xi1>, vector<64x32xf32>
    %155 = arith.truncf %154 : vector<64x32xf32> to vector<64x32xbf16>
    %c8_72 = arith.constant 8 : index
    %c0_73 = arith.constant 0 : index
    %c0_74 = arith.constant 0 : index
    %156 = vector.load %arg4[%c8_72, %c0_73, %c0_74] : memref<9x32x32xbf16, #tpu.memory_space<vmem>>, vector<1x32x32xbf16>
    %157 = vector.shape_cast %156 : vector<1x32x32xbf16> to vector<32x32xbf16>
    %cst_75 = arith.constant dense<0.000000e+00> : vector<64x32xf32>
    %158 = tpu.matmul %155, %157, %cst_75 {dimension_numbers = #tpu.dot_dimension_numbers<[1], [0], [0], [1], [0, 0, 1, 1], [], []>} : vector<64x32xbf16>, vector<32x32xbf16>, vector<64x32xf32> -> vector<64x32xf32>
    %159 = arith.addf %144, %158 : vector<64x32xf32>
    %160 = arith.truncf %159 : vector<64x32xf32> to vector<64x32xbf16>
    %c0_76 = arith.constant 0 : index
    %c0_77 = arith.constant 0 : index
    %161 = vector.load %arg5[%c0_76, %c0_77] : memref<64x32xbf16, #tpu.memory_space<vmem>>, vector<64x32xbf16>
    tpu.vector_store %arg5[%c0_76, %c0_77], %160 {strides = array<i32>} : memref<64x32xbf16, #tpu.memory_space<vmem>>, vector<64x32xbf16>,
    %cst_78 = arith.constant dense<0.000000e+00> : vector<32xf32>
    %162 = vector.multi_reduction <add>, %159, %cst_78 [0] : vector<64x32xf32> to vector<32xf32>
    %163 = vector.shape_cast %162 : vector<32xf32> to vector<1x32xf32>
    %c0_79 = arith.constant 0 : index
    %c0_80 = arith.constant 0 : index
    %c0_81 = arith.constant 0 : index
    %164 = vector.load %arg6[%c0_79, %c0_80, %c0_81] : memref<1x2x32xf32, #tpu.memory_space<vmem>>, vector<1x1x32xf32>
    %165 = vector.shape_cast %164 : vector<1x1x32xf32> to vector<1x32xf32>
    %166 = vector.shape_cast %163 : vector<1x32xf32> to vector<1x1x32xf32>
    tpu.vector_store %arg6[%c0_79, %c0_80, %c0_81], %166 {strides = array<i32>} : memref<1x2x32xf32, #tpu.memory_space<vmem>>, vector<1x1x32xf32>,
    %167 = arith.mulf %159, %159 : vector<64x32xf32>
    %cst_82 = arith.constant dense<0.000000e+00> : vector<32xf32>
    %168 = vector.multi_reduction <add>, %167, %cst_82 [0] : vector<64x32xf32> to vector<32xf32>
    %169 = vector.shape_cast %168 : vector<32xf32> to vector<1x32xf32>
    %c0_83 = arith.constant 0 : index
    %c1_84 = arith.constant 1 : index
    %c0_85 = arith.constant 0 : index
    %170 = vector.load %arg6[%c0_83, %c1_84, %c0_85] : memref<1x2x32xf32, #tpu.memory_space<vmem>>, vector<1x1x32xf32>
    %171 = vector.shape_cast %170 : vector<1x1x32xf32> to vector<1x32xf32>
    %172 = vector.shape_cast %169 : vector<1x32xf32> to vector<1x1x32xf32>
    tpu.vector_store %arg6[%c0_83, %c1_84, %c0_85], %172 {strides = array<i32>} : memref<1x2x32xf32, #tpu.memory_space<vmem>>, vector<1x1x32xf32>,
    return
  }
  func.func @transform_0(%arg0: i32) -> (i32, i32) {
    %c0_i32 = arith.constant 0 : i32
    %c0_i32_0 = arith.constant 0 : i32
    return %arg0, %c0_i32 : i32, i32
  }
  func.func @transform_1(%arg0: i32) -> (i32, i32) {
    %c0_i32 = arith.constant 0 : i32
    %c0_i32_0 = arith.constant 0 : i32
    %c0_i32_1 = arith.constant 0 : i32
    return %c0_i32, %c0_i32_0 : i32, i32
  }
  func.func @transform_2(%arg0: i32) -> (i32, i32) {
    %c0_i32 = arith.constant 0 : i32
    %c0_i32_0 = arith.constant 0 : i32
    %c0_i32_1 = arith.constant 0 : i32
    return %c0_i32, %c0_i32_0 : i32, i32
  }
  func.func @transform_3(%arg0: i32) -> (i32, i32, i32) {
    %c0_i32 = arith.constant 0 : i32
    %c0_i32_0 = arith.constant 0 : i32
    %c0_i32_1 = arith.constant 0 : i32
    %c0_i32_2 = arith.constant 0 : i32
    return %c0_i32, %c0_i32_0, %c0_i32_1 : i32, i32, i32
  }
  func.func @transform_4(%arg0: i32) -> (i32, i32) {
    %c0_i32 = arith.constant 0 : i32
    %c0_i32_0 = arith.constant 0 : i32
    return %arg0, %c0_i32 : i32, i32
  }
  func.func @transform_5(%arg0: i32) -> (i32, i32, i32) {
    %c0_i32 = arith.constant 0 : i32
    %c0_i32_0 = arith.constant 0 : i32
    %c0_i32_1 = arith.constant 0 : i32
    return %arg0, %c0_i32, %c0_i32_0 : i32, i32, i32
  }
}

module attributes {stable_mosaic.version = 11 : i64} {
  func.func @_bn_relu_conv3x3_kernel(%arg0: i32, %arg1: memref<64x32xbf16, #tpu.memory_space<vmem>>, %arg2: memref<1x32xf32, #tpu.memory_space<vmem>>, %arg3: memref<1x32xf32, #tpu.memory_space<vmem>>, %arg4: memref<9x32x64xbf16, #tpu.memory_space<vmem>>, %arg5: memref<64x64xf32, #tpu.memory_space<vmem>>, %arg6: memref<1x2x64xf32, #tpu.memory_space<vmem>>, %arg7: memref<96x32xf32, #tpu.memory_space<vmem>>) attributes {dimension_semantics = [#tpu.dimension_semantics<parallel>], iteration_bounds = array<i64: 2>, scalar_prefetch = 0 : i64, scratch_operands = 1 : i64, tpu.core_type = #tpu.core_type<tc>, window_params = [{transform_indices = @transform_0, window_bounds = array<i64: 64, 32>}, {pipeline_mode = #tpu.pipeline_mode<synchronous>, transform_indices = @transform_1, window_bounds = array<i64: 1, 32>}, {pipeline_mode = #tpu.pipeline_mode<synchronous>, transform_indices = @transform_2, window_bounds = array<i64: 1, 32>}, {pipeline_mode = #tpu.pipeline_mode<synchronous>, transform_indices = @transform_3, window_bounds = array<i64: 9, 32, 64>}, {transform_indices = @transform_4, window_bounds = array<i64: 64, 64>}, {transform_indices = @transform_5, window_bounds = array<i64: 1, 2, 64>}]} {
    %cst = arith.constant 0.000000e+00 : f32
    %0 = vector.broadcast %cst : f32 to vector<16x32xf32>
    %c0 = arith.constant 0 : index
    %c0_0 = arith.constant 0 : index
    %1 = vector.load %arg7[%c0, %c0_0] : memref<96x32xf32, #tpu.memory_space<vmem>>, vector<16x32xf32>
    tpu.vector_store %arg7[%c0, %c0_0], %0 {strides = array<i32>} : memref<96x32xf32, #tpu.memory_space<vmem>>, vector<16x32xf32>,
    %c80 = arith.constant 80 : index
    %c0_1 = arith.constant 0 : index
    %2 = vector.load %arg7[%c80, %c0_1] : memref<96x32xf32, #tpu.memory_space<vmem>>, vector<16x32xf32>
    tpu.vector_store %arg7[%c80, %c0_1], %0 {strides = array<i32>} : memref<96x32xf32, #tpu.memory_space<vmem>>, vector<16x32xf32>,
    %c0_2 = arith.constant 0 : index
    %c0_3 = arith.constant 0 : index
    %3 = vector.load %arg1[%c0_2, %c0_3] : memref<64x32xbf16, #tpu.memory_space<vmem>>, vector<64x32xbf16>
    %4 = arith.extf %3 : vector<64x32xbf16> to vector<64x32xf32>
    %c0_4 = arith.constant 0 : index
    %c0_5 = arith.constant 0 : index
    %5 = vector.load %arg2[%c0_4, %c0_5] : memref<1x32xf32, #tpu.memory_space<vmem>>, vector<1x32xf32>
    %6 = vector.broadcast %5 : vector<1x32xf32> to vector<64x32xf32>
    %7 = arith.mulf %4, %6 : vector<64x32xf32>
    %c0_6 = arith.constant 0 : index
    %c0_7 = arith.constant 0 : index
    %8 = vector.load %arg3[%c0_6, %c0_7] : memref<1x32xf32, #tpu.memory_space<vmem>>, vector<1x32xf32>
    %9 = vector.broadcast %8 : vector<1x32xf32> to vector<64x32xf32>
    %10 = arith.addf %7, %9 : vector<64x32xf32>
    %cst_8 = arith.constant 0.000000e+00 : f32
    %11 = vector.broadcast %cst_8 : f32 to vector<64x32xf32>
    %12 = arith.maximumf %10, %11 : vector<64x32xf32>
    %c16 = arith.constant 16 : index
    %c0_9 = arith.constant 0 : index
    %13 = vector.load %arg7[%c16, %c0_9] : memref<96x32xf32, #tpu.memory_space<vmem>>, vector<64x32xf32>
    tpu.vector_store %arg7[%c16, %c0_9], %12 {strides = array<i32>} : memref<96x32xf32, #tpu.memory_space<vmem>>, vector<64x32xf32>,
    %14 = tpu.iota {dimensions = array<i32: 0>} : vector<64x1xi32>
    %c8_i32 = arith.constant 8 : i32
    %c0_i32 = arith.constant 0 : i32
    %15 = arith.cmpi eq, %c8_i32, %c0_i32 : i32
    %c1_i32 = arith.constant 1 : i32
    %16 = arith.select %15, %c1_i32, %c8_i32 : i32
    %17 = vector.broadcast %16 : i32 to vector<64x1xi32>
    %18 = arith.remsi %14, %17 : vector<64x1xi32>
    %c0_i32_10 = arith.constant 0 : i32
    %19 = vector.broadcast %c0_i32_10 : i32 to vector<64x1xi32>
    %20 = arith.cmpi ne, %18, %19 : vector<64x1xi32>
    %c0_i32_11 = arith.constant 0 : i32
    %21 = vector.broadcast %c0_i32_11 : i32 to vector<64x1xi32>
    %22 = arith.cmpi slt, %18, %21 : vector<64x1xi32>
    %c0_i32_12 = arith.constant 0 : i32
    %23 = arith.cmpi slt, %16, %c0_i32_12 : i32
    %24 = vector.broadcast %23 : i1 to vector<64x1xi1>
    %25 = vector.broadcast %24 : vector<64x1xi1> to vector<64x1xi1>
    %26 = arith.xori %22, %25 : vector<64x1xi1>
    %27 = arith.andi %26, %20 : vector<64x1xi1>
    %28 = vector.broadcast %16 : i32 to vector<64x1xi32>
    %29 = arith.addi %18, %28 : vector<64x1xi32>
    %30 = arith.select %27, %29, %18 : vector<64x1xi1>, vector<64x1xi32>
    %c64_i32 = arith.constant 64 : i32
    %c0_i32_13 = arith.constant 0 : i32
    %31 = arith.cmpi eq, %c64_i32, %c0_i32_13 : i32
    %c1_i32_14 = arith.constant 1 : i32
    %32 = arith.select %31, %c1_i32_14, %c64_i32 : i32
    %33 = vector.broadcast %32 : i32 to vector<64x1xi32>
    %34 = arith.remsi %14, %33 : vector<64x1xi32>
    %c0_i32_15 = arith.constant 0 : i32
    %35 = vector.broadcast %c0_i32_15 : i32 to vector<64x1xi32>
    %36 = arith.cmpi ne, %34, %35 : vector<64x1xi32>
    %c0_i32_16 = arith.constant 0 : i32
    %37 = vector.broadcast %c0_i32_16 : i32 to vector<64x1xi32>
    %38 = arith.cmpi slt, %34, %37 : vector<64x1xi32>
    %c0_i32_17 = arith.constant 0 : i32
    %39 = arith.cmpi slt, %32, %c0_i32_17 : i32
    %40 = vector.broadcast %39 : i1 to vector<64x1xi1>
    %41 = vector.broadcast %40 : vector<64x1xi1> to vector<64x1xi1>
    %42 = arith.xori %38, %41 : vector<64x1xi1>
    %43 = arith.andi %42, %36 : vector<64x1xi1>
    %44 = vector.broadcast %32 : i32 to vector<64x1xi32>
    %45 = arith.addi %34, %44 : vector<64x1xi32>
    %46 = arith.select %43, %45, %34 : vector<64x1xi1>, vector<64x1xi32>
    %c7 = arith.constant 7 : index
    %c0_18 = arith.constant 0 : index
    %47 = vector.load %arg7[%c7, %c0_18] : memref<96x32xf32, #tpu.memory_space<vmem>>, vector<64x32xf32>
    %c8_i32_19 = arith.constant 8 : i32
    %48 = vector.broadcast %c8_i32_19 : i32 to vector<64x1xi32>
    %49 = arith.cmpi sge, %46, %48 : vector<64x1xi32>
    %c1_i32_20 = arith.constant 1 : i32
    %50 = vector.broadcast %c1_i32_20 : i32 to vector<64x1xi32>
    %51 = arith.cmpi sge, %30, %50 : vector<64x1xi32>
    %52 = arith.andi %49, %51 : vector<64x1xi1>
    %cst_21 = arith.constant 0.000000e+00 : f32
    %53 = vector.shape_cast %52 : vector<64x1xi1> to vector<64x1xi1>
    %54 = vector.broadcast %53 : vector<64x1xi1> to vector<64x32xi1>
    %55 = vector.broadcast %cst_21 : f32 to vector<64x32xf32>
    %56 = arith.select %54, %47, %55 : vector<64x32xi1>, vector<64x32xf32>
    %57 = arith.truncf %56 : vector<64x32xf32> to vector<64x32xbf16>
    %c0_22 = arith.constant 0 : index
    %c0_23 = arith.constant 0 : index
    %c0_24 = arith.constant 0 : index
    %58 = vector.load %arg4[%c0_22, %c0_23, %c0_24] : memref<9x32x64xbf16, #tpu.memory_space<vmem>>, vector<1x32x64xbf16>
    %59 = vector.shape_cast %58 : vector<1x32x64xbf16> to vector<32x64xbf16>
    %cst_25 = arith.constant dense<0.000000e+00> : vector<64x64xf32>
    %60 = tpu.matmul %57, %59, %cst_25 {dimension_numbers = #tpu.dot_dimension_numbers<[1], [0], [0], [1], [0, 0, 1, 1], [], []>} : vector<64x32xbf16>, vector<32x64xbf16>, vector<64x64xf32> -> vector<64x64xf32>
    %c8 = arith.constant 8 : index
    %c0_26 = arith.constant 0 : index
    %61 = vector.load %arg7[%c8, %c0_26] : memref<96x32xf32, #tpu.memory_space<vmem>>, vector<64x32xf32>
    %c8_i32_27 = arith.constant 8 : i32
    %62 = vector.broadcast %c8_i32_27 : i32 to vector<64x1xi32>
    %63 = arith.cmpi sge, %46, %62 : vector<64x1xi32>
    %cst_28 = arith.constant 0.000000e+00 : f32
    %64 = vector.shape_cast %63 : vector<64x1xi1> to vector<64x1xi1>
    %65 = vector.broadcast %64 : vector<64x1xi1> to vector<64x32xi1>
    %66 = vector.broadcast %cst_28 : f32 to vector<64x32xf32>
    %67 = arith.select %65, %61, %66 : vector<64x32xi1>, vector<64x32xf32>
    %68 = arith.truncf %67 : vector<64x32xf32> to vector<64x32xbf16>
    %c1 = arith.constant 1 : index
    %c0_29 = arith.constant 0 : index
    %c0_30 = arith.constant 0 : index
    %69 = vector.load %arg4[%c1, %c0_29, %c0_30] : memref<9x32x64xbf16, #tpu.memory_space<vmem>>, vector<1x32x64xbf16>
    %70 = vector.shape_cast %69 : vector<1x32x64xbf16> to vector<32x64xbf16>
    %cst_31 = arith.constant dense<0.000000e+00> : vector<64x64xf32>
    %71 = tpu.matmul %68, %70, %cst_31 {dimension_numbers = #tpu.dot_dimension_numbers<[1], [0], [0], [1], [0, 0, 1, 1], [], []>} : vector<64x32xbf16>, vector<32x64xbf16>, vector<64x64xf32> -> vector<64x64xf32>
    %72 = arith.addf %60, %71 : vector<64x64xf32>
    %c9 = arith.constant 9 : index
    %c0_32 = arith.constant 0 : index
    %73 = vector.load %arg7[%c9, %c0_32] : memref<96x32xf32, #tpu.memory_space<vmem>>, vector<64x32xf32>
    %c8_i32_33 = arith.constant 8 : i32
    %74 = vector.broadcast %c8_i32_33 : i32 to vector<64x1xi32>
    %75 = arith.cmpi sge, %46, %74 : vector<64x1xi32>
    %c6_i32 = arith.constant 6 : i32
    %76 = vector.broadcast %c6_i32 : i32 to vector<64x1xi32>
    %77 = arith.cmpi sle, %30, %76 : vector<64x1xi32>
    %78 = arith.andi %75, %77 : vector<64x1xi1>
    %cst_34 = arith.constant 0.000000e+00 : f32
    %79 = vector.shape_cast %78 : vector<64x1xi1> to vector<64x1xi1>
    %80 = vector.broadcast %79 : vector<64x1xi1> to vector<64x32xi1>
    %81 = vector.broadcast %cst_34 : f32 to vector<64x32xf32>
    %82 = arith.select %80, %73, %81 : vector<64x32xi1>, vector<64x32xf32>
    %83 = arith.truncf %82 : vector<64x32xf32> to vector<64x32xbf16>
    %c2 = arith.constant 2 : index
    %c0_35 = arith.constant 0 : index
    %c0_36 = arith.constant 0 : index
    %84 = vector.load %arg4[%c2, %c0_35, %c0_36] : memref<9x32x64xbf16, #tpu.memory_space<vmem>>, vector<1x32x64xbf16>
    %85 = vector.shape_cast %84 : vector<1x32x64xbf16> to vector<32x64xbf16>
    %cst_37 = arith.constant dense<0.000000e+00> : vector<64x64xf32>
    %86 = tpu.matmul %83, %85, %cst_37 {dimension_numbers = #tpu.dot_dimension_numbers<[1], [0], [0], [1], [0, 0, 1, 1], [], []>} : vector<64x32xbf16>, vector<32x64xbf16>, vector<64x64xf32> -> vector<64x64xf32>
    %87 = arith.addf %72, %86 : vector<64x64xf32>
    %c15 = arith.constant 15 : index
    %c0_38 = arith.constant 0 : index
    %88 = vector.load %arg7[%c15, %c0_38] : memref<96x32xf32, #tpu.memory_space<vmem>>, vector<64x32xf32>
    %c1_i32_39 = arith.constant 1 : i32
    %89 = vector.broadcast %c1_i32_39 : i32 to vector<64x1xi32>
    %90 = arith.cmpi sge, %30, %89 : vector<64x1xi32>
    %cst_40 = arith.constant 0.000000e+00 : f32
    %91 = vector.shape_cast %90 : vector<64x1xi1> to vector<64x1xi1>
    %92 = vector.broadcast %91 : vector<64x1xi1> to vector<64x32xi1>
    %93 = vector.broadcast %cst_40 : f32 to vector<64x32xf32>
    %94 = arith.select %92, %88, %93 : vector<64x32xi1>, vector<64x32xf32>
    %95 = arith.truncf %94 : vector<64x32xf32> to vector<64x32xbf16>
    %c3 = arith.constant 3 : index
    %c0_41 = arith.constant 0 : index
    %c0_42 = arith.constant 0 : index
    %96 = vector.load %arg4[%c3, %c0_41, %c0_42] : memref<9x32x64xbf16, #tpu.memory_space<vmem>>, vector<1x32x64xbf16>
    %97 = vector.shape_cast %96 : vector<1x32x64xbf16> to vector<32x64xbf16>
    %cst_43 = arith.constant dense<0.000000e+00> : vector<64x64xf32>
    %98 = tpu.matmul %95, %97, %cst_43 {dimension_numbers = #tpu.dot_dimension_numbers<[1], [0], [0], [1], [0, 0, 1, 1], [], []>} : vector<64x32xbf16>, vector<32x64xbf16>, vector<64x64xf32> -> vector<64x64xf32>
    %99 = arith.addf %87, %98 : vector<64x64xf32>
    %c16_44 = arith.constant 16 : index
    %c0_45 = arith.constant 0 : index
    %100 = vector.load %arg7[%c16_44, %c0_45] : memref<96x32xf32, #tpu.memory_space<vmem>>, vector<64x32xf32>
    %101 = arith.truncf %100 : vector<64x32xf32> to vector<64x32xbf16>
    %c4 = arith.constant 4 : index
    %c0_46 = arith.constant 0 : index
    %c0_47 = arith.constant 0 : index
    %102 = vector.load %arg4[%c4, %c0_46, %c0_47] : memref<9x32x64xbf16, #tpu.memory_space<vmem>>, vector<1x32x64xbf16>
    %103 = vector.shape_cast %102 : vector<1x32x64xbf16> to vector<32x64xbf16>
    %cst_48 = arith.constant dense<0.000000e+00> : vector<64x64xf32>
    %104 = tpu.matmul %101, %103, %cst_48 {dimension_numbers = #tpu.dot_dimension_numbers<[1], [0], [0], [1], [0, 0, 1, 1], [], []>} : vector<64x32xbf16>, vector<32x64xbf16>, vector<64x64xf32> -> vector<64x64xf32>
    %105 = arith.addf %99, %104 : vector<64x64xf32>
    %c17 = arith.constant 17 : index
    %c0_49 = arith.constant 0 : index
    %106 = vector.load %arg7[%c17, %c0_49] : memref<96x32xf32, #tpu.memory_space<vmem>>, vector<64x32xf32>
    %c6_i32_50 = arith.constant 6 : i32
    %107 = vector.broadcast %c6_i32_50 : i32 to vector<64x1xi32>
    %108 = arith.cmpi sle, %30, %107 : vector<64x1xi32>
    %cst_51 = arith.constant 0.000000e+00 : f32
    %109 = vector.shape_cast %108 : vector<64x1xi1> to vector<64x1xi1>
    %110 = vector.broadcast %109 : vector<64x1xi1> to vector<64x32xi1>
    %111 = vector.broadcast %cst_51 : f32 to vector<64x32xf32>
    %112 = arith.select %110, %106, %111 : vector<64x32xi1>, vector<64x32xf32>
    %113 = arith.truncf %112 : vector<64x32xf32> to vector<64x32xbf16>
    %c5 = arith.constant 5 : index
    %c0_52 = arith.constant 0 : index
    %c0_53 = arith.constant 0 : index
    %114 = vector.load %arg4[%c5, %c0_52, %c0_53] : memref<9x32x64xbf16, #tpu.memory_space<vmem>>, vector<1x32x64xbf16>
    %115 = vector.shape_cast %114 : vector<1x32x64xbf16> to vector<32x64xbf16>
    %cst_54 = arith.constant dense<0.000000e+00> : vector<64x64xf32>
    %116 = tpu.matmul %113, %115, %cst_54 {dimension_numbers = #tpu.dot_dimension_numbers<[1], [0], [0], [1], [0, 0, 1, 1], [], []>} : vector<64x32xbf16>, vector<32x64xbf16>, vector<64x64xf32> -> vector<64x64xf32>
    %117 = arith.addf %105, %116 : vector<64x64xf32>
    %c23 = arith.constant 23 : index
    %c0_55 = arith.constant 0 : index
    %118 = vector.load %arg7[%c23, %c0_55] : memref<96x32xf32, #tpu.memory_space<vmem>>, vector<64x32xf32>
    %c56_i32 = arith.constant 56 : i32
    %119 = vector.broadcast %c56_i32 : i32 to vector<64x1xi32>
    %120 = arith.cmpi slt, %46, %119 : vector<64x1xi32>
    %c1_i32_56 = arith.constant 1 : i32
    %121 = vector.broadcast %c1_i32_56 : i32 to vector<64x1xi32>
    %122 = arith.cmpi sge, %30, %121 : vector<64x1xi32>
    %123 = arith.andi %120, %122 : vector<64x1xi1>
    %cst_57 = arith.constant 0.000000e+00 : f32
    %124 = vector.shape_cast %123 : vector<64x1xi1> to vector<64x1xi1>
    %125 = vector.broadcast %124 : vector<64x1xi1> to vector<64x32xi1>
    %126 = vector.broadcast %cst_57 : f32 to vector<64x32xf32>
    %127 = arith.select %125, %118, %126 : vector<64x32xi1>, vector<64x32xf32>
    %128 = arith.truncf %127 : vector<64x32xf32> to vector<64x32xbf16>
    %c6 = arith.constant 6 : index
    %c0_58 = arith.constant 0 : index
    %c0_59 = arith.constant 0 : index
    %129 = vector.load %arg4[%c6, %c0_58, %c0_59] : memref<9x32x64xbf16, #tpu.memory_space<vmem>>, vector<1x32x64xbf16>
    %130 = vector.shape_cast %129 : vector<1x32x64xbf16> to vector<32x64xbf16>
    %cst_60 = arith.constant dense<0.000000e+00> : vector<64x64xf32>
    %131 = tpu.matmul %128, %130, %cst_60 {dimension_numbers = #tpu.dot_dimension_numbers<[1], [0], [0], [1], [0, 0, 1, 1], [], []>} : vector<64x32xbf16>, vector<32x64xbf16>, vector<64x64xf32> -> vector<64x64xf32>
    %132 = arith.addf %117, %131 : vector<64x64xf32>
    %c24 = arith.constant 24 : index
    %c0_61 = arith.constant 0 : index
    %133 = vector.load %arg7[%c24, %c0_61] : memref<96x32xf32, #tpu.memory_space<vmem>>, vector<64x32xf32>
    %c56_i32_62 = arith.constant 56 : i32
    %134 = vector.broadcast %c56_i32_62 : i32 to vector<64x1xi32>
    %135 = arith.cmpi slt, %46, %134 : vector<64x1xi32>
    %cst_63 = arith.constant 0.000000e+00 : f32
    %136 = vector.shape_cast %135 : vector<64x1xi1> to vector<64x1xi1>
    %137 = vector.broadcast %136 : vector<64x1xi1> to vector<64x32xi1>
    %138 = vector.broadcast %cst_63 : f32 to vector<64x32xf32>
    %139 = arith.select %137, %133, %138 : vector<64x32xi1>, vector<64x32xf32>
    %140 = arith.truncf %139 : vector<64x32xf32> to vector<64x32xbf16>
    %c7_64 = arith.constant 7 : index
    %c0_65 = arith.constant 0 : index
    %c0_66 = arith.constant 0 : index
    %141 = vector.load %arg4[%c7_64, %c0_65, %c0_66] : memref<9x32x64xbf16, #tpu.memory_space<vmem>>, vector<1x32x64xbf16>
    %142 = vector.shape_cast %141 : vector<1x32x64xbf16> to vector<32x64xbf16>
    %cst_67 = arith.constant dense<0.000000e+00> : vector<64x64xf32>
    %143 = tpu.matmul %140, %142, %cst_67 {dimension_numbers = #tpu.dot_dimension_numbers<[1], [0], [0], [1], [0, 0, 1, 1], [], []>} : vector<64x32xbf16>, vector<32x64xbf16>, vector<64x64xf32> -> vector<64x64xf32>
    %144 = arith.addf %132, %143 : vector<64x64xf32>
    %c25 = arith.constant 25 : index
    %c0_68 = arith.constant 0 : index
    %145 = vector.load %arg7[%c25, %c0_68] : memref<96x32xf32, #tpu.memory_space<vmem>>, vector<64x32xf32>
    %c56_i32_69 = arith.constant 56 : i32
    %146 = vector.broadcast %c56_i32_69 : i32 to vector<64x1xi32>
    %147 = arith.cmpi slt, %46, %146 : vector<64x1xi32>
    %c6_i32_70 = arith.constant 6 : i32
    %148 = vector.broadcast %c6_i32_70 : i32 to vector<64x1xi32>
    %149 = arith.cmpi sle, %30, %148 : vector<64x1xi32>
    %150 = arith.andi %147, %149 : vector<64x1xi1>
    %cst_71 = arith.constant 0.000000e+00 : f32
    %151 = vector.shape_cast %150 : vector<64x1xi1> to vector<64x1xi1>
    %152 = vector.broadcast %151 : vector<64x1xi1> to vector<64x32xi1>
    %153 = vector.broadcast %cst_71 : f32 to vector<64x32xf32>
    %154 = arith.select %152, %145, %153 : vector<64x32xi1>, vector<64x32xf32>
    %155 = arith.truncf %154 : vector<64x32xf32> to vector<64x32xbf16>
    %c8_72 = arith.constant 8 : index
    %c0_73 = arith.constant 0 : index
    %c0_74 = arith.constant 0 : index
    %156 = vector.load %arg4[%c8_72, %c0_73, %c0_74] : memref<9x32x64xbf16, #tpu.memory_space<vmem>>, vector<1x32x64xbf16>
    %157 = vector.shape_cast %156 : vector<1x32x64xbf16> to vector<32x64xbf16>
    %cst_75 = arith.constant dense<0.000000e+00> : vector<64x64xf32>
    %158 = tpu.matmul %155, %157, %cst_75 {dimension_numbers = #tpu.dot_dimension_numbers<[1], [0], [0], [1], [0, 0, 1, 1], [], []>} : vector<64x32xbf16>, vector<32x64xbf16>, vector<64x64xf32> -> vector<64x64xf32>
    %159 = arith.addf %144, %158 : vector<64x64xf32>
    %c0_76 = arith.constant 0 : index
    %c0_77 = arith.constant 0 : index
    %160 = vector.load %arg5[%c0_76, %c0_77] : memref<64x64xf32, #tpu.memory_space<vmem>>, vector<64x64xf32>
    tpu.vector_store %arg5[%c0_76, %c0_77], %159 {strides = array<i32>} : memref<64x64xf32, #tpu.memory_space<vmem>>, vector<64x64xf32>,
    %cst_78 = arith.constant dense<0.000000e+00> : vector<64xf32>
    %161 = vector.multi_reduction <add>, %159, %cst_78 [0] : vector<64x64xf32> to vector<64xf32>
    %162 = vector.shape_cast %161 : vector<64xf32> to vector<1x64xf32>
    %c0_79 = arith.constant 0 : index
    %c0_80 = arith.constant 0 : index
    %c0_81 = arith.constant 0 : index
    %163 = vector.load %arg6[%c0_79, %c0_80, %c0_81] : memref<1x2x64xf32, #tpu.memory_space<vmem>>, vector<1x1x64xf32>
    %164 = vector.shape_cast %163 : vector<1x1x64xf32> to vector<1x64xf32>
    %165 = vector.shape_cast %162 : vector<1x64xf32> to vector<1x1x64xf32>
    tpu.vector_store %arg6[%c0_79, %c0_80, %c0_81], %165 {strides = array<i32>} : memref<1x2x64xf32, #tpu.memory_space<vmem>>, vector<1x1x64xf32>,
    %166 = arith.mulf %159, %159 : vector<64x64xf32>
    %cst_82 = arith.constant dense<0.000000e+00> : vector<64xf32>
    %167 = vector.multi_reduction <add>, %166, %cst_82 [0] : vector<64x64xf32> to vector<64xf32>
    %168 = vector.shape_cast %167 : vector<64xf32> to vector<1x64xf32>
    %c0_83 = arith.constant 0 : index
    %c1_84 = arith.constant 1 : index
    %c0_85 = arith.constant 0 : index
    %169 = vector.load %arg6[%c0_83, %c1_84, %c0_85] : memref<1x2x64xf32, #tpu.memory_space<vmem>>, vector<1x1x64xf32>
    %170 = vector.shape_cast %169 : vector<1x1x64xf32> to vector<1x64xf32>
    %171 = vector.shape_cast %168 : vector<1x64xf32> to vector<1x1x64xf32>
    tpu.vector_store %arg6[%c0_83, %c1_84, %c0_85], %171 {strides = array<i32>} : memref<1x2x64xf32, #tpu.memory_space<vmem>>, vector<1x1x64xf32>,
    return
  }
  func.func @transform_0(%arg0: i32) -> (i32, i32) {
    %c0_i32 = arith.constant 0 : i32
    %c0_i32_0 = arith.constant 0 : i32
    return %arg0, %c0_i32 : i32, i32
  }
  func.func @transform_1(%arg0: i32) -> (i32, i32) {
    %c0_i32 = arith.constant 0 : i32
    %c0_i32_0 = arith.constant 0 : i32
    %c0_i32_1 = arith.constant 0 : i32
    return %c0_i32, %c0_i32_0 : i32, i32
  }
  func.func @transform_2(%arg0: i32) -> (i32, i32) {
    %c0_i32 = arith.constant 0 : i32
    %c0_i32_0 = arith.constant 0 : i32
    %c0_i32_1 = arith.constant 0 : i32
    return %c0_i32, %c0_i32_0 : i32, i32
  }
  func.func @transform_3(%arg0: i32) -> (i32, i32, i32) {
    %c0_i32 = arith.constant 0 : i32
    %c0_i32_0 = arith.constant 0 : i32
    %c0_i32_1 = arith.constant 0 : i32
    %c0_i32_2 = arith.constant 0 : i32
    return %c0_i32, %c0_i32_0, %c0_i32_1 : i32, i32, i32
  }
  func.func @transform_4(%arg0: i32) -> (i32, i32) {
    %c0_i32 = arith.constant 0 : i32
    %c0_i32_0 = arith.constant 0 : i32
    return %arg0, %c0_i32 : i32, i32
  }
  func.func @transform_5(%arg0: i32) -> (i32, i32, i32) {
    %c0_i32 = arith.constant 0 : i32
    %c0_i32_0 = arith.constant 0 : i32
    %c0_i32_1 = arith.constant 0 : i32
    return %arg0, %c0_i32, %c0_i32_0 : i32, i32, i32
  }
}

module attributes {stable_mosaic.version = 11 : i64} {
  func.func @_bn_relu_pool_kernel(%arg0: i32, %arg1: memref<64x64xf32, #tpu.memory_space<vmem>>, %arg2: memref<1x64xf32, #tpu.memory_space<vmem>>, %arg3: memref<1x64xf32, #tpu.memory_space<vmem>>, %arg4: memref<4x4x64xf32, #tpu.memory_space<vmem>>) attributes {dimension_semantics = [#tpu.dimension_semantics<parallel>], iteration_bounds = array<i64: 2>, scalar_prefetch = 0 : i64, scratch_operands = 0 : i64, tpu.core_type = #tpu.core_type<tc>, window_params = [{transform_indices = @transform_0, window_bounds = array<i64: 64, 64>}, {pipeline_mode = #tpu.pipeline_mode<synchronous>, transform_indices = @transform_1, window_bounds = array<i64: 1, 64>}, {pipeline_mode = #tpu.pipeline_mode<synchronous>, transform_indices = @transform_2, window_bounds = array<i64: 1, 64>}, {transform_indices = @transform_3, window_bounds = array<i64: 4, 4, 64>}]} {
    %c0 = arith.constant 0 : index
    %c0_0 = arith.constant 0 : index
    %0 = vector.load %arg2[%c0, %c0_0] : memref<1x64xf32, #tpu.memory_space<vmem>>, vector<1x64xf32>
    %c0_1 = arith.constant 0 : index
    %c0_2 = arith.constant 0 : index
    %1 = vector.load %arg3[%c0_1, %c0_2] : memref<1x64xf32, #tpu.memory_space<vmem>>, vector<1x64xf32>
    %c0_3 = arith.constant 0 : index
    %c0_4 = arith.constant 0 : index
    %2 = tpu.strided_load %arg1[%c0_3, %c0_4] {strides = array<i32: 2, 1>} : memref<64x64xf32, #tpu.memory_space<vmem>>, vector<32x64xf32>
    %3 = vector.broadcast %0 : vector<1x64xf32> to vector<32x64xf32>
    %4 = arith.mulf %2, %3 : vector<32x64xf32>
    %5 = vector.broadcast %1 : vector<1x64xf32> to vector<32x64xf32>
    %6 = arith.addf %4, %5 : vector<32x64xf32>
    %cst = arith.constant 0.000000e+00 : f32
    %7 = vector.broadcast %cst : f32 to vector<32x64xf32>
    %8 = arith.maximumf %6, %7 : vector<32x64xf32>
    %c1 = arith.constant 1 : index
    %c0_5 = arith.constant 0 : index
    %9 = tpu.strided_load %arg1[%c1, %c0_5] {strides = array<i32: 2, 1>} : memref<64x64xf32, #tpu.memory_space<vmem>>, vector<32x64xf32>
    %10 = vector.broadcast %0 : vector<1x64xf32> to vector<32x64xf32>
    %11 = arith.mulf %9, %10 : vector<32x64xf32>
    %12 = vector.broadcast %1 : vector<1x64xf32> to vector<32x64xf32>
    %13 = arith.addf %11, %12 : vector<32x64xf32>
    %cst_6 = arith.constant 0.000000e+00 : f32
    %14 = vector.broadcast %cst_6 : f32 to vector<32x64xf32>
    %15 = arith.maximumf %13, %14 : vector<32x64xf32>
    %16 = arith.addf %8, %15 : vector<32x64xf32>
    %17 = vector.shape_cast %16 : vector<32x64xf32> to vector<4x8x64xf32>
    %18 = vector.extract_strided_slice %17 {offsets = [0, 0, 0], sizes = [4, 4, 64], strides = [1, 1, 1]} : vector<4x8x64xf32> to vector<4x4x64xf32>
    %19 = vector.extract_strided_slice %17 {offsets = [0, 4, 0], sizes = [4, 4, 64], strides = [1, 1, 1]} : vector<4x8x64xf32> to vector<4x4x64xf32>
    %20 = arith.addf %18, %19 : vector<4x4x64xf32>
    %cst_7 = arith.constant 2.500000e-01 : f32
    %21 = vector.broadcast %cst_7 : f32 to vector<4x4x64xf32>
    %22 = arith.mulf %21, %20 : vector<4x4x64xf32>
    %c0_8 = arith.constant 0 : index
    %c0_9 = arith.constant 0 : index
    %c0_10 = arith.constant 0 : index
    %23 = vector.load %arg4[%c0_8, %c0_9, %c0_10] : memref<4x4x64xf32, #tpu.memory_space<vmem>>, vector<4x4x64xf32>
    tpu.vector_store %arg4[%c0_8, %c0_9, %c0_10], %22 {strides = array<i32>} : memref<4x4x64xf32, #tpu.memory_space<vmem>>, vector<4x4x64xf32>,
    return
  }
  func.func @transform_0(%arg0: i32) -> (i32, i32) {
    %c0_i32 = arith.constant 0 : i32
    %c0_i32_0 = arith.constant 0 : i32
    return %arg0, %c0_i32 : i32, i32
  }
  func.func @transform_1(%arg0: i32) -> (i32, i32) {
    %c0_i32 = arith.constant 0 : i32
    %c0_i32_0 = arith.constant 0 : i32
    %c0_i32_1 = arith.constant 0 : i32
    return %c0_i32, %c0_i32_0 : i32, i32
  }
  func.func @transform_2(%arg0: i32) -> (i32, i32) {
    %c0_i32 = arith.constant 0 : i32
    %c0_i32_0 = arith.constant 0 : i32
    %c0_i32_1 = arith.constant 0 : i32
    return %c0_i32, %c0_i32_0 : i32, i32
  }
  func.func @transform_3(%arg0: i32) -> (i32, i32, i32) {
    %c0_i32 = arith.constant 0 : i32
    %c0_i32_0 = arith.constant 0 : i32
    %c0_i32_1 = arith.constant 0 : i32
    return %arg0, %c0_i32, %c0_i32_0 : i32, i32, i32
  }
}

</mosaic_0001>

<bundles_post_ra>
// kernel: resnet_pre_encoder_forward.4
= control target key start
LH: loop header
LB: loop body
LE: loop exit
PB: predicated region body
PF: predicated region fallthrough
CT: control target
= control target key end

     0   :  { %s510_s12 = smov 0   ;;  %s575_s0 = inlined_call_operand.vmem [shape: bf16[128,9], index: 0, kind: input, shape index: {}]   ;;  %s576_s1 = inlined_call_operand.vmem [shape: bf16[9,32], index: 1, kind: input, shape index: {}]   ;;  %s577_s2 = inlined_call_operand.vmem [shape: bf16[128,32], index: 2, kind: output, shape index: {0}]   ;;  %s578_s3 = inlined_call_operand.vmem [shape: f32[2,2,32], index: 3, kind: output, shape index: {1}]  }
   0x1 LB: > { %s516_s13 = sadd.s32 4294967295, %s487_s12   ;;  %p432_p0 = scmp.ge.s32.totalorder %s487_s12, 1  ;;  %s487_s12 = sphi %s510_s12, %s14_s12  }
   0x2   : > { %p141_p1 = scmp.lt.s32.totalorder %s487_s12, 3 }
   0x4   : > { %p142_p2 = pnand %p432_p0, %p141_p1 }
   0x5   : > { %s433_s18 = sshll.u32 (!%p142_p2), %s516_s13, 3  ;;  %p181_p4 = scmp.lt.s32.totalorder (!%p142_p2), %s516_s13, 1 }
   0x6   : > { %145 = sbr.rel (%p142_p2) target bundleno = 184 (0xb8), region = 28  ;;  %p170_p3 = scmp.lt.s32.totalorder (!%p142_p2), %s433_s18, 15 }
   0xb   : > { %v456_v0 = vld [vmem:[%s576_s1] sm:$0xf]  ;;  %v468_v1 = vld [vmem:[%s576_s1] sm:$0x10]  ;;  %vm234_vm0 = vcmask 1043456   ;;  %vm235_vm1 = vcmask 1044480  }
   0xc   : > { %v457_v2 = vor.u32 %v468_v1, %v456_v0  ;;  %v489_v3 = vmov 65535   ;;  %s580_s18 = smov (!%p170_p3, %s433_s18), 15  ;;  %vm221_vm2 = vcmask 72704   ;;  %vm278_vm3 = vcmask 257024   ;;  %s582_s13 = smov (!%p181_p4, %s516_s13), 1 }
   0xd   : > { %v236_v4 = vsel %vm234_vm0, 4294967295, %v489_v3  ;;  %s434_s19 = sshll.u32 %s580_s18, 2  ;;  %vm287_vm4 = vcmask 261120   ;;  %s437_s26 = sshll.u32 %s582_s13, 1  ;;  %vm309_vm5 = vcmask 253952  }
   0xe   : > { %v237_v5 = vsel %vm235_vm1, %v236_v4, 0  ;;  %s173_s22 = scalar_lea.vmem %s575_s0, %s434_s19  ;;  %s533_s25 = scalar_lea.vmem %s577_s2, %s434_s19 }
   0xf   : > { %v239_v6 = vand.u32 %v457_v2, %v237_v5  ;;  %v464_v7 = vld [vmem:[%s173_s22] sm:$0xff]  ;;  %v465_v8 = vld [vmem:[%s173_s22 + $0x8] sm:$0xff]  ;;  %v466_v9 = vld [vmem:[%s173_s22 + $0x10] sm:$0xff]  ;;  %s184_s29 = scalar_lea.vmem %s578_s3, %s437_s26 }
  0x10   : > { %v467_v10 = vld [vmem:[%s173_s22 + $0x18] sm:$0xff] }
  0x11   : > { %248 = vmatpush.bf16.msra.mxu0 %v239_v6  ;;  %469 = vmatpush.bf16.msra.mxu1 %v239_v6 }
  0x12   : > { %470 = vmatpush.bf16.msra.mxu2 %v239_v6  ;;  %471 = vmatpush.bf16.msra.mxu3 %v239_v6 }
  0x14   : > { %458 = vmatmul.msk.bf16.vlgmr.msra.gmra.mxu0 %vm221_vm2, %v464_v7  ;;  %459 = vmatmul.msk.bf16.vlgmr.msra.gmra.mxu1 %vm221_vm2, %v465_v8 }
  0x15   : > { %460 = vmatmul.msk.bf16.vlgmr.msra.gmra.mxu2 %vm221_vm2, %v466_v9  ;;  %461 = vmatmul.msk.bf16.vlgmr.msra.gmra.mxu3 %vm221_vm2, %v467_v10 }
  0x91   : > { %v250_v11 = vpop.f32.mrf.mxu0  ;;  %v255_v12 = vpop.f32.mrf.mxu1 }
  0x92   : > { %v270_v13 = vpack.c.bf16 %v250_v11, %v250_v11  ;;  %v272_v14 = vpack.c.bf16 %v255_v12, %v255_v12  ;;  %v311_v17 = vmul.f32 %v250_v11, %v250_v11  ;;  %v288_v22 = vsel %vm287_vm4, %v250_v11, 0.0 }
  0x93   : > { %v313_v25 = vmul.f32 %v255_v12, %v255_v12  ;;  %v291_v29 = vsel %vm287_vm4, %v255_v12, 0.0 }
  0x94   : > { %279 = vst.msk [vmem:[%s533_s25] sm:$0xf] %vm278_vm3, %v270_v13  ;;  %v319_v30 = vsel %vm287_vm4, %v311_v17, 0.0 }
  0x95   : > { %281 = vst.msk [vmem:[%s533_s25 + $0x8] sm:$0xf] %vm278_vm3, %v272_v14  ;;  %v322_v36 = vsel %vm287_vm4, %v313_v25, 0.0 }
  0x98   : > { %v260_v15 = vpop.f32.mrf.mxu2  ;;  %v265_v16 = vpop.f32.mrf.mxu3 }
  0x99   : > { %v274_v18 = vpack.c.bf16 %v260_v15, %v260_v15  ;;  %v276_v19 = vpack.c.bf16 %v265_v16, %v265_v16  ;;  %v252_v20 = vpop.f32.mrf.mxu0  ;;  %v257_v21 = vpop.f32.mrf.mxu1  ;;  %v315_v37 = vmul.f32 %v260_v15, %v260_v15  ;;  %v295_v39 = vsel %vm287_vm4, %v260_v15, 0.0 }
  0x9a   : > { %v271_v23 = vpack.c.bf16 %v252_v20, %v252_v20  ;;  %v289_v24 = vsel %vm287_vm4, %v252_v20, 0.0  ;;  %v312_v27 = vmul.f32 %v252_v20, %v252_v20  ;;  %v273_v28 = vpack.c.bf16 %v257_v21, %v257_v21 }
  0x9b   : > { %283 = vst.msk [vmem:[%s533_s25 + $0x10] sm:$0xf] %vm278_vm3, %v274_v18  ;;  %v290_v26 = vadd.f32 %v289_v24, %v288_v22  ;;  %v314_v33 = vmul.f32 %v257_v21, %v257_v21  ;;  %v293_v35 = vsel %vm287_vm4, %v257_v21, 0.0  ;;  %v326_v50 = vsel %vm287_vm4, %v315_v37, 0.0 }
  0x9c   : > { %285 = vst.msk [vmem:[%s533_s25 + $0x18] sm:$0xf] %vm278_vm3, %v276_v19  ;;  %v320_v31 = vsel %vm287_vm4, %v312_v27, 0.0  ;;  %v317_v51 = vmul.f32 %v265_v16, %v265_v16  ;;  %v299_v53 = vsel %vm287_vm4, %v265_v16, 0.0 }
  0x9d   : > { %280 = vst.msk [vmem:[%s533_s25 + $0x4] sm:$0xf] %vm278_vm3, %v271_v23  ;;  %v292_v32 = vadd.f32 %v291_v29, %v290_v26  ;;  %v321_v34 = vadd.f32 %v320_v31, %v319_v30  ;;  %v324_v43 = vsel %vm287_vm4, %v314_v33, 0.0 }
  0x9e   : > { %282 = vst.msk [vmem:[%s533_s25 + $0xc] sm:$0xf] %vm278_vm3, %v273_v28  ;;  %v330_v60 = vsel %vm287_vm4, %v317_v51, 0.0 }
  0x9f   : > { %v294_v38 = vadd.f32 %v293_v35, %v292_v32  ;;  %v323_v40 = vadd.f32 %v322_v36, %v321_v34 }
  0xa0   : > { %v262_v41 = vpop.f32.mrf.mxu2  ;;  %v267_v42 = vpop.f32.mrf.mxu3 }
  0xa1   : > { %v275_v44 = vpack.c.bf16 %v262_v41, %v262_v41  ;;  %v296_v45 = vadd.f32 %v295_v39, %v294_v38  ;;  %v316_v46 = vmul.f32 %v262_v41, %v262_v41  ;;  %v325_v47 = vadd.f32 %v324_v43, %v323_v40 }
  0xa2   : > { %v297_v48 = vsel %vm287_vm4, %v262_v41, 0.0  ;;  %v277_v49 = vpack.c.bf16 %v267_v42, %v267_v42  ;;  %v318_v57 = vmul.f32 %v267_v42, %v267_v42  ;;  %v301_v59 = vsel %vm287_vm4, %v267_v42, 0.0 }
  0xa3   : > { %284 = vst.msk [vmem:[%s533_s25 + $0x14] sm:$0xf] %vm278_vm3, %v275_v44  ;;  %v298_v52 = vadd.f32 %v297_v48, %v296_v45  ;;  %v327_v54 = vadd.f32 %v326_v50, %v325_v47  ;;  %v328_v55 = vsel %vm287_vm4, %v316_v46, 0.0 }
  0xa4   : > { %286 = vst.msk [vmem:[%s533_s25 + $0x1c] sm:$0xf] %vm278_vm3, %v277_v49  ;;  %v332_v0 = vsel %vm287_vm4, %v318_v57, 0.0 }
  0xa5   : > { %v300_v56 = vadd.f32 %v299_v53, %v298_v52  ;;  %v329_v58 = vadd.f32 %v328_v55, %v327_v54 }
  0xa7   : > { %v302_v61 = vadd.f32 %v301_v59, %v300_v56  ;;  %v331_v62 = vadd.f32 %v330_v60, %v329_v58 }
  0xa9   : > { %v303_v63 = vrot.slane %v302_v61, 4  ;;  %v333_v1 = vadd.f32 %v332_v0, %v331_v62 }
  0xab   : > { %v304_v2 = vadd.f32 %v303_v63, %v302_v61  ;;  %v334_v3 = vrot.slane %v333_v1, 4 }
  0xad   : > { %v305_v4 = vrot.slane %v304_v2, 2  ;;  %v335_v5 = vadd.f32 %v334_v3, %v333_v1 }
  0xaf   : > { %v306_v6 = vadd.f32 %v305_v4, %v304_v2  ;;  %v336_v7 = vrot.slane %v335_v5, 2 }
  0xb1   : > { %v307_v8 = vrot.slane %v306_v6, 1  ;;  %v337_v9 = vadd.f32 %v336_v7, %v335_v5 }
  0xb3   : > { %v308_v10 = vadd.f32 %v307_v8, %v306_v6  ;;  %v338_v11 = vrot.slane %v337_v9, 1 }
  0xb5   : > { %310 = vst.msk [vmem:[%s184_s29] sm:$0x1] %vm309_vm5, %v308_v10  ;;  %v339_v12 = vadd.f32 %v338_v11, %v337_v9 }
  0xb7   : > { %340 = vst.msk [vmem:[%s184_s29 + $0x1] sm:$0x1] %vm309_vm5, %v339_v12 }
  0xb8 PF: > { %s14_s12 = sadd.s32 1, %s487_s12  }
  0xb9   : > { %p11_p5 = scmp.ge.s32.totalorder %s14_s12, 4  }
  0xbb   :  { %13 = sbr.rel (!%p11_p5) target bundleno = 1 (0x1), region = 70 }

// kernel: resnet_pre_encoder_forward.7
= control target key start
LH: loop header
LB: loop body
LE: loop exit
PB: predicated region body
PF: predicated region fallthrough
CT: control target
= control target key end

     0   :  { %8 = vsyncpa [#allocation3], 0  ;;  %s573_s0 = inlined_call_operand.vmem [shape: f32[128,64], index: 0, kind: input, shape index: {}]   ;;  %s574_s1 = inlined_call_operand.vmem [shape: f32[1,64], index: 1, kind: input, shape index: {}]   ;;  %s575_s2 = inlined_call_operand.vmem [shape: f32[1,64], index: 2, kind: input, shape index: {}]   ;;  %s576_s3 = inlined_call_operand.hbm [shape: f32[8,4,64], index: 3, kind: output, shape index: {}]  }
   0x1   :  { %10 = vsyncpa [#allocation3 + $0x1], 0  ;;  %s475_s12 = smov 0   ;;  %s477_s13 = smov 0  }
   0x2   :  { %s479_s14 = smov 0   ;;  %s481_s15 = smov 0  }
   0x3 LB: > { %s496_s16 = sadd.s32 4294967295, %s451_s15   ;;  %s326_s17 = sadd.s32 4294967294, %s451_s15   ;;  %s451_s15 = sphi %s481_s15, %s582_s15   ;;  %s447_s14 = sphi %s479_s14, %s581_s14   ;;  %s443_s13 = sphi %s477_s13, %s580_s13   ;;  %s439_s12 = sphi %s475_s12, %s579_s12  }
   0x4   : > { %s500_s18 = sadd.s32 1, %s451_s15   ;;  %s91_s19 = sadd.s32 1, %s447_s14 }
   0x5   : > { %s88_s20 = ssub.s32 %s451_s15, %s500_s18  ;;  %p101_p0 = scmp.ne.s32.totalorder %s447_s14, %s443_s13 }
   0x6   : > { %p89_p1 = scmp.eq.s32.totalorder %s88_s20, 0  ;;  %p102_p2 = scmp.eq.s32.totalorder %s496_s16, 1 }
   0x7   : > { %p107_p3 = scmp.ne.s32.totalorder %s443_s13, %s439_s12  ;;  %p108_p4 = scmp.eq.s32.totalorder %s326_s17, 1 }
   0x8   : > { %s511_s21 = scalar_select %p89_p1, %s447_s14, %s91_s19  }
   0x9   : > { %p513_p5 = por %p102_p2, %p101_p0  ;;  %p517_p6 = por %p108_p4, %p107_p3 }
   0xa   : > { %p329_p7 = scmp.ge.s32.totalorder %s451_s15, 1  ;;  %p141_p8 = scmp.lt.s32.totalorder %s451_s15, 3 }
   0xc   : > { %p142_p9 = pnand %p329_p7, %p141_p8 }
   0xd   : > { %s331_s24 = sshll.u32 (!%p142_p9), %s496_s16, 3  ;;  %s162_s6 = sand.u32 (!%p142_p9), 1, %s443_s13  }
   0xe   : > { %145 = sbr.rel (%p142_p9) target bundleno = 44 (0x2c), region = 32  ;;  %p166_p10 = scmp.lt.s32.totalorder (!%p142_p9), %s331_s24, 15 }
   0xf   : > { %s330_s7 = sshll.u32 (!%p142_p9), %s162_s6, 4  ;;  %s345_s8 = sshll.u32 (!%p142_p9), %s496_s16, 4 }
  0x10   : > { %s260_s11 = scalar_lea.hbm (!%p142_p9), %s576_s3, %s345_s8  ;;  %s164_s17 = scalar_lea.vmem (!%p142_p9), [#allocation2], %s330_s7 }
  0x11   : > { %s261_s19 = sshll.u32 (!%p142_p9), %s164_s17, 4  ;;  %s263_s16 = sshll.u32 (!%p142_p9), %s260_s11, 4  ;;  %s262_s19 = int_to_ptr.vmem [resolvable:$true] %s261_s19  ;;  %s264_s16 = int_to_ptr.hbm [resolvable:$true] %s263_s16 }
  0x12   : > { %s249_s20 = scalar_lea.sflag (!%p142_p9), [#allocation3], %s162_s6  ;;  %s409_s28 = scalar_lea.hbm (!%p142_p9), %s576_s3, 32 }
  0x13   : > { %s584_s24 = smov (!%p166_p10, %s331_s24), 15  ;;  %v387_v0 = vld [vmem:[%s574_s1] ss:$0 sm:$0xff]  ;;  %vm243_vm0 = vcmask 519168  }
  0x14   : > { %s332_s27 = sshll.u32 %s584_s24, 3  ;;  %v388_v1 = vld [vmem:[%s575_s2] ss:$0 sm:$0xff]  ;;  %s403_s24 = sshra.s32 %s264_s16, 4  ;;  %s404_s24 = int_to_ptr.hbm [resolvable:$true] %s403_s24 }
  0x15   : > { %s169_s30 = scalar_lea.vmem %s573_s0, %s332_s27  ;;  %s405_s25 = scalar_lea.hbm %s404_s24, 16 }
  0x16   : > { %v174_v2 = vld [vmem:[%s169_s30] ss:$2 sm:$0xff]  ;;  %v336_v3 = vld [vmem:[%s169_s30 + $0x1] ss:$2 sm:$0xff]  ;;  %v333_v4 = vld [vmem:[%s169_s30 + $0x10] ss:$2 sm:$0xff]  ;;  %p406_p11 = scmp.ne.s32.totalorder %s404_s24, %s405_s25  ;;  %p410_p0 = scmp.lt.s32.totalorder %s404_s24, %s576_s3 }
  0x17   : > { %v184_v5 = vmul.f32 %v387_v0, %v174_v2  ;;  %v207_v6 = vmul.f32 %v387_v0, %v336_v3  ;;  %v185_v7 = vmul.f32 %v387_v0, %v333_v4  ;;  %v337_v8 = vld [vmem:[%s169_s30 + $0x11] ss:$2 sm:$0xff]  ;;  %v334_v9 = vld [vmem:[%s169_s30 + $0x20] ss:$2 sm:$0xff]  ;;  %v338_v10 = vld [vmem:[%s169_s30 + $0x21] ss:$2 sm:$0xff]  ;;  %p411_p1 = scmp.lt.s32.totalorder %s409_s28, %s405_s25 }
  0x18   : > { %v208_v11 = vmul.f32 %v387_v0, %v337_v8  ;;  %v186_v12 = vmul.f32 %v387_v0, %v334_v9  ;;  %v209_v13 = vmul.f32 %v387_v0, %v338_v10  ;;  %v335_v14 = vld [vmem:[%s169_s30 + $0x30] ss:$2 sm:$0xff]  ;;  %v339_v15 = vld [vmem:[%s169_s30 + $0x31] ss:$2 sm:$0xff]  ;;  %p407_p12 = pnand %p406_p11, %p513_p5 }
  0x19   : > { %v191_v16 = vadd.f32 %v388_v1, %v184_v5  ;;  %v211_v17 = vadd.f32 %v388_v1, %v207_v6  ;;  %v192_v18 = vadd.f32 %v388_v1, %v185_v7  ;;  %v187_v19 = vmul.f32 %v387_v0, %v335_v14  ;;  %p412_p2 = por %p411_p1, %p410_p0 }
  0x1a   : > { %v212_v20 = vadd.f32 %v388_v1, %v208_v11  ;;  %v193_v21 = vadd.f32 %v388_v1, %v186_v12  ;;  %v213_v22 = vadd.f32 %v388_v1, %v209_v13  ;;  %v210_v23 = vmul.f32 %v387_v0, %v339_v15  ;;  %p408_p13 = pneg %p407_p12 }
  0x1b   : > { %v195_v24 = vmax.f32 %v191_v16, 0.0  ;;  %v215_v25 = vmax.f32 %v211_v17, 0.0  ;;  %v196_v26 = vmax.f32 %v192_v18, 0.0  ;;  %v194_v27 = vadd.f32 %v388_v1, %v187_v19 }
  0x1c   : > { %v216_v28 = vmax.f32 %v212_v20, 0.0  ;;  %v197_v29 = vmax.f32 %v193_v21, 0.0  ;;  %v217_v30 = vmax.f32 %v213_v22, 0.0  ;;  %v214_v31 = vadd.f32 %v388_v1, %v210_v23  ;;  %p413_p3 = pnand %p412_p2, %p408_p13 }
  0x1d   : > { %v219_v32 = vadd.f32 %v215_v25, %v195_v24  ;;  %v198_v33 = vmax.f32 %v194_v27, 0.0 }
  0x1e   : > { %v220_v34 = vadd.f32 %v216_v28, %v196_v26  ;;  %v221_v35 = vadd.f32 %v217_v30, %v197_v29  ;;  %v218_v36 = vmax.f32 %v214_v31, 0.0 }
  0x1f   : > { %v227_v37 = vrot.slane %v219_v32, 4 }
  0x20   : > { %v228_v38 = vrot.slane %v220_v34, 4  ;;  %v229_v39 = vrot.slane %v221_v35, 4  ;;  %v222_v40 = vadd.f32 %v218_v36, %v198_v33 }
  0x21   : > { %v235_v41 = vadd.f32 %v227_v37, %v219_v32 }
  0x22   : > { %v236_v42 = vadd.f32 %v228_v38, %v220_v34  ;;  %v237_v43 = vadd.f32 %v229_v39, %v221_v35  ;;  %v230_v44 = vrot.slane %v222_v40, 4 }
  0x23   : > { %v239_v45 = vmul.f32 0.25, %v235_v41 }
  0x24   : > { %v240_v46 = vmul.f32 0.25, %v236_v42  ;;  %v241_v47 = vmul.f32 0.25, %v237_v43  ;;  %v238_v48 = vadd.f32 %v230_v44, %v222_v40 }
  0x25   : > { %244 = vst.msk [vmem:[%s164_s17] sm:$0xf] %vm243_vm0, %v239_v45 }
  0x26   : > { %245 = vst.msk [vmem:[%s164_s17 + $0x4] sm:$0xf] %vm243_vm0, %v240_v46  ;;  %v242_v49 = vmul.f32 0.25, %v238_v48 }
  0x27   : > { %246 = vst.msk [vmem:[%s164_s17 + $0x8] sm:$0xf] %vm243_vm0, %v241_v47 }
  0x28   : > { %247 = vst.msk [vmem:[%s164_s17 + $0xc] sm:$0xf] %vm243_vm0, %v242_v49 }
  0x29   : > { %416 = shalt.err (!%p413_p3)
}
  0x2a   : > { %s453_s4 = smov 64   ;;  %s454_s5 = smov 4  }
  0x2b   : > { %346 = dma.vmem_to_hbm [thread:$0]  (%p513_p5), %s262_s19, 256, %s264_s16, %s249_s20, %s453_s4, %s453_s4, %s454_s5  }
  0x2c PF: > { %p352_p4 = scmp.ge.s32.totalorder %s451_s15, 2  ;;  %s278_s6 = sand.u32 1, %s439_s12  }
  0x2d   : > { %s279_s7 = scalar_lea.sflag [#allocation3], %s278_s6 }
  0x2e   : > { %p349_p7 = pnand %p352_p4, %p517_p6 }
  0x30   : > { %p350_p8 = pneg %p349_p7 }
  0x32   : > { %434 = dma.done.wait (%p350_p8), %s279_s7, 256  }
  0x33   : > { %436 = vsyncadd (%p350_p8), %s279_s7, 4294967040  ;;  %p13_p9 = scmp.ge.s32.totalorder %s500_s18, 4   ;;  %s579_s12 = smov %s443_s13 }
  0x34   : > { %s580_s13 = smov %s447_s14  ;;  %s581_s14 = smov %s511_s21 }
  0x35   : > { %s582_s15 = smov %s500_s18  ;;  %15 = sbr.rel (!%p13_p9) target bundleno = 3 (0x3), region = 74 }
  0x3a   :  { %285 = vsyncpa [#allocation3], 1 }
  0x3b   :  { %287 = vsyncpa [#allocation3 + $0x1], 1 }

// kernel: resnet_pre_encoder_forward.6
= control target key start
LH: loop header
LB: loop body
LE: loop exit
PB: predicated region body
PF: predicated region fallthrough
CT: control target
= control target key end

     0   :  { %s1837_s18 = smov 0   ;;  %s2348_s0 = inlined_call_operand.vmem [shape: bf16[128,32], index: 0, kind: input, shape index: {}]   ;;  %s2349_s1 = inlined_call_operand.vmem [shape: f32[1,32], index: 1, kind: input, shape index: {}]   ;;  %s2350_s2 = inlined_call_operand.vmem [shape: f32[1,32], index: 2, kind: input, shape index: {}]   ;;  %s2351_s3 = inlined_call_operand.vmem [shape: bf16[9,32,64], index: 3, kind: input, shape index: {}]   ;;  %s2352_s4 = inlined_call_operand.vmem [shape: f32[128,64], index: 4, kind: output, shape index: {0}]   ;;  %s2353_s5 = inlined_call_operand.vmem [shape: f32[2,2,64], index: 5, kind: output, shape index: {1}]  }
   0x1 LB: > { %s1843_s19 = sadd.s32 4294967295, %s1804_s18   ;;  %p1596_p0 = scmp.ge.s32.totalorder %s1804_s18, 1  ;;  %s1804_s18 = sphi %s1837_s18, %s16_s18  }
   0x2   : > { %p191_p1 = scmp.lt.s32.totalorder %s1804_s18, 3 }
   0x4   : > { %p192_p2 = pnand %p1596_p0, %p191_p1 }
   0x5   : > { %s1597_s22 = sshll.u32 (!%p192_p2), %s1843_s19, 3  ;;  %p235_p4 = scmp.lt.s32.totalorder (!%p192_p2), %s1843_s19, 1 }
   0x6   : > { %195 = sbr.rel (%p192_p2) target bundleno = 328 (0x148), region = 36  ;;  %p224_p3 = scmp.lt.s32.totalorder (!%p192_p2), %s1597_s22, 15 }
   0xb   : > { %v1747_v0 = vld [vmem:[%s2351_s3 + $0x18] sm:$0xff]  ;;  %v1746_v1 = vld [vmem:[%s2351_s3 + $0x10] sm:$0xff]  ;;  %vm240_vm0 = vcmask 261120   ;;  %s2387_s22 = smov (!%p224_p3, %s1597_s22), 15  ;;  %v1749_v2 = vld [vmem:[%s2351_s3 + $0x28] sm:$0xff]  ;;  %v1806_v3 = vmov 0.0   ;;  %v301_v44 = vlaneseq }
   0xc   : > { %1781 = vmatpush.bf16.msra.mxu1 %v1747_v0  ;;  %1782 = vmatpush.bf16.msra.mxu2 %v1747_v0  ;;  %242 = vst.msk [vmem:[#allocation2 + $0x8] sm:$0xff] %vm240_vm0, %v1806_v3  ;;  %v1751_v4 = vld [vmem:[%s2351_s3 + $0x38] sm:$0xff]  ;;  %s1598_s29 = sshll.u32 %s2387_s22, 2  ;;  %v1745_v5 = vld [vmem:[%s2351_s3 + $0x8] sm:$0xff]  ;;  %v1879_v7 = vld [vmem:[%s2349_s1] ss:$0 sm:$0xff] }
   0xd   : > { %1783 = vmatpush.bf16.msra.mxu3 %v1747_v0  ;;  %637 = vmatpush.bf16.msra.mxu0 %v1747_v0  ;;  %243 = vst.msk [vmem:[#allocation2 + $0x50] sm:$0xff] %vm240_vm0, %v1806_v3  ;;  %v1753_v6 = vld [vmem:[%s2351_s3 + $0x48] sm:$0xff]  ;;  %s227_s11 = scalar_lea.vmem %s2348_s0, %s1598_s29  ;;  %v1884_v13 = vld [vmem:[%s2350_s2] ss:$0 sm:$0xff]  ;;  %v1750_v21 = vld [vmem:[%s2351_s3 + $0x30] sm:$0xff]  ;;  %v1921_v46 = vshrl.u32 %v301_v44, 7 }
   0xe   : > { %v1763_v8 = vld [vmem:[%s227_s11] sm:$0xff]   ;;  %v1778_v9 = vld [vmem:[%s227_s11 + $0x8] sm:$0xff]   ;;  %v1779_v10 = vld [vmem:[%s227_s11 + $0x10] sm:$0xff]   ;;  %s1600_s20 = sshll.u32 %s2387_s22, 3  ;;  %s2389_s19 = smov (!%p235_p4, %s1843_s19), 1 }
   0xf   : > { %v1765_v11 = vunpack.c.h.bf16 %v1763_v8  ;;  %v1768_v12 = vunpack.c.l.bf16 %v1778_v9  ;;  %v1769_v14 = vunpack.c.h.bf16 %v1778_v9  ;;  %v1772_v15 = vunpack.c.l.bf16 %v1779_v10  ;;  %v1886_v16 = vld [vmem:[%s227_s11 + $0x18] sm:$0xff]   ;;  %v1748_v17 = vld [vmem:[%s2351_s3 + $0x20] sm:$0xff]  ;;  %v1757_v54 = vld [vmem:[%s2351_s3 + $0x68] sm:$0xff]  ;;  %s2284_s24 = scalar_lea.vmem %s2352_s4, %s1600_s20  ;;  %s1601_s22 = sshll.u32 %s2389_s19, 1 }
  0x10   : > { %1784 = vmatpush.bf16.msra.mxu1 %v1746_v1  ;;  %1785 = vmatpush.bf16.msra.mxu2 %v1746_v1  ;;  %v1773_v18 = vunpack.c.h.bf16 %v1779_v10  ;;  %v1776_v19 = vunpack.c.l.bf16 %v1886_v16  ;;  %v1764_v20 = vunpack.c.l.bf16 %v1763_v8  ;;  %v1744_v22 = vld [vmem:[%s2351_s3] sm:$0xff]  ;;  %v1755_v49 = vld [vmem:[%s2351_s3 + $0x58] sm:$0xff]  ;;  %v303_v52 = vadd.s32 8, %v1921_v46  ;;  %v1761_v62 = vld [vmem:[%s2351_s3 + $0x88] sm:$0xff]  ;;  %s238_s27 = scalar_lea.vmem %s2353_s5, %s1601_s22 }
  0x11   : > { %1786 = vmatpush.bf16.msra.mxu3 %v1746_v1  ;;  %638 = vmatpush.bf16.msra.mxu0 %v1746_v1  ;;  %v266_v23 = vmul.f32 %v1879_v7, %v1765_v11  ;;  %v267_v24 = vmul.f32 %v1879_v7, %v1768_v12  ;;  %v268_v25 = vmul.f32 %v1879_v7, %v1769_v14  ;;  %v1752_v27 = vld [vmem:[%s2351_s3 + $0x40] sm:$0xff]  ;;  %v1759_v58 = vld [vmem:[%s2351_s3 + $0x78] sm:$0xff]  ;;  %v307_v44 = vadd.s32 40, %v1921_v46 }
  0x12   : > { %v269_v26 = vmul.f32 %v1879_v7, %v1772_v15  ;;  %v270_v28 = vmul.f32 %v1879_v7, %v1773_v18  ;;  %v271_v29 = vmul.f32 %v1879_v7, %v1776_v19  ;;  %v265_v30 = vmul.f32 %v1879_v7, %v1764_v20 }
  0x13   : > { %v278_v31 = vadd.f32 %v1884_v13, %v266_v23  ;;  %v279_v32 = vadd.f32 %v1884_v13, %v267_v24  ;;  %v280_v33 = vadd.f32 %v1884_v13, %v268_v25  ;;  %v321_v61 = vand.u32 7, %v303_v52  ;;  %v1758_v25 = vld [vmem:[%s2351_s3 + $0x70] sm:$0xff] }
  0x14   : > { %800 = vmatpush.bf16.msrb.mxu2 %v1749_v2  ;;  %690 = vmatpush.bf16.msrb.mxu1 %v1745_v5  ;;  %v281_v34 = vadd.f32 %v1884_v13, %v269_v26  ;;  %v282_v35 = vadd.f32 %v1884_v13, %v270_v28  ;;  %v283_v36 = vadd.f32 %v1884_v13, %v271_v29  ;;  %v314_v2 = vand.u32 7, %v1921_v46  ;;  %v1754_v26 = vld [vmem:[%s2351_s3 + $0x50] sm:$0xff] }
  0x15   : > { %902 = vmatpush.bf16.msrb.mxu3 %v1751_v4  ;;  %980 = vmatpush.bf16.msrb.mxu0 %v1753_v6  ;;  %v286_v37 = vmax.f32 %v278_v31, 0.0  ;;  %v287_v38 = vmax.f32 %v279_v32, 0.0  ;;  %v288_v39 = vmax.f32 %v280_v33, 0.0  ;;  %v277_v40 = vadd.f32 %v1884_v13, %v265_v30 }
  0x16   : > { %v289_v41 = vmax.f32 %v281_v34, 0.0  ;;  %v290_v42 = vmax.f32 %v282_v35, 0.0  ;;  %v291_v43 = vmax.f32 %v283_v36, 0.0  ;;  %vm1966_vm1 = vcmp.ge.s32.totalorder %v321_v61, 1 }
  0x17   : > { %294 = vst.msk [vmem:[#allocation2 + $0x18] sm:$0xff] %vm240_vm0, %v286_v37  ;;  %v285_v45 = vmax.f32 %v277_v40, 0.0  ;;  %vm1973_vm2 = vcmp.le.s32.totalorder %v321_v61, 6  ;;  %vm1981_vm3 = vcmp.ge.s32.totalorder %v314_v2, 1  ;;  %v305_v18 = vadd.s32 24, %v1921_v46 }
  0x18   : > { %801 = vmatpush.bf16.msrb.mxu2 %v1748_v17  ;;  %691 = vmatpush.bf16.msrb.mxu1 %v1744_v22  ;;  %295 = vst.msk [vmem:[#allocation2 + $0x20] sm:$0xff] %vm240_vm0, %v287_v38  ;;  %v304_v17 = vadd.s32 16, %v1921_v46  ;;  %v1777_v23 = vunpack.c.h.bf16 %v1886_v16  ;;  %v1760_v16 = vld [vmem:[%s2351_s3 + $0x80] sm:$0xff]  ;;  %v349_v52 = vand.u32 7, %v307_v44 }
  0x19   : > { %903 = vmatpush.bf16.msrb.mxu3 %v1750_v21  ;;  %981 = vmatpush.bf16.msrb.mxu0 %v1752_v27  ;;  %296 = vst.msk [vmem:[#allocation2 + $0x28] sm:$0xff] %vm240_vm0, %v288_v39  ;;  %v335_v22 = vand.u32 7, %v305_v18  ;;  %v308_v18 = vadd.s32 48, %v1921_v46 }
  0x1a   : > { %297 = vst.msk [vmem:[#allocation2 + $0x30] sm:$0xff] %vm240_vm0, %v289_v41  ;;  %v328_v21 = vand.u32 7, %v304_v17  ;;  %v272_v24 = vmul.f32 %v1879_v7, %v1777_v23  ;;  %vm2075_vm9 = vcmp.ge.s32.totalorder %v349_v52, 1  ;;  %vm2087_vm11 = vcmp.le.s32.totalorder %v349_v52, 6 }
  0x1b   : > { %298 = vst.msk [vmem:[#allocation2 + $0x38] sm:$0xff] %vm240_vm0, %v290_v42  ;;  %vm2023_vm5 = vcmp.ge.s32.totalorder %v335_v22, 1  ;;  %vm2036_vm7 = vcmp.le.s32.totalorder %v335_v22, 6  ;;  %v356_v22 = vand.u32 7, %v308_v18 }
  0x1c   : > { %299 = vst.msk [vmem:[#allocation2 + $0x40] sm:$0xff] %vm240_vm0, %v291_v43  ;;  %vm2019_vm4 = vcmp.ge.s32.totalorder %v328_v21, 1  ;;  %v284_v29 = vadd.f32 %v1884_v13, %v272_v24  ;;  %vm2032_vm6 = vcmp.le.s32.totalorder %v328_v21, 6  ;;  %v306_v43 = vadd.s32 32, %v1921_v46 }
  0x1d   : > { %293 = vst.msk [vmem:[#allocation2 + $0x10] sm:$0xff] %vm240_vm0, %v285_v45  ;;  %vm2119_vm12 = vcmp.ge.s32.totalorder %v356_v22, 1  ;;  %vm2129_vm14 = vcmp.le.s32.totalorder %v356_v22, 6 }
  0x1e   : > { %v568_v47 = vld [vmem:[#allocation2 + $0x18] sm:$0xff]  ;;  %v292_v34 = vmax.f32 %v284_v29, 0.0 }
  0x1f   : > { %v1924_v48 = vld [vmem:[#allocation2 + $0x20] sm:$0xff] }
  0x20   : > { %v1930_v50 = vpack.c.bf16 %v1924_v48, %v568_v47  ;;  %v1932_v51 = vld [vmem:[#allocation2 + $0x28] sm:$0xff]  ;;  %v2017_v27 = vld [vmem:[#allocation2 + $0x1f] sm:$0xff]  ;;  %300 = vst.msk [vmem:[#allocation2 + $0x48] sm:$0xff] %vm240_vm0, %v292_v34 }
  0x21   : > { %v1935_v53 = vld [vmem:[#allocation2 + $0x30] sm:$0xff]  ;;  %v2028_v30 = vld [vmem:[#allocation2 + $0x19] sm:$0xff]  ;;  %v2030_v31 = vld [vmem:[#allocation2 + $0x21] sm:$0xff]  ;;  %v553_v35 = vsel %vm2023_vm5, %v2017_v27, 0.0  ;;  %v857_v40 = vsel %vm2019_vm4, %v2017_v27, 0.0 }
  0x22   : > { %1615 = vmatmul.msk.bf16.vlgmr.msra.gmra.mxu1 %vm240_vm0, %v1930_v50  ;;  %v1944_v55 = vpack.c.bf16 %v1935_v53, %v1932_v51  ;;  %v1946_v56 = vld [vmem:[#allocation2 + $0x38] sm:$0xff]  ;;  %v2046_v36 = vld [vmem:[#allocation2 + $0x27] sm:$0xff]  ;;  %v755_v37 = vsel %vm2032_vm6, %v2028_v30, 0.0  ;;  %v756_v38 = vsel %vm2036_vm7, %v2030_v31, 0.0  ;;  %v1037_v1 = vsel %vm2032_vm6, %v2030_v31, 0.0 }
  0x23   : > { %v1948_v57 = vld [vmem:[#allocation2 + $0x40] sm:$0xff]  ;;  %1082 = vmatpush.bf16.msra.mxu1 %v1755_v49  ;;  %v858_v41 = vsel %vm2023_vm5, %v2046_v36, 0.0  ;;  %v762_v42 = vpack.c.bf16 %v756_v38, %v755_v37  ;;  %v342_v49 = vand.u32 7, %v306_v43  ;;  %v2079_v61 = vld [vmem:[#allocation2 + $0x29] sm:$0xff]  ;;  %v943_v21 = vpack.c.bf16 %v1946_v56, %v1935_v53 }
  0x24   : > { %1616 = vmatmul.msk.bf16.vlgmr.msra.gmra.mxu2 %vm240_vm0, %v1944_v55  ;;  %v1957_v59 = vpack.c.bf16 %v1948_v57, %v1946_v56  ;;  %v567_v60 = vld [vmem:[#allocation2 + $0x10] sm:$0xff]  ;;  %v864_v45 = vpack.c.bf16 %v858_v41, %v857_v40  ;;  %v2383_v56 = vmov 0  ;;  %v1155_v5 = vsel %vm2019_vm4, %v2046_v36, 0.0 }
  0x25   : > { %v598_v63 = vpack.c.bf16 %v567_v60, %v1806_v3  ;;  %1200 = vmatpush.bf16.msra.mxu2 %v1757_v54  ;;  %v503_v0 = vld [vmem:[#allocation2 + $0xf] sm:$0xff]  ;;  %v1985_v9 = vld [vmem:[#allocation2 + $0x17] sm:$0xff]  ;;  %v941_v20 = vpack.c.bf16 %v568_v47, %v567_v60  ;;  %v942_v47 = vpack.c.bf16 %v1932_v51, %v1924_v48  ;;  %vm2071_vm8 = vcmp.ge.s32.totalorder %v342_v49, 1 }
  0x26   : > { %1617 = vmatmul.msk.bf16.vlgmr.msra.gmra.mxu3 %vm240_vm0, %v1957_v59  ;;  %v1971_v4 = vld [vmem:[#allocation2 + $0x11] sm:$0xff]  ;;  %v551_v6 = vsel %vm1966_vm1, %v503_v0, 0.0  ;;  %v855_v12 = vsel %vm1981_vm3, %v503_v0, 0.0  ;;  %v856_v14 = vsel %vm1966_vm1, %v1985_v9, 0.0  ;;  %v552_v13 = vsel %vm2019_vm4, %v1985_v9, 0.0 }
  0x27   : > { %1614 = vmatmul.msk.bf16.vlgmr.msra.gmra.mxu0 %vm240_vm0, %v598_v63  ;;  %1302 = vmatpush.bf16.msra.mxu3 %v1759_v58  ;;  %v754_v10 = vsel %vm1973_vm2, %v1971_v4, 0.0  ;;  %v558_v11 = vpack.c.bf16 %v551_v6, %v1806_v3  ;;  %v863_v19 = vpack.c.bf16 %v856_v14, %v855_v12  ;;  %v559_v39 = vpack.c.bf16 %v553_v35, %v552_v13  ;;  %v2069_v54 = vld [vmem:[#allocation2 + $0x2f] sm:$0xff]  ;;  %v2097_v6 = vld [vmem:[#allocation2 + $0x37] sm:$0xff]  ;;  %v838_v13 = vld [vmem:[#allocation2 + $0x47] sm:$0xff] }
  0x28   : > { %1412 = vmatpush.bf16.msra.mxu0 %v1761_v62  ;;  %v761_v15 = vpack.c.bf16 %v754_v10, %v1806_v3  ;;  %v1756_v3 = vld [vmem:[%s2351_s3 + $0x60] sm:$0xff]  ;;  %1083 = vmatpush.bf16.msra.mxu1 %v1754_v26  ;;  %v2081_v48 = vld [vmem:[#allocation2 + $0x31] sm:$0xff]  ;;  %vm2083_vm10 = vcmp.le.s32.totalorder %v342_v49, 6  ;;  %v554_v63 = vsel %vm2071_vm8, %v2046_v36, 0.0  ;;  %v555_v0 = vsel %vm2075_vm9, %v2069_v54, 0.0  ;;  %v1018_v58 = vld [vmem:[#allocation2 + $0x49] sm:$0xff] }
  0x29   : > { %1201 = vmatpush.bf16.msra.mxu2 %v1756_v3  ;;  %v757_v10 = vsel %vm2083_vm10, %v2079_v61, 0.0  ;;  %v560_v12 = vpack.c.bf16 %v555_v0, %v554_v63  ;;  %v859_v14 = vsel %vm2071_vm8, %v2069_v54, 0.0  ;;  %v509_v3 = vld [vmem:[#allocation2 + $0x3f] sm:$0xff]  ;;  %v556_v29 = vsel %vm2119_vm12, %v2097_v6, 0.0 }
  0x2a   : > { %v719_v26 = vld [vmem:[#allocation2 + $0x39] sm:$0xff]  ;;  %v1153_v49 = vsel %vm1981_vm3, %v1985_v9, 0.0  ;;  %v1156_v8 = vsel %vm2023_vm5, %v2069_v54, 0.0  ;;  %v1039_v28 = vsel %vm2083_vm10, %v2081_v48, 0.0  ;;  %v1157_v32 = vsel %vm2071_vm8, %v2097_v6, 0.0 }
  0x2b   : > { %1303 = vmatpush.bf16.msra.mxu3 %v1758_v25  ;;  %v759_v35 = vsel %vm2129_vm14, %v719_v26, 0.0  ;;  %v1040_v7 = vsel %vm2087_vm11, %v719_v26, 0.0  ;;  %v1158_v33 = vsel %vm2075_vm9, %v509_v3, 0.0  ;;  %v1159_v62 = vsel %vm2119_vm12, %v838_v13, 0.0 }
  0x2c   : > { %1413 = vmatpush.bf16.msra.mxu0 %v1760_v16  ;;  %v2127_v16 = vld [vmem:[#allocation2 + $0x41] sm:$0xff]  ;;  %v1045_v36 = vpack.c.bf16 %v1040_v7, %v1039_v28  ;;  %v1163_v54 = vpack.c.bf16 %v1158_v33, %v1157_v32 }
  0x2d   : > { %v1041_v60 = vsel %vm2129_vm14, %v2127_v16, 0.0 }
  0x32   : > { %1626 = vmatmul.msk.bf16.vlgmr.msrb.gmra.mxu1 %vm240_vm0, %v558_v11  ;;  %v758_v11 = vsel %vm2087_vm11, %v2081_v48, 0.0 }
  0x33   : > { %v763_v17 = vpack.c.bf16 %v758_v11, %v757_v10  ;;  %v1164_v11 = vpack.c.bf16 0.0, %v1159_v62 }
  0x34   : > { %1642 = vmatmul.msk.bf16.vlgmr.msrb.gmra.mxu2 %vm240_vm0, %v761_v15  ;;  %v860_v15 = vsel %vm2075_vm9, %v2097_v6, 0.0 }
  0x36   : > { %1658 = vmatmul.msk.bf16.vlgmr.msrb.gmra.mxu3 %vm240_vm0, %v863_v19  ;;  %v309_v19 = vadd.s32 56, %v1921_v46  ;;  %v1366_v46 = vsel %vm1973_vm2, %v2030_v31, 0.0 }
  0x37   : > { %1674 = vmatmul.msk.bf16.vlgmr.msrb.gmra.mxu0 %vm240_vm0, %v941_v20  ;;  %v865_v20 = vpack.c.bf16 %v860_v15, %v859_v14 }
  0x38   : > { %v363_v23 = vand.u32 7, %v309_v19 }
  0x3a   : > { %vm2123_vm13 = vcmp.ge.s32.totalorder %v363_v23, 1  ;;  %vm2133_vm15 = vcmp.le.s32.totalorder %v363_v23, 6 }
  0x3b   : > { %v2384_v56 = vsel %vm2133_vm15, 4294967295, %v2383_v56  ;;  %v557_v34 = vsel %vm2123_vm13, %v509_v3, 0.0  ;;  %v760_v37 = vsel %vm2133_vm15, %v2127_v16, 0.0  ;;  %v862_v40 = vsel %vm2123_vm13, %v838_v13, 0.0 }
  0x3c   : > { %v561_v38 = vpack.c.bf16 %v557_v34, %v556_v29  ;;  %v764_v41 = vpack.c.bf16 %v760_v37, %v759_v35  ;;  %vm721_vm15 = vcmp.le.s32.totalorder %v314_v2, 6 }
  0x3d   : > { %v1365_v0 = vsel %vm721_vm15, %v2028_v30, 0.0 }
  0x3e   : > { %v1373_v2 = vpack.c.bf16 %v1366_v46, %v1365_v0 }
  0x42   : > { %1627 = vmatmul.msk.bf16.gmra.mxu1 %vm240_vm0, %v559_v39  ;;  %v861_v39 = vsel %vm2119_vm12, %v509_v3, 0.0 }
  0x43   : > { %v866_v43 = vpack.c.bf16 %v862_v40, %v861_v39 }
  0x44   : > { %1643 = vmatmul.msk.bf16.gmra.mxu2 %vm240_vm0, %v762_v42  ;;  %v940_v42 = vld [vmem:[#allocation2 + $0x48] sm:$0xff] }
  0x45   : > { %v944_v44 = vpack.c.bf16 %v940_v42, %v1948_v57  ;;  %v1154_v57 = vsel %vm1966_vm1, %v2017_v27, 0.0  ;;  %v1367_v27 = vsel %vm2032_vm6, %v2079_v61, 0.0  ;;  %vm2385_vm1 = vnez %v2384_v56 }
  0x46   : > { %1659 = vmatmul.msk.bf16.gmra.mxu3 %vm240_vm0, %v864_v45  ;;  %v1035_v45 = vsel %vm721_vm15, %v1971_v4, 0.0  ;;  %v1161_v63 = vpack.c.bf16 %v1154_v57, %v1153_v49  ;;  %v1038_v4 = vsel %vm2036_vm7, %v2079_v61, 0.0  ;;  %v1370_v61 = vsel %vm2087_vm11, %v2127_v16, 0.0 }
  0x47   : > { %1675 = vmatmul.msk.bf16.gmra.mxu0 %vm240_vm0, %v942_v47  ;;  %v1036_v47 = vsel %vm1973_vm2, %v2028_v30, 0.0  ;;  %v1044_v9 = vpack.c.bf16 %v1038_v4, %v1037_v1  ;;  %v1368_v30 = vsel %vm2036_vm7, %v2081_v48, 0.0  ;;  %v1042_v51 = vsel %vm2385_vm1, %v1018_v58, 0.0 }
  0x48   : > { %v1043_v52 = vpack.c.bf16 %v1036_v47, %v1035_v45  ;;  %v1374_v31 = vpack.c.bf16 %v1368_v30, %v1367_v27  ;;  %v1046_v6 = vpack.c.bf16 %v1042_v51, %v1041_v60  ;;  %vm1473_vm2 = vcmask 516096  }
  0x52   : > { %1628 = vmatmul.msk.bf16.gmra.mxu1 %vm240_vm0, %v560_v12  ;;  %v1266_v12 = vpack.c.bf16 0.0, %v940_v42 }
  0x54   : > { %1644 = vmatmul.msk.bf16.gmra.mxu2 %vm240_vm0, %v763_v17 }
  0x56   : > { %1660 = vmatmul.msk.bf16.gmra.mxu3 %vm240_vm0, %v865_v20 }
  0x57   : > { %1676 = vmatmul.msk.bf16.gmra.mxu0 %vm240_vm0, %v943_v21 }
  0x62   : > { %1629 = vmatmul.msk.bf16.gmra.mxu1 %vm240_vm0, %v561_v38 }
  0x64   : > { %1645 = vmatmul.msk.bf16.gmra.mxu2 %vm240_vm0, %v764_v41 }
  0x66   : > { %1661 = vmatmul.msk.bf16.gmra.mxu3 %vm240_vm0, %v866_v43 }
  0x67   : > { %1677 = vmatmul.msk.bf16.gmra.mxu0 %vm240_vm0, %v944_v44 }
  0x72   : > { %1690 = vmatmul.msk.bf16.vlgmr.msra.gmra.mxu1 %vm240_vm0, %v1043_v52 }
  0x74   : > { %1706 = vmatmul.msk.bf16.vlgmr.msra.gmra.mxu2 %vm240_vm0, %v1161_v63 }
  0x76   : > { %1722 = vmatmul.msk.bf16.vlgmr.msra.gmra.mxu3 %vm240_vm0, %v1930_v50  ;;  %v1162_v50 = vpack.c.bf16 %v1156_v8, %v1155_v5 }
  0x77   : > { %1738 = vmatmul.msk.bf16.vlgmr.msra.gmra.mxu0 %vm240_vm0, %v1373_v2 }
  0x82   : > { %1691 = vmatmul.msk.bf16.gmra.mxu1 %vm240_vm0, %v1044_v9 }
  0x84   : > { %1707 = vmatmul.msk.bf16.gmra.mxu2 %vm240_vm0, %v1162_v50 }
  0x86   : > { %1723 = vmatmul.msk.bf16.gmra.mxu3 %vm240_vm0, %v1944_v55  ;;  %v1369_v55 = vsel %vm2083_vm10, %v719_v26, 0.0 }
  0x87   : > { %1739 = vmatmul.msk.bf16.gmra.mxu0 %vm240_vm0, %v1374_v31  ;;  %v1375_v48 = vpack.c.bf16 %v1370_v61, %v1369_v55 }
  0x92   : > { %1692 = vmatmul.msk.bf16.gmra.mxu1 %vm240_vm0, %v1045_v36 }
  0x94   : > { %1708 = vmatmul.msk.bf16.gmra.mxu2 %vm240_vm0, %v1163_v54 }
  0x96   : > { %1724 = vmatmul.msk.bf16.gmra.mxu3 %vm240_vm0, %v1957_v59  ;;  %v1371_v59 = vsel %vm2129_vm14, %v1018_v58, 0.0 }
  0x97   : > { %1740 = vmatmul.msk.bf16.gmra.mxu0 %vm240_vm0, %v1375_v48  ;;  %v1376_v14 = vpack.c.bf16 0.0, %v1371_v59 }
  0x9f   : > { %v2227_v10 = vpop.f32.mrf.mxu1 }
  0xa2   : > { %1693 = vmatmul.msk.bf16.gmra.mxu1 %vm240_vm0, %v1046_v6 }
  0xa4   : > { %v640_v15 = vpop.f32.mrf.mxu0  ;;  %1709 = vmatmul.msk.bf16.gmra.mxu2 %vm240_vm0, %v1164_v11 }
  0xa6   : > { %1725 = vmatmul.msk.bf16.gmra.mxu3 %vm240_vm0, %v1266_v12 }
  0xa7   : > { %1741 = vmatmul.msk.bf16.gmra.mxu0 %vm240_vm0, %v1376_v14  ;;  %v2235_v17 = vpop.f32.mrf.mxu2  ;;  %v2237_v18 = vpop.f32.mrf.mxu1  ;;  %vm1443_vm0 = vcmask 523264  }
  0xa9   : > { %v2239_v19 = vpop.f32.mrf.mxu3 }
  0xac   : > { %v642_v20 = vpop.f32.mrf.mxu0 }
  0xaf   : > { %v2241_v21 = vpop.f32.mrf.mxu2  ;;  %v693_v22 = vpop.f32.mrf.mxu1 }
  0xb0   : > { %v694_v1 = vadd.f32 %v693_v22, %v640_v15 }
  0xb1   : > { %v2243_v23 = vpop.f32.mrf.mxu3 }
  0xb4   : > { %v983_v3 = vpop.f32.mrf.mxu0 }
  0xb7   : > { %v803_v24 = vpop.f32.mrf.mxu2  ;;  %v695_v25 = vpop.f32.mrf.mxu1 }
  0xb8   : > { %v823_v4 = vadd.f32 %v803_v24, %v694_v1  ;;  %v696_v30 = vadd.f32 %v695_v25, %v642_v20 }
  0xb9   : > { %v905_v26 = vpop.f32.mrf.mxu3 }
  0xba   : > { %v925_v50 = vadd.f32 %v905_v26, %v823_v4 }
  0xbc   : > { %v985_v16 = vpop.f32.mrf.mxu0  ;;  %v1003_v28 = vadd.f32 %v983_v3, %v925_v50 }
  0xbf   : > { %v805_v53 = vpop.f32.mrf.mxu2  ;;  %v698_v56 = vpop.f32.mrf.mxu1 }
  0xc0   : > { %v824_v31 = vadd.f32 %v805_v53, %v696_v30  ;;  %v699_v48 = vadd.f32 %v698_v56, %v2227_v10 }
  0xc1   : > { %v907_v29 = vpop.f32.mrf.mxu3 }
  0xc2   : > { %v926_v54 = vadd.f32 %v907_v29, %v824_v31 }
  0xc4   : > { %v988_v34 = vpop.f32.mrf.mxu0  ;;  %v1004_v62 = vadd.f32 %v985_v16, %v926_v54 }
  0xc7   : > { %v808_v13 = vpop.f32.mrf.mxu2  ;;  %v700_v35 = vpop.f32.mrf.mxu1 }
  0xc8   : > { %v825_v60 = vadd.f32 %v808_v13, %v699_v48  ;;  %v701_v20 = vadd.f32 %v700_v35, %v2237_v18 }
  0xc9   : > { %v910_v37 = vpop.f32.mrf.mxu3 }
  0xca   : > { %v927_v14 = vadd.f32 %v910_v37, %v825_v60 }
  0xcc   : > { %v2245_v38 = vpop.f32.mrf.mxu0  ;;  %v1005_v26 = vadd.f32 %v988_v34, %v927_v14 }
  0xcf   : > { %v810_v39 = vpop.f32.mrf.mxu2  ;;  %v2247_v40 = vpop.f32.mrf.mxu1 }
  0xd0   : > { %v826_v3 = vadd.f32 %v810_v39, %v701_v20  ;;  %v704_v30 = vadd.f32 %v2247_v40, %v2235_v17 }
  0xd1   : > { %v912_v41 = vpop.f32.mrf.mxu3 }
  0xd4   : > { %v2249_v42 = vpop.f32.mrf.mxu0 }
  0xd7   : > { %v2251_v43 = vpop.f32.mrf.mxu2  ;;  %v2253_v44 = vpop.f32.mrf.mxu1 }
  0xd9   : > { %v2255_v45 = vpop.f32.mrf.mxu3 }
  0xdc   : > { %v2257_v47 = vpop.f32.mrf.mxu0 }
  0xdf   : > { %v2259_v49 = vpop.f32.mrf.mxu2  ;;  %v2261_v57 = vpop.f32.mrf.mxu1 }
  0xe1   : > { %v2263_v52 = vpop.f32.mrf.mxu3 }
  0xe4   : > { %v2265_v63 = vpop.f32.mrf.mxu0 }
  0xe7   : > { %v2267_v0 = vpop.f32.mrf.mxu2  ;;  %v2269_v46 = vpop.f32.mrf.mxu1 }
  0xe9   : > { %v2271_v2 = vpop.f32.mrf.mxu3 }
  0xec   : > { %v2273_v5 = vpop.f32.mrf.mxu0 }
  0xef   : > { %v2275_v8 = vpop.f32.mrf.mxu2  ;;  %v1085_v9 = vpop.f32.mrf.mxu1 }
  0xf0   : > { %v1105_v32 = vadd.f32 %v1085_v9, %v1003_v28  ;;  %v928_v9 = vadd.f32 %v912_v41, %v826_v3  ;;  %v827_v28 = vadd.f32 %v2251_v43, %v704_v30 }
  0xf1   : > { %v2277_v27 = vpop.f32.mrf.mxu3 }
  0xf4   : > { %v1415_v7 = vpop.f32.mrf.mxu0 }
  0xf7   : > { %v1203_v33 = vpop.f32.mrf.mxu2  ;;  %v1087_v36 = vpop.f32.mrf.mxu1 }
  0xf8   : > { %v1223_v55 = vadd.f32 %v1203_v33, %v1105_v32  ;;  %v1106_v11 = vadd.f32 %v1087_v36, %v1004_v62  ;;  %v1006_v32 = vadd.f32 %v2245_v38, %v928_v9  ;;  %v706_v38 = vadd.f32 %v2253_v44, %v2241_v21 }
  0xf9   : > { %v1305_v61 = vpop.f32.mrf.mxu3 }
  0xfa   : > { %v1325_v58 = vadd.f32 %v1305_v61, %v1223_v55  ;;  %v828_v62 = vadd.f32 %v2259_v49, %v706_v38 }
  0xfc   : > { %v1435_v51 = vadd.f32 %v1415_v7, %v1325_v58  ;;  %v1417_v6 = vpop.f32.mrf.mxu0  ;;  %v929_v58 = vadd.f32 %v2255_v45, %v827_v28 }
  0xfe   : > { %1444 = vst.msk [vmem:[%s2284_s24] sm:$0xff] %vm1443_vm0, %v1435_v51  ;;  %v1475_v24 = vmul.f32 %v1435_v51, %v1435_v51  ;;  %v1452_v16 = vsel %vm1443_vm0, %v1435_v51, 0.0 }
  0xff   : > { %v1205_v59 = vpop.f32.mrf.mxu2  ;;  %v1090_v12 = vpop.f32.mrf.mxu1 }
 0x100   : > { %v1224_v10 = vadd.f32 %v1205_v59, %v1106_v11  ;;  %v1107_v13 = vadd.f32 %v1090_v12, %v1005_v26  ;;  %v1483_v18 = vsel %vm1443_vm0, %v1475_v24, 0.0  ;;  %v1007_v11 = vadd.f32 %v2249_v42, %v929_v58 }
 0x101   : > { %v1307_v15 = vpop.f32.mrf.mxu3  ;;  %v709_v42 = vadd.f32 %v2261_v57, %v2239_v19 }
 0x102   : > { %v1326_v22 = vadd.f32 %v1307_v15, %v1224_v10 }
 0x104   : > { %v1436_v25 = vadd.f32 %v1417_v6, %v1326_v22  ;;  %v1420_v53 = vpop.f32.mrf.mxu0  ;;  %v930_v22 = vadd.f32 %v2263_v52, %v828_v62 }
 0x106   : > { %1445 = vst.msk [vmem:[%s2284_s24 + $0x8] sm:$0xff] %vm1443_vm0, %v1436_v25  ;;  %v1453_v56 = vsel %vm1443_vm0, %v1436_v25, 0.0  ;;  %v1476_v29 = vmul.f32 %v1436_v25, %v1436_v25  ;;  %v829_v25 = vadd.f32 %v2267_v0, %v709_v42 }
 0x107   : > { %v1454_v37 = vadd.f32 %v1453_v56, %v1452_v16  ;;  %v1208_v1 = vpop.f32.mrf.mxu2  ;;  %v1092_v4 = vpop.f32.mrf.mxu1 }
 0x108   : > { %v1484_v35 = vsel %vm1443_vm0, %v1476_v29, 0.0  ;;  %v1225_v39 = vadd.f32 %v1208_v1, %v1107_v13  ;;  %v1108_v54 = vadd.f32 %v1092_v4, %v1006_v32  ;;  %v931_v1 = vadd.f32 %v2271_v2, %v829_v25 }
 0x109   : > { %v1485_v34 = vadd.f32 %v1484_v35, %v1483_v18  ;;  %v1310_v50 = vpop.f32.mrf.mxu3 }
 0x10a   : > { %v1327_v31 = vadd.f32 %v1310_v50, %v1225_v39 }
 0x10c   : > { %v1437_v7 = vadd.f32 %v1420_v53, %v1327_v31  ;;  %v1422_v33 = vpop.f32.mrf.mxu0  ;;  %v1008_v53 = vadd.f32 %v2257_v47, %v930_v22  ;;  %v711_v47 = vadd.f32 %v2269_v46, %v2243_v23 }
 0x10e   : > { %1446 = vst.msk [vmem:[%s2284_s24 + $0x10] sm:$0xff] %vm1443_vm0, %v1437_v7  ;;  %v1455_v41 = vsel %vm1443_vm0, %v1437_v7, 0.0  ;;  %v1477_v36 = vmul.f32 %v1437_v7, %v1437_v7  ;;  %v830_v35 = vadd.f32 %v2275_v8, %v711_v47 }
 0x10f   : > { %v1456_v55 = vadd.f32 %v1455_v41, %v1454_v37  ;;  %v1210_v61 = vpop.f32.mrf.mxu2  ;;  %v1095_v48 = vpop.f32.mrf.mxu1 }
 0x110   : > { %v1486_v17 = vsel %vm1443_vm0, %v1477_v36, 0.0  ;;  %v1226_v40 = vadd.f32 %v1210_v61, %v1108_v54  ;;  %v1109_v14 = vadd.f32 %v1095_v48, %v1007_v11  ;;  %v932_v7 = vadd.f32 %v2277_v27, %v830_v35 }
 0x111   : > { %v1487_v43 = vadd.f32 %v1486_v17, %v1485_v34  ;;  %v1312_v60 = vpop.f32.mrf.mxu3  ;;  %v1009_v34 = vadd.f32 %v2265_v63, %v931_v1 }
 0x112   : > { %v1328_v51 = vadd.f32 %v1312_v60, %v1226_v40  ;;  %v1010_v54 = vadd.f32 %v2273_v5, %v932_v7 }
 0x114   : > { %v1438_v6 = vadd.f32 %v1422_v33, %v1328_v51  ;;  %v1425_v59 = vpop.f32.mrf.mxu0 }
 0x116   : > { %1447 = vst.msk [vmem:[%s2284_s24 + $0x18] sm:$0xff] %vm1443_vm0, %v1438_v6  ;;  %v1457_v12 = vsel %vm1443_vm0, %v1438_v6, 0.0  ;;  %v1478_v45 = vmul.f32 %v1438_v6, %v1438_v6 }
 0x117   : > { %v1458_v10 = vadd.f32 %v1457_v12, %v1456_v55  ;;  %v1213_v15 = vpop.f32.mrf.mxu2  ;;  %v1097_v20 = vpop.f32.mrf.mxu1 }
 0x118   : > { %v1488_v21 = vsel %vm1443_vm0, %v1478_v45, 0.0  ;;  %v1227_v44 = vadd.f32 %v1213_v15, %v1109_v14  ;;  %v1110_v52 = vadd.f32 %v1097_v20, %v1008_v53 }
 0x119   : > { %v1489_v49 = vadd.f32 %v1488_v21, %v1487_v43  ;;  %v1315_v3 = vpop.f32.mrf.mxu3 }
 0x11a   : > { %v1329_v24 = vadd.f32 %v1315_v3, %v1227_v44 }
 0x11c   : > { %v1439_v26 = vadd.f32 %v1425_v59, %v1329_v24  ;;  %v1427_v13 = vpop.f32.mrf.mxu0 }
 0x11e   : > { %1448 = vst.msk [vmem:[%s2284_s24 + $0x20] sm:$0xff] %vm1443_vm0, %v1439_v26  ;;  %v1459_v16 = vsel %vm1443_vm0, %v1439_v26, 0.0  ;;  %v1479_v56 = vmul.f32 %v1439_v26, %v1439_v26 }
 0x11f   : > { %v1460_v29 = vadd.f32 %v1459_v16, %v1458_v10  ;;  %v1215_v37 = vpop.f32.mrf.mxu2  ;;  %v1100_v9 = vpop.f32.mrf.mxu1 }
 0x120   : > { %v1490_v19 = vsel %vm1443_vm0, %v1479_v56, 0.0  ;;  %v1228_v57 = vadd.f32 %v1215_v37, %v1110_v52  ;;  %v1111_v30 = vadd.f32 %v1100_v9, %v1009_v34 }
 0x121   : > { %v1491_v4 = vadd.f32 %v1490_v19, %v1489_v49  ;;  %v1317_v0 = vpop.f32.mrf.mxu3 }
 0x122   : > { %v1330_v18 = vadd.f32 %v1317_v0, %v1228_v57 }
 0x124   : > { %v1440_v39 = vadd.f32 %v1427_v13, %v1330_v18  ;;  %v1430_v33 = vpop.f32.mrf.mxu0 }
 0x126   : > { %1449 = vst.msk [vmem:[%s2284_s24 + $0x28] sm:$0xff] %vm1443_vm0, %v1440_v39  ;;  %v1461_v2 = vsel %vm1443_vm0, %v1440_v39, 0.0  ;;  %v1480_v50 = vmul.f32 %v1440_v39, %v1440_v39 }
 0x127   : > { %v1462_v31 = vadd.f32 %v1461_v2, %v1460_v29  ;;  %v1218_v28 = vpop.f32.mrf.mxu2  ;;  %v1102_v36 = vpop.f32.mrf.mxu1 }
 0x128   : > { %v1492_v32 = vsel %vm1443_vm0, %v1480_v50, 0.0  ;;  %v1229_v23 = vadd.f32 %v1218_v28, %v1111_v30  ;;  %v1112_v48 = vadd.f32 %v1102_v36, %v1010_v54 }
 0x129   : > { %v1493_v46 = vadd.f32 %v1492_v32, %v1491_v4  ;;  %v1320_v8 = vpop.f32.mrf.mxu3 }
 0x12a   : > { %v1331_v41 = vadd.f32 %v1320_v8, %v1229_v23 }
 0x12c   : > { %v1441_v63 = vadd.f32 %v1430_v33, %v1331_v41  ;;  %v1432_v51 = vpop.f32.mrf.mxu0 }
 0x12e   : > { %1450 = vst.msk [vmem:[%s2284_s24 + $0x30] sm:$0xff] %vm1443_vm0, %v1441_v63  ;;  %v1463_v55 = vsel %vm1443_vm0, %v1441_v63, 0.0  ;;  %v1481_v61 = vmul.f32 %v1441_v63, %v1441_v63 }
 0x12f   : > { %v1464_v27 = vadd.f32 %v1463_v55, %v1462_v31  ;;  %v1220_v58 = vpop.f32.mrf.mxu2 }
 0x130   : > { %v1494_v17 = vsel %vm1443_vm0, %v1481_v61, 0.0  ;;  %v1230_v40 = vadd.f32 %v1220_v58, %v1112_v48 }
 0x131   : > { %v1495_v43 = vadd.f32 %v1494_v17, %v1493_v46  ;;  %v1322_v60 = vpop.f32.mrf.mxu3 }
 0x132   : > { %v1332_v38 = vadd.f32 %v1322_v60, %v1230_v40 }
 0x134   : > { %v1442_v62 = vadd.f32 %v1432_v51, %v1332_v38 }
 0x136   : > { %1451 = vst.msk [vmem:[%s2284_s24 + $0x38] sm:$0xff] %vm1443_vm0, %v1442_v62  ;;  %v1465_v5 = vsel %vm1443_vm0, %v1442_v62, 0.0  ;;  %v1482_v6 = vmul.f32 %v1442_v62, %v1442_v62 }
 0x137   : > { %v1466_v11 = vadd.f32 %v1465_v5, %v1464_v27 }
 0x138   : > { %v1496_v59 = vsel %vm1443_vm0, %v1482_v6, 0.0 }
 0x139   : > { %v1467_v12 = vrot.slane %v1466_v11, 4  ;;  %v1497_v45 = vadd.f32 %v1496_v59, %v1495_v43 }
 0x13b   : > { %v1468_v14 = vadd.f32 %v1467_v12, %v1466_v11  ;;  %v1498_v10 = vrot.slane %v1497_v45, 4 }
 0x13d   : > { %v1469_v15 = vrot.slane %v1468_v14, 2  ;;  %v1499_v20 = vadd.f32 %v1498_v10, %v1497_v45 }
 0x13f   : > { %v1470_v22 = vadd.f32 %v1469_v15, %v1468_v14  ;;  %v1500_v21 = vrot.slane %v1499_v20, 2 }
 0x141   : > { %v1471_v44 = vrot.slane %v1470_v22, 1  ;;  %v1501_v49 = vadd.f32 %v1500_v21, %v1499_v20 }
 0x143   : > { %v1472_v3 = vadd.f32 %v1471_v44, %v1470_v22  ;;  %v1502_v42 = vrot.slane %v1501_v49, 1 }
 0x145   : > { %1474 = vst.msk [vmem:[%s238_s27] sm:$0x1] %vm1473_vm2, %v1472_v3  ;;  %v1503_v24 = vadd.f32 %v1502_v42, %v1501_v49 }
 0x147   : > { %1504 = vst.msk [vmem:[%s238_s27 + $0x1] sm:$0x1] %vm1473_vm2, %v1503_v24 }
 0x148 PF: > { %s16_s18 = sadd.s32 1, %s1804_s18  }
 0x149   : > { %p13_p5 = scmp.ge.s32.totalorder %s16_s18, 4  }
 0x14b   :  { %15 = sbr.rel (!%p13_p5) target bundleno = 1 (0x1), region = 86 }

// kernel: resnet_pre_encoder_forward.5
= control target key start
LH: loop header
LB: loop body
LE: loop exit
PB: predicated region body
PF: predicated region fallthrough
CT: control target
= control target key end

     0   :  { %s1845_s18 = smov 0   ;;  %s2356_s0 = inlined_call_operand.vmem [shape: bf16[128,32], index: 0, kind: input, shape index: {}]   ;;  %s2357_s1 = inlined_call_operand.vmem [shape: f32[1,32], index: 1, kind: input, shape index: {}]   ;;  %s2358_s2 = inlined_call_operand.vmem [shape: f32[1,32], index: 2, kind: input, shape index: {}]   ;;  %s2359_s3 = inlined_call_operand.vmem [shape: bf16[9,32,32], index: 3, kind: input, shape index: {}]   ;;  %s2360_s4 = inlined_call_operand.vmem [shape: bf16[128,32], index: 4, kind: output, shape index: {0}]   ;;  %s2361_s5 = inlined_call_operand.vmem [shape: f32[2,2,32], index: 5, kind: output, shape index: {1}]  }
   0x1 LB: > { %s1851_s19 = sadd.s32 4294967295, %s1812_s18   ;;  %p1604_p0 = scmp.ge.s32.totalorder %s1812_s18, 1  ;;  %s1812_s18 = sphi %s1845_s18, %s16_s18  }
   0x2   : > { %p191_p1 = scmp.lt.s32.totalorder %s1812_s18, 3 }
   0x4   : > { %p192_p2 = pnand %p1604_p0, %p191_p1 }
   0x5   : > { %s1605_s22 = sshll.u32 (!%p192_p2), %s1851_s19, 3  ;;  %p235_p4 = scmp.lt.s32.totalorder (!%p192_p2), %s1851_s19, 1 }
   0x6   : > { %195 = sbr.rel (%p192_p2) target bundleno = 328 (0x148), region = 36  ;;  %p224_p3 = scmp.lt.s32.totalorder (!%p192_p2), %s1605_s22, 15 }
   0xb   : > { %v1755_v0 = vld [vmem:[%s2359_s3 + $0x18] sm:$0xff]  ;;  %v1754_v1 = vld [vmem:[%s2359_s3 + $0x10] sm:$0xff]  ;;  %vm240_vm0 = vcmask 261120   ;;  %s2395_s22 = smov (!%p224_p3, %s1605_s22), 15  ;;  %v1757_v2 = vld [vmem:[%s2359_s3 + $0x28] sm:$0xff]  ;;  %v1814_v3 = vmov 0.0   ;;  %v301_v44 = vlaneseq }
   0xc   : > { %1789 = vmatpush.bf16.msra.mxu1 %v1755_v0  ;;  %1790 = vmatpush.bf16.msra.mxu2 %v1755_v0  ;;  %242 = vst.msk [vmem:[#allocation2 + $0x8] sm:$0xff] %vm240_vm0, %v1814_v3  ;;  %v1759_v4 = vld [vmem:[%s2359_s3 + $0x38] sm:$0xff]  ;;  %s1606_s29 = sshll.u32 %s2395_s22, 2  ;;  %v1753_v5 = vld [vmem:[%s2359_s3 + $0x8] sm:$0xff]  ;;  %v1889_v7 = vld [vmem:[%s2357_s1] ss:$0 sm:$0xff] }
   0xd   : > { %1791 = vmatpush.bf16.msra.mxu3 %v1755_v0  ;;  %637 = vmatpush.bf16.msra.mxu0 %v1755_v0  ;;  %243 = vst.msk [vmem:[#allocation2 + $0x50] sm:$0xff] %vm240_vm0, %v1814_v3  ;;  %v1761_v6 = vld [vmem:[%s2359_s3 + $0x48] sm:$0xff]  ;;  %s227_s11 = scalar_lea.vmem %s2356_s0, %s1606_s29  ;;  %v1894_v13 = vld [vmem:[%s2358_s2] ss:$0 sm:$0xff]  ;;  %v1758_v21 = vld [vmem:[%s2359_s3 + $0x30] sm:$0xff]  ;;  %v1931_v46 = vshrl.u32 %v301_v44, 7  ;;  %s2292_s24 = scalar_lea.vmem %s2360_s4, %s1606_s29 }
   0xe   : > { %v1771_v8 = vld [vmem:[%s227_s11] sm:$0xff]   ;;  %v1786_v9 = vld [vmem:[%s227_s11 + $0x8] sm:$0xff]   ;;  %v1787_v10 = vld [vmem:[%s227_s11 + $0x10] sm:$0xff]   ;;  %s2397_s19 = smov (!%p235_p4, %s1851_s19), 1 }
   0xf   : > { %v1773_v11 = vunpack.c.h.bf16 %v1771_v8  ;;  %v1776_v12 = vunpack.c.l.bf16 %v1786_v9  ;;  %v1777_v14 = vunpack.c.h.bf16 %v1786_v9  ;;  %v1780_v15 = vunpack.c.l.bf16 %v1787_v10  ;;  %v1896_v16 = vld [vmem:[%s227_s11 + $0x18] sm:$0xff]   ;;  %v1756_v17 = vld [vmem:[%s2359_s3 + $0x20] sm:$0xff]  ;;  %v1765_v54 = vld [vmem:[%s2359_s3 + $0x68] sm:$0xff]  ;;  %s1609_s22 = sshll.u32 %s2397_s19, 1 }
  0x10   : > { %1792 = vmatpush.bf16.msra.mxu1 %v1754_v1  ;;  %1793 = vmatpush.bf16.msra.mxu2 %v1754_v1  ;;  %v1781_v18 = vunpack.c.h.bf16 %v1787_v10  ;;  %v1784_v19 = vunpack.c.l.bf16 %v1896_v16  ;;  %v1772_v20 = vunpack.c.l.bf16 %v1771_v8  ;;  %v1752_v22 = vld [vmem:[%s2359_s3] sm:$0xff]  ;;  %v1763_v49 = vld [vmem:[%s2359_s3 + $0x58] sm:$0xff]  ;;  %v303_v52 = vadd.s32 8, %v1931_v46  ;;  %v1769_v62 = vld [vmem:[%s2359_s3 + $0x88] sm:$0xff]  ;;  %s238_s26 = scalar_lea.vmem %s2361_s5, %s1609_s22 }
  0x11   : > { %1794 = vmatpush.bf16.msra.mxu3 %v1754_v1  ;;  %638 = vmatpush.bf16.msra.mxu0 %v1754_v1  ;;  %v266_v23 = vmul.f32 %v1889_v7, %v1773_v11  ;;  %v267_v24 = vmul.f32 %v1889_v7, %v1776_v12  ;;  %v268_v25 = vmul.f32 %v1889_v7, %v1777_v14  ;;  %v1760_v27 = vld [vmem:[%s2359_s3 + $0x40] sm:$0xff]  ;;  %v1767_v58 = vld [vmem:[%s2359_s3 + $0x78] sm:$0xff]  ;;  %v307_v44 = vadd.s32 40, %v1931_v46 }
  0x12   : > { %v269_v26 = vmul.f32 %v1889_v7, %v1780_v15  ;;  %v270_v28 = vmul.f32 %v1889_v7, %v1781_v18  ;;  %v271_v29 = vmul.f32 %v1889_v7, %v1784_v19  ;;  %v265_v30 = vmul.f32 %v1889_v7, %v1772_v20 }
  0x13   : > { %v278_v31 = vadd.f32 %v1894_v13, %v266_v23  ;;  %v279_v32 = vadd.f32 %v1894_v13, %v267_v24  ;;  %v280_v33 = vadd.f32 %v1894_v13, %v268_v25  ;;  %v321_v61 = vand.u32 7, %v303_v52  ;;  %v1766_v25 = vld [vmem:[%s2359_s3 + $0x70] sm:$0xff] }
  0x14   : > { %800 = vmatpush.bf16.msrb.mxu2 %v1757_v2  ;;  %690 = vmatpush.bf16.msrb.mxu1 %v1753_v5  ;;  %v281_v34 = vadd.f32 %v1894_v13, %v269_v26  ;;  %v282_v35 = vadd.f32 %v1894_v13, %v270_v28  ;;  %v283_v36 = vadd.f32 %v1894_v13, %v271_v29  ;;  %v314_v2 = vand.u32 7, %v1931_v46  ;;  %v1762_v26 = vld [vmem:[%s2359_s3 + $0x50] sm:$0xff] }
  0x15   : > { %902 = vmatpush.bf16.msrb.mxu3 %v1759_v4  ;;  %980 = vmatpush.bf16.msrb.mxu0 %v1761_v6  ;;  %v286_v37 = vmax.f32 %v278_v31, 0.0  ;;  %v287_v38 = vmax.f32 %v279_v32, 0.0  ;;  %v288_v39 = vmax.f32 %v280_v33, 0.0  ;;  %v277_v40 = vadd.f32 %v1894_v13, %v265_v30 }
  0x16   : > { %v289_v41 = vmax.f32 %v281_v34, 0.0  ;;  %v290_v42 = vmax.f32 %v282_v35, 0.0  ;;  %v291_v43 = vmax.f32 %v283_v36, 0.0  ;;  %vm1976_vm1 = vcmp.ge.s32.totalorder %v321_v61, 1 }
  0x17   : > { %294 = vst.msk [vmem:[#allocation2 + $0x18] sm:$0xff] %vm240_vm0, %v286_v37  ;;  %v285_v45 = vmax.f32 %v277_v40, 0.0  ;;  %vm1983_vm2 = vcmp.le.s32.totalorder %v321_v61, 6  ;;  %vm1991_vm3 = vcmp.ge.s32.totalorder %v314_v2, 1  ;;  %v305_v18 = vadd.s32 24, %v1931_v46 }
  0x18   : > { %801 = vmatpush.bf16.msrb.mxu2 %v1756_v17  ;;  %691 = vmatpush.bf16.msrb.mxu1 %v1752_v22  ;;  %295 = vst.msk [vmem:[#allocation2 + $0x20] sm:$0xff] %vm240_vm0, %v287_v38  ;;  %v304_v17 = vadd.s32 16, %v1931_v46  ;;  %v1785_v23 = vunpack.c.h.bf16 %v1896_v16  ;;  %v1768_v16 = vld [vmem:[%s2359_s3 + $0x80] sm:$0xff]  ;;  %v349_v52 = vand.u32 7, %v307_v44 }
  0x19   : > { %903 = vmatpush.bf16.msrb.mxu3 %v1758_v21  ;;  %981 = vmatpush.bf16.msrb.mxu0 %v1760_v27  ;;  %296 = vst.msk [vmem:[#allocation2 + $0x28] sm:$0xff] %vm240_vm0, %v288_v39  ;;  %v335_v22 = vand.u32 7, %v305_v18  ;;  %v308_v18 = vadd.s32 48, %v1931_v46 }
  0x1a   : > { %297 = vst.msk [vmem:[#allocation2 + $0x30] sm:$0xff] %vm240_vm0, %v289_v41  ;;  %v328_v21 = vand.u32 7, %v304_v17  ;;  %v272_v24 = vmul.f32 %v1889_v7, %v1785_v23  ;;  %vm2085_vm9 = vcmp.ge.s32.totalorder %v349_v52, 1  ;;  %vm2097_vm11 = vcmp.le.s32.totalorder %v349_v52, 6 }
  0x1b   : > { %298 = vst.msk [vmem:[#allocation2 + $0x38] sm:$0xff] %vm240_vm0, %v290_v42  ;;  %vm2033_vm5 = vcmp.ge.s32.totalorder %v335_v22, 1  ;;  %vm2046_vm7 = vcmp.le.s32.totalorder %v335_v22, 6  ;;  %v356_v22 = vand.u32 7, %v308_v18 }
  0x1c   : > { %299 = vst.msk [vmem:[#allocation2 + $0x40] sm:$0xff] %vm240_vm0, %v291_v43  ;;  %vm2029_vm4 = vcmp.ge.s32.totalorder %v328_v21, 1  ;;  %v284_v29 = vadd.f32 %v1894_v13, %v272_v24  ;;  %vm2042_vm6 = vcmp.le.s32.totalorder %v328_v21, 6  ;;  %v306_v43 = vadd.s32 32, %v1931_v46 }
  0x1d   : > { %293 = vst.msk [vmem:[#allocation2 + $0x10] sm:$0xff] %vm240_vm0, %v285_v45  ;;  %vm2129_vm12 = vcmp.ge.s32.totalorder %v356_v22, 1  ;;  %vm2139_vm14 = vcmp.le.s32.totalorder %v356_v22, 6 }
  0x1e   : > { %v568_v47 = vld [vmem:[#allocation2 + $0x18] sm:$0xff]  ;;  %v292_v34 = vmax.f32 %v284_v29, 0.0 }
  0x1f   : > { %v1934_v48 = vld [vmem:[#allocation2 + $0x20] sm:$0xff] }
  0x20   : > { %v1940_v50 = vpack.c.bf16 %v1934_v48, %v568_v47  ;;  %v1942_v51 = vld [vmem:[#allocation2 + $0x28] sm:$0xff]  ;;  %v2027_v27 = vld [vmem:[#allocation2 + $0x1f] sm:$0xff]  ;;  %300 = vst.msk [vmem:[#allocation2 + $0x48] sm:$0xff] %vm240_vm0, %v292_v34 }
  0x21   : > { %v1945_v53 = vld [vmem:[#allocation2 + $0x30] sm:$0xff]  ;;  %v2038_v30 = vld [vmem:[#allocation2 + $0x19] sm:$0xff]  ;;  %v2040_v31 = vld [vmem:[#allocation2 + $0x21] sm:$0xff]  ;;  %v553_v35 = vsel %vm2033_vm5, %v2027_v27, 0.0  ;;  %v857_v40 = vsel %vm2029_vm4, %v2027_v27, 0.0 }
  0x22   : > { %1623 = vmatmul.msk.bf16.vlgmr.msra.gmra.mxu1 %vm240_vm0, %v1940_v50  ;;  %v1954_v55 = vpack.c.bf16 %v1945_v53, %v1942_v51  ;;  %v1956_v56 = vld [vmem:[#allocation2 + $0x38] sm:$0xff]  ;;  %v2056_v36 = vld [vmem:[#allocation2 + $0x27] sm:$0xff]  ;;  %v755_v37 = vsel %vm2042_vm6, %v2038_v30, 0.0  ;;  %v756_v38 = vsel %vm2046_vm7, %v2040_v31, 0.0  ;;  %v1037_v1 = vsel %vm2042_vm6, %v2040_v31, 0.0 }
  0x23   : > { %v1958_v57 = vld [vmem:[#allocation2 + $0x40] sm:$0xff]  ;;  %1082 = vmatpush.bf16.msra.mxu1 %v1763_v49  ;;  %v858_v41 = vsel %vm2033_vm5, %v2056_v36, 0.0  ;;  %v762_v42 = vpack.c.bf16 %v756_v38, %v755_v37  ;;  %v342_v49 = vand.u32 7, %v306_v43  ;;  %v2089_v61 = vld [vmem:[#allocation2 + $0x29] sm:$0xff]  ;;  %v943_v21 = vpack.c.bf16 %v1956_v56, %v1945_v53 }
  0x24   : > { %1624 = vmatmul.msk.bf16.vlgmr.msra.gmra.mxu2 %vm240_vm0, %v1954_v55  ;;  %v1967_v59 = vpack.c.bf16 %v1958_v57, %v1956_v56  ;;  %v567_v60 = vld [vmem:[#allocation2 + $0x10] sm:$0xff]  ;;  %v864_v45 = vpack.c.bf16 %v858_v41, %v857_v40  ;;  %v2391_v56 = vmov 0  ;;  %v1155_v5 = vsel %vm2029_vm4, %v2056_v36, 0.0 }
  0x25   : > { %v598_v63 = vpack.c.bf16 %v567_v60, %v1814_v3  ;;  %1200 = vmatpush.bf16.msra.mxu2 %v1765_v54  ;;  %v503_v0 = vld [vmem:[#allocation2 + $0xf] sm:$0xff]  ;;  %v1995_v9 = vld [vmem:[#allocation2 + $0x17] sm:$0xff]  ;;  %v941_v20 = vpack.c.bf16 %v568_v47, %v567_v60  ;;  %v942_v47 = vpack.c.bf16 %v1942_v51, %v1934_v48  ;;  %vm2081_vm8 = vcmp.ge.s32.totalorder %v342_v49, 1 }
  0x26   : > { %1625 = vmatmul.msk.bf16.vlgmr.msra.gmra.mxu3 %vm240_vm0, %v1967_v59  ;;  %v1981_v4 = vld [vmem:[#allocation2 + $0x11] sm:$0xff]  ;;  %v551_v6 = vsel %vm1976_vm1, %v503_v0, 0.0  ;;  %v855_v12 = vsel %vm1991_vm3, %v503_v0, 0.0  ;;  %v856_v14 = vsel %vm1976_vm1, %v1995_v9, 0.0  ;;  %v552_v13 = vsel %vm2029_vm4, %v1995_v9, 0.0 }
  0x27   : > { %1622 = vmatmul.msk.bf16.vlgmr.msra.gmra.mxu0 %vm240_vm0, %v598_v63  ;;  %1302 = vmatpush.bf16.msra.mxu3 %v1767_v58  ;;  %v754_v10 = vsel %vm1983_vm2, %v1981_v4, 0.0  ;;  %v558_v11 = vpack.c.bf16 %v551_v6, %v1814_v3  ;;  %v863_v19 = vpack.c.bf16 %v856_v14, %v855_v12  ;;  %v559_v39 = vpack.c.bf16 %v553_v35, %v552_v13  ;;  %v2079_v54 = vld [vmem:[#allocation2 + $0x2f] sm:$0xff]  ;;  %v2107_v6 = vld [vmem:[#allocation2 + $0x37] sm:$0xff]  ;;  %v838_v13 = vld [vmem:[#allocation2 + $0x47] sm:$0xff] }
  0x28   : > { %1412 = vmatpush.bf16.msra.mxu0 %v1769_v62  ;;  %v761_v15 = vpack.c.bf16 %v754_v10, %v1814_v3  ;;  %v1764_v3 = vld [vmem:[%s2359_s3 + $0x60] sm:$0xff]  ;;  %1083 = vmatpush.bf16.msra.mxu1 %v1762_v26  ;;  %v2091_v48 = vld [vmem:[#allocation2 + $0x31] sm:$0xff]  ;;  %vm2093_vm10 = vcmp.le.s32.totalorder %v342_v49, 6  ;;  %v554_v63 = vsel %vm2081_vm8, %v2056_v36, 0.0  ;;  %v555_v0 = vsel %vm2085_vm9, %v2079_v54, 0.0  ;;  %v1018_v58 = vld [vmem:[#allocation2 + $0x49] sm:$0xff] }
  0x29   : > { %1201 = vmatpush.bf16.msra.mxu2 %v1764_v3  ;;  %v757_v10 = vsel %vm2093_vm10, %v2089_v61, 0.0  ;;  %v560_v12 = vpack.c.bf16 %v555_v0, %v554_v63  ;;  %v859_v14 = vsel %vm2081_vm8, %v2079_v54, 0.0  ;;  %v509_v3 = vld [vmem:[#allocation2 + $0x3f] sm:$0xff]  ;;  %v556_v29 = vsel %vm2129_vm12, %v2107_v6, 0.0 }
  0x2a   : > { %v719_v26 = vld [vmem:[#allocation2 + $0x39] sm:$0xff]  ;;  %v1153_v49 = vsel %vm1991_vm3, %v1995_v9, 0.0  ;;  %v1156_v8 = vsel %vm2033_vm5, %v2079_v54, 0.0  ;;  %v1039_v28 = vsel %vm2093_vm10, %v2091_v48, 0.0  ;;  %v1157_v32 = vsel %vm2081_vm8, %v2107_v6, 0.0 }
  0x2b   : > { %1303 = vmatpush.bf16.msra.mxu3 %v1766_v25  ;;  %v759_v35 = vsel %vm2139_vm14, %v719_v26, 0.0  ;;  %v1040_v7 = vsel %vm2097_vm11, %v719_v26, 0.0  ;;  %v1158_v33 = vsel %vm2085_vm9, %v509_v3, 0.0  ;;  %v1159_v62 = vsel %vm2129_vm12, %v838_v13, 0.0 }
  0x2c   : > { %1413 = vmatpush.bf16.msra.mxu0 %v1768_v16  ;;  %v2137_v16 = vld [vmem:[#allocation2 + $0x41] sm:$0xff]  ;;  %v1045_v36 = vpack.c.bf16 %v1040_v7, %v1039_v28  ;;  %v1163_v54 = vpack.c.bf16 %v1158_v33, %v1157_v32  ;;  %vm1481_vm3 = vcmask 253952  }
  0x2d   : > { %v1041_v60 = vsel %vm2139_vm14, %v2137_v16, 0.0 }
  0x32   : > { %1634 = vmatmul.msk.bf16.vlgmr.msrb.gmra.mxu1 %vm240_vm0, %v558_v11  ;;  %v758_v11 = vsel %vm2097_vm11, %v2091_v48, 0.0 }
  0x33   : > { %v763_v17 = vpack.c.bf16 %v758_v11, %v757_v10  ;;  %v1164_v11 = vpack.c.bf16 0.0, %v1159_v62 }
  0x34   : > { %1650 = vmatmul.msk.bf16.vlgmr.msrb.gmra.mxu2 %vm240_vm0, %v761_v15  ;;  %v860_v15 = vsel %vm2085_vm9, %v2107_v6, 0.0 }
  0x36   : > { %1666 = vmatmul.msk.bf16.vlgmr.msrb.gmra.mxu3 %vm240_vm0, %v863_v19  ;;  %v309_v19 = vadd.s32 56, %v1931_v46  ;;  %v1366_v46 = vsel %vm1983_vm2, %v2040_v31, 0.0 }
  0x37   : > { %1682 = vmatmul.msk.bf16.vlgmr.msrb.gmra.mxu0 %vm240_vm0, %v941_v20  ;;  %v865_v20 = vpack.c.bf16 %v860_v15, %v859_v14 }
  0x38   : > { %v363_v23 = vand.u32 7, %v309_v19 }
  0x3a   : > { %vm2133_vm13 = vcmp.ge.s32.totalorder %v363_v23, 1  ;;  %vm2143_vm15 = vcmp.le.s32.totalorder %v363_v23, 6 }
  0x3b   : > { %v2392_v56 = vsel %vm2143_vm15, 4294967295, %v2391_v56  ;;  %v557_v34 = vsel %vm2133_vm13, %v509_v3, 0.0  ;;  %v760_v37 = vsel %vm2143_vm15, %v2137_v16, 0.0  ;;  %v862_v40 = vsel %vm2133_vm13, %v838_v13, 0.0 }
  0x3c   : > { %v561_v38 = vpack.c.bf16 %v557_v34, %v556_v29  ;;  %v764_v41 = vpack.c.bf16 %v760_v37, %v759_v35  ;;  %vm721_vm15 = vcmp.le.s32.totalorder %v314_v2, 6 }
  0x3d   : > { %v1365_v0 = vsel %vm721_vm15, %v2038_v30, 0.0 }
  0x3e   : > { %v1373_v2 = vpack.c.bf16 %v1366_v46, %v1365_v0 }
  0x42   : > { %1635 = vmatmul.msk.bf16.gmra.mxu1 %vm240_vm0, %v559_v39  ;;  %v861_v39 = vsel %vm2129_vm12, %v509_v3, 0.0 }
  0x43   : > { %v866_v43 = vpack.c.bf16 %v862_v40, %v861_v39 }
  0x44   : > { %1651 = vmatmul.msk.bf16.gmra.mxu2 %vm240_vm0, %v762_v42  ;;  %v940_v42 = vld [vmem:[#allocation2 + $0x48] sm:$0xff] }
  0x45   : > { %v944_v44 = vpack.c.bf16 %v940_v42, %v1958_v57  ;;  %v1154_v57 = vsel %vm1976_vm1, %v2027_v27, 0.0  ;;  %v1367_v27 = vsel %vm2042_vm6, %v2089_v61, 0.0  ;;  %vm2393_vm1 = vnez %v2392_v56 }
  0x46   : > { %1667 = vmatmul.msk.bf16.gmra.mxu3 %vm240_vm0, %v864_v45  ;;  %v1035_v45 = vsel %vm721_vm15, %v1981_v4, 0.0  ;;  %v1161_v63 = vpack.c.bf16 %v1154_v57, %v1153_v49  ;;  %v1038_v4 = vsel %vm2046_vm7, %v2089_v61, 0.0  ;;  %v1370_v61 = vsel %vm2097_vm11, %v2137_v16, 0.0 }
  0x47   : > { %1683 = vmatmul.msk.bf16.gmra.mxu0 %vm240_vm0, %v942_v47  ;;  %v1036_v47 = vsel %vm1983_vm2, %v2038_v30, 0.0  ;;  %v1044_v9 = vpack.c.bf16 %v1038_v4, %v1037_v1  ;;  %v1368_v30 = vsel %vm2046_vm7, %v2091_v48, 0.0  ;;  %v1042_v51 = vsel %vm2393_vm1, %v1018_v58, 0.0 }
  0x48   : > { %v1043_v52 = vpack.c.bf16 %v1036_v47, %v1035_v45  ;;  %v1374_v31 = vpack.c.bf16 %v1368_v30, %v1367_v27  ;;  %v1046_v6 = vpack.c.bf16 %v1042_v51, %v1041_v60  ;;  %vm1451_vm2 = vcmask 257024  }
  0x52   : > { %1636 = vmatmul.msk.bf16.gmra.mxu1 %vm240_vm0, %v560_v12  ;;  %v1371_v12 = vsel %vm2139_vm14, %v1018_v58, 0.0 }
  0x53   : > { %v1376_v14 = vpack.c.bf16 0.0, %v1371_v12 }
  0x54   : > { %1652 = vmatmul.msk.bf16.gmra.mxu2 %vm240_vm0, %v763_v17 }
  0x56   : > { %1668 = vmatmul.msk.bf16.gmra.mxu3 %vm240_vm0, %v865_v20 }
  0x57   : > { %1684 = vmatmul.msk.bf16.gmra.mxu0 %vm240_vm0, %v943_v21 }
  0x62   : > { %1637 = vmatmul.msk.bf16.gmra.mxu1 %vm240_vm0, %v561_v38 }
  0x64   : > { %1653 = vmatmul.msk.bf16.gmra.mxu2 %vm240_vm0, %v764_v41 }
  0x66   : > { %1669 = vmatmul.msk.bf16.gmra.mxu3 %vm240_vm0, %v866_v43 }
  0x67   : > { %1685 = vmatmul.msk.bf16.gmra.mxu0 %vm240_vm0, %v944_v44 }
  0x72   : > { %1698 = vmatmul.msk.bf16.vlgmr.msra.gmra.mxu1 %vm240_vm0, %v1043_v52 }
  0x74   : > { %1714 = vmatmul.msk.bf16.vlgmr.msra.gmra.mxu2 %vm240_vm0, %v1161_v63 }
  0x76   : > { %1730 = vmatmul.msk.bf16.vlgmr.msra.gmra.mxu3 %vm240_vm0, %v1940_v50  ;;  %v1162_v50 = vpack.c.bf16 %v1156_v8, %v1155_v5 }
  0x77   : > { %1746 = vmatmul.msk.bf16.vlgmr.msra.gmra.mxu0 %vm240_vm0, %v1373_v2 }
  0x82   : > { %1699 = vmatmul.msk.bf16.gmra.mxu1 %vm240_vm0, %v1044_v9 }
  0x84   : > { %1715 = vmatmul.msk.bf16.gmra.mxu2 %vm240_vm0, %v1162_v50 }
  0x86   : > { %1731 = vmatmul.msk.bf16.gmra.mxu3 %vm240_vm0, %v1954_v55  ;;  %v1369_v55 = vsel %vm2093_vm10, %v719_v26, 0.0 }
  0x87   : > { %1747 = vmatmul.msk.bf16.gmra.mxu0 %vm240_vm0, %v1374_v31  ;;  %v1375_v48 = vpack.c.bf16 %v1370_v61, %v1369_v55 }
  0x92   : > { %1700 = vmatmul.msk.bf16.gmra.mxu1 %vm240_vm0, %v1045_v36 }
  0x94   : > { %1716 = vmatmul.msk.bf16.gmra.mxu2 %vm240_vm0, %v1163_v54 }
  0x96   : > { %1732 = vmatmul.msk.bf16.gmra.mxu3 %vm240_vm0, %v1967_v59  ;;  %v1266_v59 = vpack.c.bf16 0.0, %v940_v42 }
  0x97   : > { %1748 = vmatmul.msk.bf16.gmra.mxu0 %vm240_vm0, %v1375_v48 }
  0x9f   : > { %v645_v10 = vpop.f32.mrf.mxu1 }
  0xa2   : > { %1701 = vmatmul.msk.bf16.gmra.mxu1 %vm240_vm0, %v1046_v6 }
  0xa4   : > { %v640_v15 = vpop.f32.mrf.mxu0  ;;  %1717 = vmatmul.msk.bf16.gmra.mxu2 %vm240_vm0, %v1164_v11 }
  0xa6   : > { %1733 = vmatmul.msk.bf16.gmra.mxu3 %vm240_vm0, %v1266_v59 }
  0xa7   : > { %1749 = vmatmul.msk.bf16.gmra.mxu0 %vm240_vm0, %v1376_v14  ;;  %v2243_v17 = vpop.f32.mrf.mxu2  ;;  %v2245_v18 = vpop.f32.mrf.mxu1 }
  0xa9   : > { %v2247_v19 = vpop.f32.mrf.mxu3 }
  0xac   : > { %v642_v20 = vpop.f32.mrf.mxu0 }
  0xaf   : > { %v2249_v21 = vpop.f32.mrf.mxu2  ;;  %v693_v22 = vpop.f32.mrf.mxu1 }
  0xb0   : > { %v694_v1 = vadd.f32 %v693_v22, %v640_v15 }
  0xb1   : > { %v2251_v23 = vpop.f32.mrf.mxu3 }
  0xb4   : > { %v983_v3 = vpop.f32.mrf.mxu0 }
  0xb7   : > { %v803_v24 = vpop.f32.mrf.mxu2  ;;  %v695_v25 = vpop.f32.mrf.mxu1 }
  0xb8   : > { %v823_v4 = vadd.f32 %v803_v24, %v694_v1  ;;  %v696_v30 = vadd.f32 %v695_v25, %v642_v20 }
  0xb9   : > { %v905_v26 = vpop.f32.mrf.mxu3 }
  0xba   : > { %v925_v50 = vadd.f32 %v905_v26, %v823_v4 }
  0xbc   : > { %v985_v16 = vpop.f32.mrf.mxu0  ;;  %v1003_v28 = vadd.f32 %v983_v3, %v925_v50 }
  0xbf   : > { %v805_v53 = vpop.f32.mrf.mxu2  ;;  %v698_v56 = vpop.f32.mrf.mxu1 }
  0xc0   : > { %v824_v31 = vadd.f32 %v805_v53, %v696_v30  ;;  %v699_v48 = vadd.f32 %v698_v56, %v645_v10 }
  0xc1   : > { %v907_v29 = vpop.f32.mrf.mxu3 }
  0xc2   : > { %v926_v54 = vadd.f32 %v907_v29, %v824_v31 }
  0xc4   : > { %v988_v34 = vpop.f32.mrf.mxu0  ;;  %v1004_v62 = vadd.f32 %v985_v16, %v926_v54 }
  0xc7   : > { %v808_v13 = vpop.f32.mrf.mxu2  ;;  %v700_v35 = vpop.f32.mrf.mxu1 }
  0xc8   : > { %v825_v60 = vadd.f32 %v808_v13, %v699_v48  ;;  %v701_v22 = vadd.f32 %v700_v35, %v2245_v18 }
  0xc9   : > { %v910_v37 = vpop.f32.mrf.mxu3 }
  0xca   : > { %v927_v15 = vadd.f32 %v910_v37, %v825_v60 }
  0xcc   : > { %v2253_v38 = vpop.f32.mrf.mxu0  ;;  %v1005_v16 = vadd.f32 %v988_v34, %v927_v15 }
  0xcf   : > { %v810_v39 = vpop.f32.mrf.mxu2  ;;  %v2255_v40 = vpop.f32.mrf.mxu1 }
  0xd0   : > { %v826_v24 = vadd.f32 %v810_v39, %v701_v22 }
  0xd1   : > { %v912_v41 = vpop.f32.mrf.mxu3 }
  0xd2   : > { %v928_v30 = vadd.f32 %v912_v41, %v826_v24 }
  0xd4   : > { %v2257_v42 = vpop.f32.mrf.mxu0 }
  0xd7   : > { %v2259_v43 = vpop.f32.mrf.mxu2  ;;  %v2261_v44 = vpop.f32.mrf.mxu1 }
  0xd9   : > { %v2263_v45 = vpop.f32.mrf.mxu3 }
  0xdc   : > { %v2265_v47 = vpop.f32.mrf.mxu0 }
  0xdf   : > { %v2267_v49 = vpop.f32.mrf.mxu2  ;;  %v2269_v57 = vpop.f32.mrf.mxu1 }
  0xe1   : > { %v2271_v52 = vpop.f32.mrf.mxu3 }
  0xe4   : > { %v2273_v63 = vpop.f32.mrf.mxu0 }
  0xe7   : > { %v2275_v0 = vpop.f32.mrf.mxu2  ;;  %v2277_v46 = vpop.f32.mrf.mxu1 }
  0xe9   : > { %v2279_v2 = vpop.f32.mrf.mxu3 }
  0xec   : > { %v2281_v5 = vpop.f32.mrf.mxu0 }
  0xef   : > { %v2283_v8 = vpop.f32.mrf.mxu2  ;;  %v1085_v9 = vpop.f32.mrf.mxu1 }
  0xf0   : > { %v1105_v32 = vadd.f32 %v1085_v9, %v1003_v28  ;;  %v704_v28 = vadd.f32 %v2255_v40, %v2243_v17 }
  0xf1   : > { %v2285_v27 = vpop.f32.mrf.mxu3 }
  0xf4   : > { %v1415_v7 = vpop.f32.mrf.mxu0 }
  0xf7   : > { %v1203_v33 = vpop.f32.mrf.mxu2  ;;  %v1087_v36 = vpop.f32.mrf.mxu1 }
  0xf8   : > { %v1223_v55 = vadd.f32 %v1203_v33, %v1105_v32  ;;  %v1106_v12 = vadd.f32 %v1087_v36, %v1004_v62  ;;  %v827_v32 = vadd.f32 %v2259_v43, %v704_v28  ;;  %v1006_v36 = vadd.f32 %v2253_v38, %v928_v30 }
  0xf9   : > { %v1305_v61 = vpop.f32.mrf.mxu3  ;;  %v706_v38 = vadd.f32 %v2261_v44, %v2249_v21 }
  0xfa   : > { %v1325_v58 = vadd.f32 %v1305_v61, %v1223_v55  ;;  %v929_v62 = vadd.f32 %v2263_v45, %v827_v32 }
  0xfc   : > { %v1435_v51 = vadd.f32 %v1415_v7, %v1325_v58  ;;  %v1417_v6 = vpop.f32.mrf.mxu0 }
  0xfe   : > { %v1443_v11 = vpack.c.bf16 %v1435_v51, %v1435_v51  ;;  %v1483_v25 = vmul.f32 %v1435_v51, %v1435_v51  ;;  %v1460_v56 = vsel %vm240_vm0, %v1435_v51, 0.0 }
  0xff   : > { %v1205_v59 = vpop.f32.mrf.mxu2  ;;  %v1090_v14 = vpop.f32.mrf.mxu1 }
 0x100   : > { %1452 = vst.msk [vmem:[%s2292_s24] sm:$0xf] %vm1451_vm2, %v1443_v11  ;;  %v1224_v10 = vadd.f32 %v1205_v59, %v1106_v12  ;;  %v1107_v37 = vadd.f32 %v1090_v14, %v1005_v16  ;;  %v1491_v18 = vsel %vm240_vm0, %v1483_v25, 0.0  ;;  %v828_v12 = vadd.f32 %v2267_v49, %v706_v38 }
 0x101   : > { %v1307_v20 = vpop.f32.mrf.mxu3  ;;  %v1007_v14 = vadd.f32 %v2257_v42, %v929_v62  ;;  %v709_v42 = vadd.f32 %v2269_v57, %v2247_v19 }
 0x102   : > { %v1326_v3 = vadd.f32 %v1307_v20, %v1224_v10 }
 0x104   : > { %v1436_v26 = vadd.f32 %v1417_v6, %v1326_v3  ;;  %v1420_v53 = vpop.f32.mrf.mxu0 }
 0x106   : > { %v1444_v29 = vpack.c.bf16 %v1436_v26, %v1436_v26  ;;  %v1461_v13 = vsel %vm240_vm0, %v1436_v26, 0.0  ;;  %v1484_v1 = vmul.f32 %v1436_v26, %v1436_v26  ;;  %v930_v26 = vadd.f32 %v2271_v52, %v828_v12 }
 0x107   : > { %v1462_v4 = vadd.f32 %v1461_v13, %v1460_v56  ;;  %v1208_v9 = vpop.f32.mrf.mxu2  ;;  %v1092_v50 = vpop.f32.mrf.mxu1  ;;  %v829_v56 = vadd.f32 %v2275_v0, %v709_v42 }
 0x108   : > { %1453 = vst.msk [vmem:[%s2292_s24 + $0x4] sm:$0xf] %vm1451_vm2, %v1444_v29  ;;  %v1492_v35 = vsel %vm240_vm0, %v1484_v1, 0.0  ;;  %v1225_v39 = vadd.f32 %v1208_v9, %v1107_v37  ;;  %v1108_v48 = vadd.f32 %v1092_v50, %v1006_v36  ;;  %v1008_v13 = vadd.f32 %v2265_v47, %v930_v26 }
 0x109   : > { %v1493_v34 = vadd.f32 %v1492_v35, %v1491_v18  ;;  %v1310_v31 = vpop.f32.mrf.mxu3  ;;  %v931_v18 = vadd.f32 %v2279_v2, %v829_v56  ;;  %v711_v47 = vadd.f32 %v2277_v46, %v2251_v23 }
 0x10a   : > { %v1327_v7 = vadd.f32 %v1310_v31, %v1225_v39 }
 0x10b   : > { %v830_v31 = vadd.f32 %v2283_v8, %v711_v47 }
 0x10c   : > { %v1437_v33 = vadd.f32 %v1420_v53, %v1327_v7  ;;  %v1422_v41 = vpop.f32.mrf.mxu0  ;;  %v1009_v7 = vadd.f32 %v2273_v63, %v931_v18 }
 0x10e   : > { %v1445_v54 = vpack.c.bf16 %v1437_v33, %v1437_v33  ;;  %v1463_v55 = vsel %vm240_vm0, %v1437_v33, 0.0  ;;  %v1485_v61 = vmul.f32 %v1437_v33, %v1437_v33 }
 0x10f   : > { %v1464_v58 = vadd.f32 %v1463_v55, %v1462_v4  ;;  %v1210_v60 = vpop.f32.mrf.mxu2  ;;  %v1095_v51 = vpop.f32.mrf.mxu1  ;;  %v932_v55 = vadd.f32 %v2285_v27, %v830_v31 }
 0x110   : > { %1454 = vst.msk [vmem:[%s2292_s24 + $0x8] sm:$0xf] %vm1451_vm2, %v1445_v54  ;;  %v1494_v17 = vsel %vm240_vm0, %v1485_v61, 0.0  ;;  %v1226_v40 = vadd.f32 %v1210_v60, %v1108_v48  ;;  %v1109_v22 = vadd.f32 %v1095_v51, %v1007_v14 }
 0x111   : > { %v1495_v43 = vadd.f32 %v1494_v17, %v1493_v34  ;;  %v1312_v6 = vpop.f32.mrf.mxu3  ;;  %v1010_v51 = vadd.f32 %v2281_v5, %v932_v55 }
 0x112   : > { %v1328_v11 = vadd.f32 %v1312_v6, %v1226_v40 }
 0x114   : > { %v1438_v59 = vadd.f32 %v1422_v41, %v1328_v11  ;;  %v1425_v15 = vpop.f32.mrf.mxu0 }
 0x116   : > { %v1446_v10 = vpack.c.bf16 %v1438_v59, %v1438_v59  ;;  %v1465_v45 = vsel %vm240_vm0, %v1438_v59, 0.0  ;;  %v1486_v20 = vmul.f32 %v1438_v59, %v1438_v59 }
 0x117   : > { %v1466_v3 = vadd.f32 %v1465_v45, %v1464_v58  ;;  %v1213_v24 = vpop.f32.mrf.mxu2  ;;  %v1097_v25 = vpop.f32.mrf.mxu1 }
 0x118   : > { %1455 = vst.msk [vmem:[%s2292_s24 + $0xc] sm:$0xf] %vm1451_vm2, %v1446_v10  ;;  %v1496_v21 = vsel %vm240_vm0, %v1486_v20, 0.0  ;;  %v1227_v44 = vadd.f32 %v1213_v24, %v1109_v22  ;;  %v1110_v4 = vadd.f32 %v1097_v25, %v1008_v13 }
 0x119   : > { %v1497_v49 = vadd.f32 %v1496_v21, %v1495_v43  ;;  %v1315_v16 = vpop.f32.mrf.mxu3 }
 0x11a   : > { %v1329_v53 = vadd.f32 %v1315_v16, %v1227_v44 }
 0x11c   : > { %v1439_v29 = vadd.f32 %v1425_v15, %v1329_v53  ;;  %v1427_v50 = vpop.f32.mrf.mxu0 }
 0x11e   : > { %v1447_v1 = vpack.c.bf16 %v1439_v29, %v1439_v29  ;;  %v1467_v52 = vsel %vm240_vm0, %v1439_v29, 0.0  ;;  %v1487_v37 = vmul.f32 %v1439_v29, %v1439_v29 }
 0x11f   : > { %v1468_v9 = vadd.f32 %v1467_v52, %v1466_v3  ;;  %v1215_v30 = vpop.f32.mrf.mxu2  ;;  %v1100_v39 = vpop.f32.mrf.mxu1 }
 0x120   : > { %1456 = vst.msk [vmem:[%s2292_s24 + $0x10] sm:$0xf] %vm1451_vm2, %v1447_v1  ;;  %v1498_v19 = vsel %vm240_vm0, %v1487_v37, 0.0  ;;  %v1228_v57 = vadd.f32 %v1215_v30, %v1110_v4  ;;  %v1111_v36 = vadd.f32 %v1100_v39, %v1009_v7 }
 0x121   : > { %v1499_v0 = vadd.f32 %v1498_v19, %v1497_v49  ;;  %v1317_v35 = vpop.f32.mrf.mxu3 }
 0x122   : > { %v1330_v34 = vadd.f32 %v1317_v35, %v1228_v57 }
 0x124   : > { %v1440_v28 = vadd.f32 %v1427_v50, %v1330_v34  ;;  %v1430_v8 = vpop.f32.mrf.mxu0 }
 0x126   : > { %v1448_v32 = vpack.c.bf16 %v1440_v28, %v1440_v28  ;;  %v1469_v2 = vsel %vm240_vm0, %v1440_v28, 0.0  ;;  %v1488_v33 = vmul.f32 %v1440_v28, %v1440_v28 }
 0x127   : > { %v1470_v41 = vadd.f32 %v1469_v2, %v1468_v9  ;;  %v1218_v54 = vpop.f32.mrf.mxu2  ;;  %v1102_v63 = vpop.f32.mrf.mxu1 }
 0x128   : > { %1457 = vst.msk [vmem:[%s2292_s24 + $0x14] sm:$0xf] %vm1451_vm2, %v1448_v32  ;;  %v1500_v23 = vsel %vm240_vm0, %v1488_v33, 0.0  ;;  %v1229_v46 = vadd.f32 %v1218_v54, %v1111_v36  ;;  %v1112_v27 = vadd.f32 %v1102_v63, %v1010_v51 }
 0x129   : > { %v1501_v61 = vadd.f32 %v1500_v23, %v1499_v0  ;;  %v1320_v48 = vpop.f32.mrf.mxu3 }
 0x12a   : > { %v1331_v58 = vadd.f32 %v1320_v48, %v1229_v46 }
 0x12c   : > { %v1441_v60 = vadd.f32 %v1430_v8, %v1331_v58  ;;  %v1432_v15 = vpop.f32.mrf.mxu0 }
 0x12e   : > { %v1449_v62 = vpack.c.bf16 %v1441_v60, %v1441_v60  ;;  %v1471_v17 = vsel %vm240_vm0, %v1441_v60, 0.0  ;;  %v1489_v40 = vmul.f32 %v1441_v60, %v1441_v60 }
 0x12f   : > { %v1472_v43 = vadd.f32 %v1471_v17, %v1470_v41  ;;  %v1220_v6 = vpop.f32.mrf.mxu2 }
 0x130   : > { %1458 = vst.msk [vmem:[%s2292_s24 + $0x18] sm:$0xf] %vm1451_vm2, %v1449_v62  ;;  %v1502_v38 = vsel %vm240_vm0, %v1489_v40, 0.0  ;;  %v1230_v11 = vadd.f32 %v1220_v6, %v1112_v27 }
 0x131   : > { %v1503_v12 = vadd.f32 %v1502_v38, %v1501_v61  ;;  %v1322_v59 = vpop.f32.mrf.mxu3 }
 0x132   : > { %v1332_v14 = vadd.f32 %v1322_v59, %v1230_v11 }
 0x134   : > { %v1442_v5 = vadd.f32 %v1432_v15, %v1332_v14 }
 0x136   : > { %v1450_v10 = vpack.c.bf16 %v1442_v5, %v1442_v5  ;;  %v1473_v45 = vsel %vm240_vm0, %v1442_v5, 0.0  ;;  %v1490_v20 = vmul.f32 %v1442_v5, %v1442_v5 }
 0x137   : > { %v1474_v22 = vadd.f32 %v1473_v45, %v1472_v43 }
 0x138   : > { %1459 = vst.msk [vmem:[%s2292_s24 + $0x1c] sm:$0xf] %vm1451_vm2, %v1450_v10  ;;  %v1504_v3 = vsel %vm240_vm0, %v1490_v20, 0.0 }
 0x139   : > { %v1475_v24 = vrot.slane %v1474_v22, 4  ;;  %v1505_v25 = vadd.f32 %v1504_v3, %v1503_v12 }
 0x13b   : > { %v1476_v26 = vadd.f32 %v1475_v24, %v1474_v22  ;;  %v1506_v21 = vrot.slane %v1505_v25, 4 }
 0x13d   : > { %v1477_v44 = vrot.slane %v1476_v26, 2  ;;  %v1507_v49 = vadd.f32 %v1506_v21, %v1505_v25 }
 0x13f   : > { %v1478_v16 = vadd.f32 %v1477_v44, %v1476_v26  ;;  %v1508_v42 = vrot.slane %v1507_v49, 2 }
 0x141   : > { %v1479_v53 = vrot.slane %v1478_v16, 1  ;;  %v1509_v56 = vadd.f32 %v1508_v42, %v1507_v49 }
 0x143   : > { %v1480_v29 = vadd.f32 %v1479_v53, %v1478_v16  ;;  %v1510_v13 = vrot.slane %v1509_v56, 1 }
 0x145   : > { %1482 = vst.msk [vmem:[%s238_s26] sm:$0x1] %vm1481_vm3, %v1480_v29  ;;  %v1511_v1 = vadd.f32 %v1510_v13, %v1509_v56 }
 0x147   : > { %1512 = vst.msk [vmem:[%s238_s26 + $0x1] sm:$0x1] %vm1481_vm3, %v1511_v1 }
 0x148 PF: > { %s16_s18 = sadd.s32 1, %s1812_s18  }
 0x149   : > { %p13_p5 = scmp.ge.s32.totalorder %s16_s18, 4  }
 0x14b   :  { %15 = sbr.rel (!%p13_p5) target bundleno = 1 (0x1), region = 86 }

</bundles_post_ra>
